<compile_context>
chip_gen: v6e
topology: v6e:2x2x1
jax: 0.10.0
libtpu: 0.0.40
codegen_flags: <defaults>
</compile_context>

<pallas_src>
import functools
import jax
import jax.numpy as jnp
from jax.experimental import pallas as pl
from jax.experimental.pallas import tpu as pltpu


def _round_up(x, m):
    return (x + m - 1) // m * m


# ---------------------------------------------------------------------------
# In-kernel helpers
# ---------------------------------------------------------------------------
def _conv3x3_folded(pad_ref, w_ref, H, W):
    """3x3 'SAME' conv on a zero-bordered VMEM scratch via one folded-K matmul.

    pad_ref: (H+2, Wp, C) zero-bordered activation scratch (Wp >= W+2)
    w_ref  : (9*C, Cout)  HWIO weights reshaped so K is ordered (ky, kx, ci)
    returns: (H*W, Cout) float32
    """
    C = pad_ref.shape[-1]
    taps = [pad_ref[dy:dy + H, dx:dx + W, :]          # 9 shifted windows
            for dy in range(3) for dx in range(3)]
    patches = jnp.concatenate(taps, axis=-1)          # (H, W, 9*C)
    patches = patches.reshape(H * W, 9 * C)           # merge major dims
    return jnp.dot(patches, w_ref[...], preferred_element_type=jnp.float32)


# ---------------------------------------------------------------------------
# Fused kernel: conv1+bn1+relu -> conv2+bn2 -> (+ shortcut) -> relu
# ---------------------------------------------------------------------------
def _fused_block_kernel(*refs, H, W, downsample):
    if downsample:
        (x_ref, w1_ref, s1_ref, b1_ref, w2_ref, s2_ref, b2_ref,
         ws_ref, ss_ref, sb_ref, out_ref, xpad, hpad) = refs
    else:
        (x_ref, w1_ref, s1_ref, b1_ref, w2_ref, s2_ref, b2_ref,
         out_ref, xpad, hpad) = refs

    Cin = x_ref.shape[-1]
    Cout = out_ref.shape[-1]

    # ---- stage 0: zero-pad x into VMEM scratch (no wrapper-side jnp.pad) ----
    xpad[...] = jnp.zeros_like(xpad)
    xpad[1:H + 1, 1:W + 1, :] = x_ref[0]

    # ---- stage 1: conv1 + folded bn1 + relu (stays entirely in VMEM) ----
    h = _conv3x3_folded(xpad, w1_ref, H, W)                  # (H*W, Cout) f32
    h = jnp.maximum(h * s1_ref[...] + b1_ref[...], 0.0)

    hpad[...] = jnp.zeros_like(hpad)
    hpad[1:H + 1, 1:W + 1, :] = h.reshape(H, W, Cout)

    # ---- stage 2: conv2 + folded bn2 ----
    out = _conv3x3_folded(hpad, w2_ref, H, W)                # (H*W, Cout) f32
    out = out * s2_ref[...] + b2_ref[...]

    # ---- residual path ----
    if downsample:
        x_flat = x_ref[0].reshape(H * W, Cin)
        res = jnp.dot(x_flat, ws_ref[...],
                      preferred_element_type=jnp.float32)   # 1x1 conv
        res = res * ss_ref[...] + sb_ref[...]                # folded bn_s
    else:
        res = x_ref[0].reshape(H * W, Cout)                  # identity (Cin==Cout)

    out = jnp.maximum(out + res, 0.0)
    out_ref[0, :, :, :] = out.reshape(H, W, Cout)


# ---------------------------------------------------------------------------
# Wrapper
# ---------------------------------------------------------------------------
def fold_bn(gamma, beta, mean, var, eps=1e-5):
    scale = gamma / jnp.sqrt(var + eps)
    bias = beta - mean * scale
    return (scale.reshape(1, -1).astype(jnp.float32),
            bias.reshape(1, -1).astype(jnp.float32))


def block_forward_nhwc(x, params, downsample=True):
    """x: (N, H, W, Cin) float32 NHWC. Returns (N, H, W, Cout) NHWC."""
    N, H, W, Cin = x.shape
    w1 = params["w1"]                       # (3,3,Cin,Cout) HWIO
    w2 = params["w2"]                       # (3,3,Cout,Cout) HWIO
    Cout = w1.shape[-1]
    if not downsample:
        assert Cin == Cout, "identity shortcut requires Cin == Cout"

    # Fold the 3x3 taps into the contraction dim: K ordered (ky, kx, ci).
    w1f = w1.reshape(9 * Cin, Cout).astype(jnp.float32)
    w2f = w2.reshape(9 * Cout, Cout).astype(jnp.float32)
    s1, b1 = fold_bn(*params["bn1"])
    s2, b2 = fold_bn(*params["bn2"])

    args = [x.astype(jnp.float32), w1f, s1, b1, w2f, s2, b2]
    in_specs = [
        pl.BlockSpec((1, H, W, Cin), lambda n: (n, 0, 0, 0)),
        pl.BlockSpec((9 * Cin, Cout), lambda n: (0, 0)),
        pl.BlockSpec((1, Cout), lambda n: (0, 0)),
        pl.BlockSpec((1, Cout), lambda n: (0, 0)),
        pl.BlockSpec((9 * Cout, Cout), lambda n: (0, 0)),
        pl.BlockSpec((1, Cout), lambda n: (0, 0)),
        pl.BlockSpec((1, Cout), lambda n: (0, 0)),
    ]
    if downsample:
        ws = params["ws"].astype(jnp.float32)            # (Cin, Cout)
        ss, sb = fold_bn(*params["bns"])
        args += [ws, ss, sb]
        in_specs += [
            pl.BlockSpec((Cin, Cout), lambda n: (0, 0)),
            pl.BlockSpec((1, Cout), lambda n: (0, 0)),
            pl.BlockSpec((1, Cout), lambda n: (0, 0)),
        ]

    Wp = _round_up(W + 2, 8)   # sublane-aligned padded-scratch width

    flops = 2 * N * H * W * Cout * (9 * Cin + 9 * Cout
                                    + (Cin if downsample else 0))
    bytes_accessed = 4 * (N * H * W * (Cin + Cout)
                          + 9 * Cin * Cout + 9 * Cout * Cout
                          + (Cin * Cout if downsample else 0) + 6 * Cout)

    # rough per-step VMEM need: double-buffered in/out blocks, weights,
    # padded scratches, im2col temporaries.
    est = 4 * (2 * H * W * (Cin + Cout)
               + 2 * (9 * Cin * Cout + 9 * Cout * Cout + Cin * Cout + 6 * Cout)
               + (H + 2) * Wp * (Cin + Cout)
               + H * W * (9 * Cin + 9 * Cout + 2 * Cout))
    vmem_limit = int(min(max(4 * est, 8 * 2 ** 20), 32 * 2 ** 20))

    kernel = functools.partial(_fused_block_kernel, H=H, W=W,
                               downsample=downsample)

    return pl.pallas_call(
        kernel,
        out_shape=jax.ShapeDtypeStruct((N, H, W, Cout), jnp.float32),
        grid=(N,),
        in_specs=in_specs,
        out_specs=pl.BlockSpec((1, H, W, Cout), lambda n: (n, 0, 0, 0)),
        scratch_shapes=[
            pltpu.VMEM((H + 2, Wp, Cin), jnp.float32),   # padded x
            pltpu.VMEM((H + 2, Wp, Cout), jnp.float32),  # padded h1
        ],
        compiler_params=pltpu.CompilerParams(
            dimension_semantics=("parallel",),
            vmem_limit_bytes=vmem_limit,
        ),
        cost_estimate=pl.CostEstimate(
            flops=flops, transcendentals=0, bytes_accessed=bytes_accessed),
    )(*args)


def block_forward(x_nchw, params, downsample=True):
    """NCHW-in / NCHW-out wrapper matching the PyTorch module layout."""
    # TODO(synk): keep the surrounding model NHWC end-to-end to drop these two
    #             whole-activation transpose passes.
    x = jnp.transpose(x_nchw, (0, 2, 3, 1))
    out = block_forward_nhwc(x, params, downsample=downsample)
    return jnp.transpose(out, (0, 3, 1, 2))


# ---------------------------------------------------------------------------
# Pure-JAX reference (for correctness check)
# ---------------------------------------------------------------------------
def block_forward_ref(x_nchw, params, downsample=True):
    x = jnp.transpose(x_nchw, (0, 2, 3, 1))
    dn = ("NHWC", "HWIO", "NHWC")

    def conv(a, w):
        return jax.lax.conv_general_dilated(a, w, (1, 1), "SAME",
                                            dimension_numbers=dn)

    s1, b1 = fold_bn(*params["bn1"])
    s2, b2 = fold_bn(*params["bn2"])

    h = jnp.maximum(conv(x, params["w1"]) * s1 + b1, 0.0)
    out = conv(h, params["w2"]) * s2 + b2
    if downsample:
        ss, bs = fold_bn(*params["bns"])
        res = conv(x, params["ws"][None, None]) * ss + bs
    else:
        res = x
    out = jnp.maximum(out + res, 0.0)
    return jnp.transpose(out, (0, 3, 1, 2))


# ---------------------------------------------------------------------------
if __name__ == "__main__":
    key = jax.random.PRNGKey(0)
    keys = jax.random.split(key, 16)

    # ---- test 1: downsample=True (Cin != Cout, 1x1-conv+BN shortcut) ----
    N, Cin, Cout, H, W = 2, 4, 8, 16, 16
    x = jax.random.normal(keys[0], (N, Cin, H, W), jnp.float32)
    params = {
        "w1": jax.random.normal(keys[1], (3, 3, Cin, Cout), jnp.float32) * 0.1,
        "w2": jax.random.normal(keys[2], (3, 3, Cout, Cout), jnp.float32) * 0.1,
        "ws": jax.random.normal(keys[3], (Cin, Cout), jnp.float32) * 0.1,
        "bn1": (jax.random.uniform(keys[4], (Cout,), minval=0.5, maxval=1.5),
                jax.random.normal(keys[5], (Cout,)) * 0.1,
                jax.random.normal(keys[6], (Cout,)) * 0.1,
                jax.random.uniform(keys[7], (Cout,), minval=0.5, maxval=1.5)),
        "bn2": (jax.random.uniform(keys[8], (Cout,), minval=0.5, maxval=1.5),
                jax.random.normal(keys[9], (Cout,)) * 0.1,
                jax.random.normal(keys[10], (Cout,)) * 0.1,
                jax.random.uniform(keys[11], (Cout,), minval=0.5, maxval=1.5)),
        "bns": (jax.random.uniform(keys[12], (Cout,), minval=0.5, maxval=1.5),
                jax.random.normal(keys[13], (Cout,)) * 0.1,
                jax.random.normal(keys[14], (Cout,)) * 0.1,
                jax.random.uniform(keys[15], (Cout,), minval=0.5, maxval=1.5)),
    }
    out = jax.block_until_ready(block_forward(x, params, downsample=True))
    ref = block_forward_ref(x, params, downsample=True)
    assert out.shape == (N, Cout, H, W)
    assert jnp.allclose(out, ref, rtol=1e-4, atol=2e-4), "mismatch (downsample)"

    # ---- test 2: downsample=False (identity shortcut, Cin == Cout) ----
    C2 = 8
    x2 = jax.random.normal(keys[0], (N, C2, H, W), jnp.float32)
    params2 = {
        "w1": jax.random.normal(keys[1], (3, 3, C2, C2), jnp.float32) * 0.1,
        "w2": jax.random.normal(keys[2], (3, 3, C2, C2), jnp.float32) * 0.1,
        "bn1": params["bn1"],
        "bn2": params["bn2"],
    }
    out2 = jax.block_until_ready(block_forward(x2, params2, downsample=False))
    ref2 = block_forward_ref(x2, params2, downsample=False)
    assert out2.shape == (N, C2, H, W)
    assert jnp.allclose(out2, ref2, rtol=1e-4, atol=2e-4), "mismatch (identity)"

    print("KERNEL_OK")
</pallas_src>

<mosaic_0001>
module attributes {stable_mosaic.version = 11 : i64} {
  func.func @_fused_block_kernel(%arg0: i32, %arg1: memref<1x16x16x4xf32, #tpu.memory_space<vmem>>, %arg2: memref<36x8xf32, #tpu.memory_space<vmem>>, %arg3: memref<1x8xf32, #tpu.memory_space<vmem>>, %arg4: memref<1x8xf32, #tpu.memory_space<vmem>>, %arg5: memref<72x8xf32, #tpu.memory_space<vmem>>, %arg6: memref<1x8xf32, #tpu.memory_space<vmem>>, %arg7: memref<1x8xf32, #tpu.memory_space<vmem>>, %arg8: memref<4x8xf32, #tpu.memory_space<vmem>>, %arg9: memref<1x8xf32, #tpu.memory_space<vmem>>, %arg10: memref<1x8xf32, #tpu.memory_space<vmem>>, %arg11: memref<1x16x16x8xf32, #tpu.memory_space<vmem>>, %arg12: memref<18x24x4xf32, #tpu.memory_space<vmem>>, %arg13: memref<18x24x8xf32, #tpu.memory_space<vmem>>) attributes {dimension_semantics = [#tpu.dimension_semantics<parallel>], iteration_bounds = array<i64: 2>, scalar_prefetch = 0 : i64, scratch_operands = 2 : i64, tpu.core_type = #tpu.core_type<tc>, window_params = [{transform_indices = @transform_0, window_bounds = array<i64: 1, 16, 16, 4>}, {pipeline_mode = #tpu.pipeline_mode<synchronous>, transform_indices = @transform_1, window_bounds = array<i64: 36, 8>}, {pipeline_mode = #tpu.pipeline_mode<synchronous>, transform_indices = @transform_2, window_bounds = array<i64: 1, 8>}, {pipeline_mode = #tpu.pipeline_mode<synchronous>, transform_indices = @transform_3, window_bounds = array<i64: 1, 8>}, {pipeline_mode = #tpu.pipeline_mode<synchronous>, transform_indices = @transform_4, window_bounds = array<i64: 72, 8>}, {pipeline_mode = #tpu.pipeline_mode<synchronous>, transform_indices = @transform_5, window_bounds = array<i64: 1, 8>}, {pipeline_mode = #tpu.pipeline_mode<synchronous>, transform_indices = @transform_6, window_bounds = array<i64: 1, 8>}, {pipeline_mode = #tpu.pipeline_mode<synchronous>, transform_indices = @transform_7, window_bounds = array<i64: 4, 8>}, {pipeline_mode = #tpu.pipeline_mode<synchronous>, transform_indices = @transform_8, window_bounds = array<i64: 1, 8>}, {pipeline_mode = #tpu.pipeline_mode<synchronous>, transform_indices = @transform_9, window_bounds = array<i64: 1, 8>}, {transform_indices = @transform_10, window_bounds = array<i64: 1, 16, 16, 8>}]} {
    %cst = arith.constant 0.000000e+00 : f32
    %0 = vector.broadcast %cst : f32 to vector<18x24x4xf32>
    %c0 = arith.constant 0 : index
    %c0_0 = arith.constant 0 : index
    %c0_1 = arith.constant 0 : index
    %1 = vector.load %arg12[%c0, %c0_0, %c0_1] : memref<18x24x4xf32, #tpu.memory_space<vmem>>, vector<18x24x4xf32>
    tpu.vector_store %arg12[%c0, %c0_0, %c0_1], %0 {strides = array<i32>} : memref<18x24x4xf32, #tpu.memory_space<vmem>>, vector<18x24x4xf32>,
    %c0_2 = arith.constant 0 : index
    %c0_3 = arith.constant 0 : index
    %c0_4 = arith.constant 0 : index
    %c0_5 = arith.constant 0 : index
    %2 = vector.load %arg1[%c0_2, %c0_3, %c0_4, %c0_5] : memref<1x16x16x4xf32, #tpu.memory_space<vmem>>, vector<1x16x16x4xf32>
    %3 = vector.shape_cast %2 : vector<1x16x16x4xf32> to vector<16x16x4xf32>
    %c1 = arith.constant 1 : index
    %c1_6 = arith.constant 1 : index
    %c0_7 = arith.constant 0 : index
    %4 = vector.load %arg12[%c1, %c1_6, %c0_7] : memref<18x24x4xf32, #tpu.memory_space<vmem>>, vector<16x16x4xf32>
    tpu.vector_store %arg12[%c1, %c1_6, %c0_7], %3 {strides = array<i32>} : memref<18x24x4xf32, #tpu.memory_space<vmem>>, vector<16x16x4xf32>,
    %c0_8 = arith.constant 0 : index
    %c0_9 = arith.constant 0 : index
    %c0_10 = arith.constant 0 : index
    %5 = vector.load %arg12[%c0_8, %c0_9, %c0_10] : memref<18x24x4xf32, #tpu.memory_space<vmem>>, vector<16x16x4xf32>
    %c0_11 = arith.constant 0 : index
    %c1_12 = arith.constant 1 : index
    %c0_13 = arith.constant 0 : index
    %6 = vector.load %arg12[%c0_11, %c1_12, %c0_13] : memref<18x24x4xf32, #tpu.memory_space<vmem>>, vector<16x16x4xf32>
    %c0_14 = arith.constant 0 : index
    %c2 = arith.constant 2 : index
    %c0_15 = arith.constant 0 : index
    %7 = vector.load %arg12[%c0_14, %c2, %c0_15] : memref<18x24x4xf32, #tpu.memory_space<vmem>>, vector<16x16x4xf32>
    %c1_16 = arith.constant 1 : index
    %c0_17 = arith.constant 0 : index
    %c0_18 = arith.constant 0 : index
    %8 = vector.load %arg12[%c1_16, %c0_17, %c0_18] : memref<18x24x4xf32, #tpu.memory_space<vmem>>, vector<16x16x4xf32>
    %c1_19 = arith.constant 1 : index
    %c1_20 = arith.constant 1 : index
    %c0_21 = arith.constant 0 : index
    %9 = vector.load %arg12[%c1_19, %c1_20, %c0_21] : memref<18x24x4xf32, #tpu.memory_space<vmem>>, vector<16x16x4xf32>
    %c1_22 = arith.constant 1 : index
    %c2_23 = arith.constant 2 : index
    %c0_24 = arith.constant 0 : index
    %10 = vector.load %arg12[%c1_22, %c2_23, %c0_24] : memref<18x24x4xf32, #tpu.memory_space<vmem>>, vector<16x16x4xf32>
    %c2_25 = arith.constant 2 : index
    %c0_26 = arith.constant 0 : index
    %c0_27 = arith.constant 0 : index
    %11 = vector.load %arg12[%c2_25, %c0_26, %c0_27] : memref<18x24x4xf32, #tpu.memory_space<vmem>>, vector<16x16x4xf32>
    %c2_28 = arith.constant 2 : index
    %c1_29 = arith.constant 1 : index
    %c0_30 = arith.constant 0 : index
    %12 = vector.load %arg12[%c2_28, %c1_29, %c0_30] : memref<18x24x4xf32, #tpu.memory_space<vmem>>, vector<16x16x4xf32>
    %c2_31 = arith.constant 2 : index
    %c2_32 = arith.constant 2 : index
    %c0_33 = arith.constant 0 : index
    %13 = vector.load %arg12[%c2_31, %c2_32, %c0_33] : memref<18x24x4xf32, #tpu.memory_space<vmem>>, vector<16x16x4xf32>
    %14 = tpu.concatenate %5, %6, %7, %8, %9, %10, %11, %12, %13 in 2 : vector<16x16x4xf32>, vector<16x16x4xf32>, vector<16x16x4xf32>, vector<16x16x4xf32>, vector<16x16x4xf32>, vector<16x16x4xf32>, vector<16x16x4xf32>, vector<16x16x4xf32>, vector<16x16x4xf32> -> vector<16x16x36xf32>
    %15 = vector.shape_cast %14 : vector<16x16x36xf32> to vector<256x36xf32>
    %c0_34 = arith.constant 0 : index
    %c0_35 = arith.constant 0 : index
    %16 = vector.load %arg2[%c0_34, %c0_35] : memref<36x8xf32, #tpu.memory_space<vmem>>, vector<36x8xf32>
    %cst_36 = arith.constant dense<0.000000e+00> : vector<256x8xf32>
    %17 = tpu.matmul %15, %16, %cst_36 {dimension_numbers = #tpu.dot_dimension_numbers<[1], [0], [0], [1], [0, 0, 1, 1], [], []>} : vector<256x36xf32>, vector<36x8xf32>, vector<256x8xf32> -> vector<256x8xf32>
    %c0_37 = arith.constant 0 : index
    %c0_38 = arith.constant 0 : index
    %18 = vector.load %arg3[%c0_37, %c0_38] : memref<1x8xf32, #tpu.memory_space<vmem>>, vector<1x8xf32>
    %19 = vector.broadcast %18 : vector<1x8xf32> to vector<256x8xf32>
    %20 = arith.mulf %17, %19 : vector<256x8xf32>
    %c0_39 = arith.constant 0 : index
    %c0_40 = arith.constant 0 : index
    %21 = vector.load %arg4[%c0_39, %c0_40] : memref<1x8xf32, #tpu.memory_space<vmem>>, vector<1x8xf32>
    %22 = vector.broadcast %21 : vector<1x8xf32> to vector<256x8xf32>
    %23 = arith.addf %20, %22 : vector<256x8xf32>
    %cst_41 = arith.constant 0.000000e+00 : f32
    %24 = vector.broadcast %cst_41 : f32 to vector<256x8xf32>
    %25 = arith.maximumf %23, %24 : vector<256x8xf32>
    %cst_42 = arith.constant 0.000000e+00 : f32
    %26 = vector.broadcast %cst_42 : f32 to vector<18x24x8xf32>
    %c0_43 = arith.constant 0 : index
    %c0_44 = arith.constant 0 : index
    %c0_45 = arith.constant 0 : index
    %27 = vector.load %arg13[%c0_43, %c0_44, %c0_45] : memref<18x24x8xf32, #tpu.memory_space<vmem>>, vector<18x24x8xf32>
    tpu.vector_store %arg13[%c0_43, %c0_44, %c0_45], %26 {strides = array<i32>} : memref<18x24x8xf32, #tpu.memory_space<vmem>>, vector<18x24x8xf32>,
    %28 = vector.shape_cast %25 : vector<256x8xf32> to vector<16x16x8xf32>
    %c1_46 = arith.constant 1 : index
    %c1_47 = arith.constant 1 : index
    %c0_48 = arith.constant 0 : index
    %29 = vector.load %arg13[%c1_46, %c1_47, %c0_48] : memref<18x24x8xf32, #tpu.memory_space<vmem>>, vector<16x16x8xf32>
    tpu.vector_store %arg13[%c1_46, %c1_47, %c0_48], %28 {strides = array<i32>} : memref<18x24x8xf32, #tpu.memory_space<vmem>>, vector<16x16x8xf32>,
    %c0_49 = arith.constant 0 : index
    %c0_50 = arith.constant 0 : index
    %c0_51 = arith.constant 0 : index
    %30 = vector.load %arg13[%c0_49, %c0_50, %c0_51] : memref<18x24x8xf32, #tpu.memory_space<vmem>>, vector<16x16x8xf32>
    %c0_52 = arith.constant 0 : index
    %c1_53 = arith.constant 1 : index
    %c0_54 = arith.constant 0 : index
    %31 = vector.load %arg13[%c0_52, %c1_53, %c0_54] : memref<18x24x8xf32, #tpu.memory_space<vmem>>, vector<16x16x8xf32>
    %c0_55 = arith.constant 0 : index
    %c2_56 = arith.constant 2 : index
    %c0_57 = arith.constant 0 : index
    %32 = vector.load %arg13[%c0_55, %c2_56, %c0_57] : memref<18x24x8xf32, #tpu.memory_space<vmem>>, vector<16x16x8xf32>
    %c1_58 = arith.constant 1 : index
    %c0_59 = arith.constant 0 : index
    %c0_60 = arith.constant 0 : index
    %33 = vector.load %arg13[%c1_58, %c0_59, %c0_60] : memref<18x24x8xf32, #tpu.memory_space<vmem>>, vector<16x16x8xf32>
    %c1_61 = arith.constant 1 : index
    %c1_62 = arith.constant 1 : index
    %c0_63 = arith.constant 0 : index
    %34 = vector.load %arg13[%c1_61, %c1_62, %c0_63] : memref<18x24x8xf32, #tpu.memory_space<vmem>>, vector<16x16x8xf32>
    %c1_64 = arith.constant 1 : index
    %c2_65 = arith.constant 2 : index
    %c0_66 = arith.constant 0 : index
    %35 = vector.load %arg13[%c1_64, %c2_65, %c0_66] : memref<18x24x8xf32, #tpu.memory_space<vmem>>, vector<16x16x8xf32>
    %c2_67 = arith.constant 2 : index
    %c0_68 = arith.constant 0 : index
    %c0_69 = arith.constant 0 : index
    %36 = vector.load %arg13[%c2_67, %c0_68, %c0_69] : memref<18x24x8xf32, #tpu.memory_space<vmem>>, vector<16x16x8xf32>
    %c2_70 = arith.constant 2 : index
    %c1_71 = arith.constant 1 : index
    %c0_72 = arith.constant 0 : index
    %37 = vector.load %arg13[%c2_70, %c1_71, %c0_72] : memref<18x24x8xf32, #tpu.memory_space<vmem>>, vector<16x16x8xf32>
    %c2_73 = arith.constant 2 : index
    %c2_74 = arith.constant 2 : index
    %c0_75 = arith.constant 0 : index
    %38 = vector.load %arg13[%c2_73, %c2_74, %c0_75] : memref<18x24x8xf32, #tpu.memory_space<vmem>>, vector<16x16x8xf32>
    %39 = tpu.concatenate %30, %31, %32, %33, %34, %35, %36, %37, %38 in 2 : vector<16x16x8xf32>, vector<16x16x8xf32>, vector<16x16x8xf32>, vector<16x16x8xf32>, vector<16x16x8xf32>, vector<16x16x8xf32>, vector<16x16x8xf32>, vector<16x16x8xf32>, vector<16x16x8xf32> -> vector<16x16x72xf32>
    %40 = vector.shape_cast %39 : vector<16x16x72xf32> to vector<256x72xf32>
    %c0_76 = arith.constant 0 : index
    %c0_77 = arith.constant 0 : index
    %41 = vector.load %arg5[%c0_76, %c0_77] : memref<72x8xf32, #tpu.memory_space<vmem>>, vector<72x8xf32>
    %cst_78 = arith.constant dense<0.000000e+00> : vector<256x8xf32>
    %42 = tpu.matmul %40, %41, %cst_78 {dimension_numbers = #tpu.dot_dimension_numbers<[1], [0], [0], [1], [0, 0, 1, 1], [], []>} : vector<256x72xf32>, vector<72x8xf32>, vector<256x8xf32> -> vector<256x8xf32>
    %c0_79 = arith.constant 0 : index
    %c0_80 = arith.constant 0 : index
    %43 = vector.load %arg6[%c0_79, %c0_80] : memref<1x8xf32, #tpu.memory_space<vmem>>, vector<1x8xf32>
    %44 = vector.broadcast %43 : vector<1x8xf32> to vector<256x8xf32>
    %45 = arith.mulf %42, %44 : vector<256x8xf32>
    %c0_81 = arith.constant 0 : index
    %c0_82 = arith.constant 0 : index
    %46 = vector.load %arg7[%c0_81, %c0_82] : memref<1x8xf32, #tpu.memory_space<vmem>>, vector<1x8xf32>
    %47 = vector.broadcast %46 : vector<1x8xf32> to vector<256x8xf32>
    %48 = arith.addf %45, %47 : vector<256x8xf32>
    %c0_83 = arith.constant 0 : index
    %c0_84 = arith.constant 0 : index
    %c0_85 = arith.constant 0 : index
    %c0_86 = arith.constant 0 : index
    %49 = vector.load %arg1[%c0_83, %c0_84, %c0_85, %c0_86] : memref<1x16x16x4xf32, #tpu.memory_space<vmem>>, vector<1x16x16x4xf32>
    %50 = vector.shape_cast %49 : vector<1x16x16x4xf32> to vector<16x16x4xf32>
    %51 = vector.shape_cast %50 : vector<16x16x4xf32> to vector<256x4xf32>
    %c0_87 = arith.constant 0 : index
    %c0_88 = arith.constant 0 : index
    %52 = vector.load %arg8[%c0_87, %c0_88] : memref<4x8xf32, #tpu.memory_space<vmem>>, vector<4x8xf32>
    %cst_89 = arith.constant dense<0.000000e+00> : vector<256x8xf32>
    %53 = tpu.matmul %51, %52, %cst_89 {dimension_numbers = #tpu.dot_dimension_numbers<[1], [0], [0], [1], [0, 0, 1, 1], [], []>} : vector<256x4xf32>, vector<4x8xf32>, vector<256x8xf32> -> vector<256x8xf32>
    %c0_90 = arith.constant 0 : index
    %c0_91 = arith.constant 0 : index
    %54 = vector.load %arg9[%c0_90, %c0_91] : memref<1x8xf32, #tpu.memory_space<vmem>>, vector<1x8xf32>
    %55 = vector.broadcast %54 : vector<1x8xf32> to vector<256x8xf32>
    %56 = arith.mulf %53, %55 : vector<256x8xf32>
    %c0_92 = arith.constant 0 : index
    %c0_93 = arith.constant 0 : index
    %57 = vector.load %arg10[%c0_92, %c0_93] : memref<1x8xf32, #tpu.memory_space<vmem>>, vector<1x8xf32>
    %58 = vector.broadcast %57 : vector<1x8xf32> to vector<256x8xf32>
    %59 = arith.addf %56, %58 : vector<256x8xf32>
    %60 = arith.addf %48, %59 : vector<256x8xf32>
    %cst_94 = arith.constant 0.000000e+00 : f32
    %61 = vector.broadcast %cst_94 : f32 to vector<256x8xf32>
    %62 = arith.maximumf %60, %61 : vector<256x8xf32>
    %63 = vector.shape_cast %62 : vector<256x8xf32> to vector<16x16x8xf32>
    %c0_95 = arith.constant 0 : index
    %c0_96 = arith.constant 0 : index
    %c0_97 = arith.constant 0 : index
    %c0_98 = arith.constant 0 : index
    %64 = vector.load %arg11[%c0_95, %c0_96, %c0_97, %c0_98] : memref<1x16x16x8xf32, #tpu.memory_space<vmem>>, vector<1x16x16x8xf32>
    %65 = vector.shape_cast %64 : vector<1x16x16x8xf32> to vector<16x16x8xf32>
    %66 = vector.shape_cast %63 : vector<16x16x8xf32> to vector<1x16x16x8xf32>
    tpu.vector_store %arg11[%c0_95, %c0_96, %c0_97, %c0_98], %66 {strides = array<i32>} : memref<1x16x16x8xf32, #tpu.memory_space<vmem>>, vector<1x16x16x8xf32>,
    return
  }
  func.func @transform_0(%arg0: i32) -> (i32, i32, i32, i32) {
    %c0_i32 = arith.constant 0 : i32
    %c0_i32_0 = arith.constant 0 : i32
    %c0_i32_1 = arith.constant 0 : i32
    %c0_i32_2 = arith.constant 0 : i32
    return %arg0, %c0_i32, %c0_i32_0, %c0_i32_1 : i32, i32, i32, i32
  }
  func.func @transform_1(%arg0: i32) -> (i32, i32) {
    %c0_i32 = arith.constant 0 : i32
    %c0_i32_0 = arith.constant 0 : i32
    %c0_i32_1 = arith.constant 0 : i32
    return %c0_i32, %c0_i32_0 : i32, i32
  }
  func.func @transform_2(%arg0: i32) -> (i32, i32) {
    %c0_i32 = arith.constant 0 : i32
    %c0_i32_0 = arith.constant 0 : i32
    %c0_i32_1 = arith.constant 0 : i32
    return %c0_i32, %c0_i32_0 : i32, i32
  }
  func.func @transform_3(%arg0: i32) -> (i32, i32) {
    %c0_i32 = arith.constant 0 : i32
    %c0_i32_0 = arith.constant 0 : i32
    %c0_i32_1 = arith.constant 0 : i32
    return %c0_i32, %c0_i32_0 : i32, i32
  }
  func.func @transform_4(%arg0: i32) -> (i32, i32) {
    %c0_i32 = arith.constant 0 : i32
    %c0_i32_0 = arith.constant 0 : i32
    %c0_i32_1 = arith.constant 0 : i32
    return %c0_i32, %c0_i32_0 : i32, i32
  }
  func.func @transform_5(%arg0: i32) -> (i32, i32) {
    %c0_i32 = arith.constant 0 : i32
    %c0_i32_0 = arith.constant 0 : i32
    %c0_i32_1 = arith.constant 0 : i32
    return %c0_i32, %c0_i32_0 : i32, i32
  }
  func.func @transform_6(%arg0: i32) -> (i32, i32) {
    %c0_i32 = arith.constant 0 : i32
    %c0_i32_0 = arith.constant 0 : i32
    %c0_i32_1 = arith.constant 0 : i32
    return %c0_i32, %c0_i32_0 : i32, i32
  }
  func.func @transform_7(%arg0: i32) -> (i32, i32) {
    %c0_i32 = arith.constant 0 : i32
    %c0_i32_0 = arith.constant 0 : i32
    %c0_i32_1 = arith.constant 0 : i32
    return %c0_i32, %c0_i32_0 : i32, i32
  }
  func.func @transform_8(%arg0: i32) -> (i32, i32) {
    %c0_i32 = arith.constant 0 : i32
    %c0_i32_0 = arith.constant 0 : i32
    %c0_i32_1 = arith.constant 0 : i32
    return %c0_i32, %c0_i32_0 : i32, i32
  }
  func.func @transform_9(%arg0: i32) -> (i32, i32) {
    %c0_i32 = arith.constant 0 : i32
    %c0_i32_0 = arith.constant 0 : i32
    %c0_i32_1 = arith.constant 0 : i32
    return %c0_i32, %c0_i32_0 : i32, i32
  }
  func.func @transform_10(%arg0: i32) -> (i32, i32, i32, i32) {
    %c0_i32 = arith.constant 0 : i32
    %c0_i32_0 = arith.constant 0 : i32
    %c0_i32_1 = arith.constant 0 : i32
    %c0_i32_2 = arith.constant 0 : i32
    return %arg0, %c0_i32, %c0_i32_0, %c0_i32_1 : i32, i32, i32, i32
  }
}

</mosaic_0001>

<bundles_post_ra>
// kernel: tpu_custom_call.1
= control target key start
LH: loop header
LB: loop body
LE: loop exit
PB: predicated region body
PF: predicated region fallthrough
CT: control target
= control target key end

     0   :  { %s5710_s13 = smov 0   ;;  %s9057_s0 = inlined_call_operand.vmem [shape: f32[2,16,16,4], index: 0, kind: input, shape index: {}]   ;;  %s9058_s1 = inlined_call_operand.vmem [shape: f32[36,8], index: 1, kind: input, shape index: {}]   ;;  %s9059_s2 = inlined_call_operand.vmem [shape: f32[1,8], index: 2, kind: input, shape index: {}]   ;;  %s9060_s3 = inlined_call_operand.vmem [shape: f32[1,8], index: 3, kind: input, shape index: {}]   ;;  %s9061_s4 = inlined_call_operand.vmem [shape: f32[72,8], index: 4, kind: input, shape index: {}]   ;;  %s9062_s5 = inlined_call_operand.vmem [shape: f32[1,8], index: 5, kind: input, shape index: {}]   ;;  %s9063_s6 = inlined_call_operand.vmem [shape: f32[1,8], index: 6, kind: input, shape index: {}]   ;;  %s9064_s7 = inlined_call_operand.vmem [shape: f32[4,8], index: 7, kind: input, shape index: {}]   ;;  %s9065_s8 = inlined_call_operand.vmem [shape: f32[1,8], index: 8, kind: input, shape index: {}]   ;;  %s9066_s9 = inlined_call_operand.vmem [shape: f32[1,8], index: 9, kind: input, shape index: {}]   ;;  %s9067_s10 = inlined_call_operand.vmem [shape: f32[2,16,16,8], index: 10, kind: output, shape index: {}]  }
   0x1 LB: > { %s5152_s14 = sadd.s32 4294967295, %s5640_s13   ;;  %p5156_p0 = scmp.ge.s32.totalorder %s5640_s13, 1  ;;  %s5640_s13 = sphi %s5710_s13, %s20_s13  }
   0x2   : > { %p312_p1 = scmp.lt.s32.totalorder %s5640_s13, 3 }
   0x4   : > { %p313_p2 = pnand %p5156_p0, %p312_p1 }
   0x6   : > { %316 = sbr.rel (%p313_p2) target bundleno = 1641 (0x669), region = 60 }
   0xb   : > { %vm360_vm0 = vcmask 31744   ;;  %p5720_p3 = scmp.lt.s32.totalorder %s5152_s14, 1  ;;  %v5642_v0 = vmov 0.0   ;;  %s5643_s20 = smov 4   ;;  %vm1825_vm1 = vcmask 64512   ;;  %vm2158_vm2 = vcmask 1043456  }
   0xc   : > { %361 = vst.msk [vmem:[#allocation2] sm:$0xff] %vm360_vm0, %v5642_v0  ;;  %362 = vst.msk [vmem:[#allocation2 + $0x8] sm:$0xff] %vm360_vm0, %v5642_v0  ;;  %s5644_s21 = smov 8   ;;  %s5645_s22 = smov 12   ;;  %vm1858_vm3 = vcmask 97280   ;;  %vm1891_vm4 = vcmask 130048  }
   0xd   : > { %363 = vst.msk [vmem:[#allocation2 + $0x10] sm:$0xff] %vm360_vm0, %v5642_v0  ;;  %364 = vst.msk [vmem:[#allocation2 + $0x18] sm:$0xff] %vm360_vm0, %v5642_v0  ;;  %s9614_s14 = smov (!%p5720_p3, %s5152_s14), 1  ;;  %s5646_s23 = smov 16   ;;  %vm1924_vm5 = vcmask 162816   ;;  %vm1957_vm6 = vcmask 195584  }
   0xe   : > { %365 = vst.msk [vmem:[#allocation2 + $0x20] sm:$0xff] %vm360_vm0, %v5642_v0  ;;  %366 = vst.msk [vmem:[#allocation2 + $0x28] sm:$0xff] %vm360_vm0, %v5642_v0  ;;  %s5267_s16 = sshll.u32 %s9614_s14, 8  ;;  %s5647_s24 = smov 20   ;;  %vm1990_vm7 = vcmask 228352   ;;  %vm2023_vm8 = vcmask 261120  }
   0xf   : > { %367 = vst.msk [vmem:[#allocation2 + $0x30] sm:$0xff] %vm360_vm0, %v5642_v0  ;;  %368 = vst.msk [vmem:[#allocation2 + $0x38] sm:$0xff] %vm360_vm0, %v5642_v0  ;;  %s5844_s19 = scalar_lea.vmem %s9057_s0, %s5267_s16  ;;  %s5648_s25 = smov 24   ;;  %vm2061_vm9 = vcmask 293888   ;;  %vm4025_vm10 = vcmask 326656   ;;  %vm4058_vm11 = vcmask 392192  }
  0x10   : > { %369 = vst.msk [vmem:[#allocation2 + $0x40] sm:$0xff] %vm360_vm0, %v5642_v0  ;;  %370 = vst.msk [vmem:[#allocation2 + $0x48] sm:$0xff] %vm360_vm0, %v5642_v0  ;;  %v415_v1 = vld [vmem:[%s5844_s19] sm:$0xff]  ;;  %v417_v2 = vld [vmem:[%s5844_s19 + $0x10] sm:$0xff]  ;;  %s5649_s26 = smov 28   ;;  %s5651_s27 = smov 40  }
  0x11   : > { %371 = vst.msk [vmem:[#allocation2 + $0x50] sm:$0xff] %vm360_vm0, %v5642_v0  ;;  %372 = vst.msk [vmem:[#allocation2 + $0x58] sm:$0xff] %vm360_vm0, %v5642_v0  ;;  %v416_v3 = vld [vmem:[%s5844_s19 + $0x8] sm:$0xff]  ;;  %v419_v4 = vld [vmem:[%s5844_s19 + $0x20] sm:$0xff]  ;;  %s5652_s30 = smov 48   ;;  %s5653_s18 = smov 56  }
  0x12   : > { %373 = vst.msk [vmem:[#allocation2 + $0x60] sm:$0xff] %vm360_vm0, %v5642_v0  ;;  %374 = vst.msk [vmem:[#allocation2 + $0x68] sm:$0xff] %vm360_vm0, %v5642_v0  ;;  %v418_v5 = vld [vmem:[%s5844_s19 + $0x18] sm:$0xff]  ;;  %v421_v6 = vld [vmem:[%s5844_s19 + $0x30] sm:$0xff]  ;;  %vm4091_vm12 = vcmask 457728   ;;  %vm4124_vm13 = vcmask 523264  }
  0x13   : > { %375 = vst.msk [vmem:[#allocation2 + $0x70] sm:$0xff] %vm360_vm0, %v5642_v0  ;;  %376 = vst.msk [vmem:[#allocation2 + $0x78] sm:$0xff] %vm360_vm0, %v5642_v0  ;;  %v512_v7 = vld [vmem:[#allocation2 + $0x1] sm:$0xff]  ;;  %v422_v11 = vld [vmem:[%s5844_s19 + $0x38] sm:$0xff]  ;;  %vm4166_vm14 = vcmask 588800  }
  0x14   : > { %377 = vst.msk [vmem:[#allocation2 + $0x80] sm:$0xff] %vm360_vm0, %v5642_v0  ;;  %378 = vst.msk [vmem:[#allocation2 + $0x88] sm:$0xff] %vm360_vm0, %v5642_v0  ;;  %v513_v8 = vld [vmem:[#allocation2 + $0x9] sm:$0xff]  ;;  %801 = vrot.lane.b32.xlu0 %v512_v7, %s5643_s20  ;;  %v423_v10 = vld [vmem:[%s5844_s19 + $0x40] sm:$0xff] }
  0x15   : > { %379 = vst.msk [vmem:[#allocation2 + $0x90] sm:$0xff] %vm360_vm0, %v5642_v0  ;;  %380 = vst.msk [vmem:[#allocation2 + $0x98] sm:$0xff] %vm360_vm0, %v5642_v0  ;;  %v420_v9 = vld [vmem:[%s5844_s19 + $0x28] sm:$0xff]  ;;  %v425_v12 = vld [vmem:[%s5844_s19 + $0x50] sm:$0xff] }
  0x16   : > { %381 = vst.msk [vmem:[#allocation2 + $0xa0] sm:$0xff] %vm360_vm0, %v5642_v0  ;;  %382 = vst.msk [vmem:[#allocation2 + $0xa8] sm:$0xff] %vm360_vm0, %v5642_v0  ;;  %v424_v13 = vld [vmem:[%s5844_s19 + $0x48] sm:$0xff]  ;;  %v427_v14 = vld [vmem:[%s5844_s19 + $0x60] sm:$0xff] }
  0x17   : > { %383 = vst.msk [vmem:[#allocation2 + $0xb0] sm:$0xff] %vm360_vm0, %v5642_v0  ;;  %384 = vst.msk [vmem:[#allocation2 + $0xb8] sm:$0xff] %vm360_vm0, %v5642_v0  ;;  %v426_v15 = vld [vmem:[%s5844_s19 + $0x58] sm:$0xff]  ;;  %v429_v16 = vld [vmem:[%s5844_s19 + $0x70] sm:$0xff] }
  0x18   : > { %385 = vst.msk [vmem:[#allocation2 + $0xc0] sm:$0xff] %vm360_vm0, %v5642_v0  ;;  %386 = vst.msk [vmem:[#allocation2 + $0xc8] sm:$0xff] %vm360_vm0, %v5642_v0  ;;  %v428_v17 = vld [vmem:[%s5844_s19 + $0x68] sm:$0xff]  ;;  %v431_v18 = vld [vmem:[%s5844_s19 + $0x80] sm:$0xff]  ;;  %803 = vrot.lane.b32.xlu0 %v513_v8, %s5643_s20 }
  0x19   : > { %387 = vst.msk [vmem:[#allocation2 + $0xd0] sm:$0xff] %vm360_vm0, %v5642_v0  ;;  %388 = vst.msk [vmem:[#allocation2 + $0xd8] sm:$0xff] %vm360_vm0, %v5642_v0  ;;  %v430_v19 = vld [vmem:[%s5844_s19 + $0x78] sm:$0xff]  ;;  %v433_v20 = vld [vmem:[%s5844_s19 + $0x90] sm:$0xff] }
  0x1a   : > { %389 = vst.msk [vmem:[#allocation2 + $0xe0] sm:$0xff] %vm360_vm0, %v5642_v0  ;;  %390 = vst.msk [vmem:[#allocation2 + $0xe8] sm:$0xff] %vm360_vm0, %v5642_v0  ;;  %v432_v21 = vld [vmem:[%s5844_s19 + $0x88] sm:$0xff]  ;;  %v435_v22 = vld [vmem:[%s5844_s19 + $0xa0] sm:$0xff] }
  0x1b   : > { %391 = vst.msk [vmem:[#allocation2 + $0xf0] sm:$0xff] %vm360_vm0, %v5642_v0  ;;  %392 = vst.msk [vmem:[#allocation2 + $0xf8] sm:$0xff] %vm360_vm0, %v5642_v0  ;;  %v434_v23 = vld [vmem:[%s5844_s19 + $0x98] sm:$0xff]  ;;  %v437_v24 = vld [vmem:[%s5844_s19 + $0xb0] sm:$0xff] }
  0x1c   : > { %393 = vst.msk [vmem:[#allocation2 + $0x100] sm:$0xff] %vm360_vm0, %v5642_v0  ;;  %394 = vst.msk [vmem:[#allocation2 + $0x108] sm:$0xff] %vm360_vm0, %v5642_v0  ;;  %v436_v28 = vld [vmem:[%s5844_s19 + $0xa8] sm:$0xff]  ;;  %v439_v29 = vld [vmem:[%s5844_s19 + $0xc0] sm:$0xff] }
  0x1d   : > { %395 = vst.msk [vmem:[#allocation2 + $0x110] sm:$0xff] %vm360_vm0, %v5642_v0  ;;  %396 = vst.msk [vmem:[#allocation2 + $0x118] sm:$0xff] %vm360_vm0, %v5642_v0  ;;  %v438_v33 = vld [vmem:[%s5844_s19 + $0xb8] sm:$0xff]  ;;  %v441_v34 = vld [vmem:[%s5844_s19 + $0xd0] sm:$0xff] }
  0x1e   : > { %397 = vst.msk [vmem:[#allocation2 + $0x120] sm:$0xff] %vm360_vm0, %v5642_v0  ;;  %398 = vst.msk [vmem:[#allocation2 + $0x128] sm:$0xff] %vm360_vm0, %v5642_v0  ;;  %v440_v35 = vld [vmem:[%s5844_s19 + $0xc8] sm:$0xff]  ;;  %v443_v36 = vld [vmem:[%s5844_s19 + $0xe0] sm:$0xff] }
  0x1f   : > { %399 = vst.msk [vmem:[#allocation2 + $0x130] sm:$0xff] %vm360_vm0, %v5642_v0  ;;  %400 = vst.msk [vmem:[#allocation2 + $0x138] sm:$0xff] %vm360_vm0, %v5642_v0  ;;  %v442_v37 = vld [vmem:[%s5844_s19 + $0xd8] sm:$0xff]  ;;  %v444_v39 = vld [vmem:[%s5844_s19 + $0xe8] sm:$0xff] }
  0x20   : > { %401 = vst.msk [vmem:[#allocation2 + $0x140] sm:$0xff] %vm360_vm0, %v5642_v0  ;;  %402 = vst.msk [vmem:[#allocation2 + $0x148] sm:$0xff] %vm360_vm0, %v5642_v0  ;;  %v445_v58 = vld [vmem:[%s5844_s19 + $0xf0] sm:$0xff]  ;;  %v446_v62 = vld [vmem:[%s5844_s19 + $0xf8] sm:$0xff] }
  0x21   : > { %403 = vst.msk [vmem:[#allocation2 + $0x150] sm:$0xff] %vm360_vm0, %v5642_v0  ;;  %404 = vst.msk [vmem:[#allocation2 + $0x158] sm:$0xff] %vm360_vm0, %v5642_v0 }
  0x22   : > { %405 = vst.msk [vmem:[#allocation2 + $0x160] sm:$0xff] %vm360_vm0, %v5642_v0  ;;  %406 = vst.msk [vmem:[#allocation2 + $0x168] sm:$0xff] %vm360_vm0, %v5642_v0 }
  0x23   : > { %407 = vst.msk [vmem:[#allocation2 + $0x170] sm:$0xff] %vm360_vm0, %v5642_v0  ;;  %408 = vst.msk [vmem:[#allocation2 + $0x178] sm:$0xff] %vm360_vm0, %v5642_v0 }
  0x24   : > { %409 = vst.msk [vmem:[#allocation2 + $0x180] sm:$0xff] %vm360_vm0, %v5642_v0  ;;  %410 = vst.msk [vmem:[#allocation2 + $0x188] sm:$0xff] %vm360_vm0, %v5642_v0 }
  0x25   : > { %411 = vst.msk [vmem:[#allocation2 + $0x190] sm:$0xff] %vm360_vm0, %v5642_v0  ;;  %412 = vst.msk [vmem:[#allocation2 + $0x198] sm:$0xff] %vm360_vm0, %v5642_v0 }
  0x26   : > { %413 = vst.msk [vmem:[#allocation2 + $0x1a0] sm:$0xff] %vm360_vm0, %v5642_v0  ;;  %414 = vst.msk [vmem:[#allocation2 + $0x1a8] sm:$0xff] %vm360_vm0, %v5642_v0 }
  0x27   : > { %448 = vst.msk [vmem:[#allocation2 + $0x19] sm:$0xff] %vm360_vm0, %v415_v1  ;;  %450 = vst.msk [vmem:[#allocation2 + $0x31] sm:$0xff] %vm360_vm0, %v417_v2 }
  0x28   : > { %449 = vst.msk [vmem:[#allocation2 + $0x21] sm:$0xff] %vm360_vm0, %v416_v3  ;;  %452 = vst.msk [vmem:[#allocation2 + $0x49] sm:$0xff] %vm360_vm0, %v419_v4  ;;  %v545_v3 = vld [vmem:[#allocation2 + $0xa] sm:$0xff] }
  0x29   : > { %451 = vst.msk [vmem:[#allocation2 + $0x39] sm:$0xff] %vm360_vm0, %v418_v5  ;;  %454 = vst.msk [vmem:[#allocation2 + $0x61] sm:$0xff] %vm360_vm0, %v421_v6 }
  0x2a   : > { %453 = vst.msk [vmem:[#allocation2 + $0x51] sm:$0xff] %vm360_vm0, %v420_v9  ;;  %456 = vst.msk [vmem:[#allocation2 + $0x79] sm:$0xff] %vm360_vm0, %v423_v10 }
  0x2b   : > { %455 = vst.msk [vmem:[#allocation2 + $0x69] sm:$0xff] %vm360_vm0, %v422_v11  ;;  %458 = vst.msk [vmem:[#allocation2 + $0x91] sm:$0xff] %vm360_vm0, %v425_v12 }
  0x2c   : > { %457 = vst.msk [vmem:[#allocation2 + $0x81] sm:$0xff] %vm360_vm0, %v424_v13  ;;  %460 = vst.msk [vmem:[#allocation2 + $0xa9] sm:$0xff] %vm360_vm0, %v427_v14 }
  0x2d   : > { %459 = vst.msk [vmem:[#allocation2 + $0x99] sm:$0xff] %vm360_vm0, %v426_v15  ;;  %462 = vst.msk [vmem:[#allocation2 + $0xc1] sm:$0xff] %vm360_vm0, %v429_v16 }
  0x2e   : > { %461 = vst.msk [vmem:[#allocation2 + $0xb1] sm:$0xff] %vm360_vm0, %v428_v17  ;;  %464 = vst.msk [vmem:[#allocation2 + $0xd9] sm:$0xff] %vm360_vm0, %v431_v18  ;;  %v5889_v25 = vld [vmem:[#allocation2 + $0x19] sm:$0xff]  ;;  %v5891_v26 = vld [vmem:[#allocation2 + $0x31] sm:$0xff] }
  0x2f   : > { %463 = vst.msk [vmem:[#allocation2 + $0xc9] sm:$0xff] %vm360_vm0, %v430_v19  ;;  %466 = vst.msk [vmem:[#allocation2 + $0xf1] sm:$0xff] %vm360_vm0, %v433_v20  ;;  %805 = vrot.lane.b32.xlu1 %v5889_v25, %s5643_s20  ;;  %v5898_v27 = vld [vmem:[#allocation2 + $0x21] sm:$0xff]  ;;  %809 = vrot.lane.b32.xlu0 %v5891_v26, %s5643_s20  ;;  %v5906_v30 = vld [vmem:[#allocation2 + $0x49] sm:$0xff] }
  0x30   : > { %465 = vst.msk [vmem:[#allocation2 + $0xe1] sm:$0xff] %vm360_vm0, %v432_v21  ;;  %468 = vst.msk [vmem:[#allocation2 + $0x109] sm:$0xff] %vm360_vm0, %v435_v22  ;;  %v5910_v31 = vld [vmem:[#allocation2 + $0x39] sm:$0xff]  ;;  %v5914_v32 = vld [vmem:[#allocation2 + $0x61] sm:$0xff] }
  0x31   : > { %467 = vst.msk [vmem:[#allocation2 + $0xf9] sm:$0xff] %vm360_vm0, %v434_v23  ;;  %470 = vst.msk [vmem:[#allocation2 + $0x121] sm:$0xff] %vm360_vm0, %v437_v24  ;;  %v5926_v38 = vld [vmem:[#allocation2 + $0x51] sm:$0xff]  ;;  %v5934_v40 = vld [vmem:[#allocation2 + $0x79] sm:$0xff] }
  0x32   : > { %469 = vst.msk [vmem:[#allocation2 + $0x111] sm:$0xff] %vm360_vm0, %v436_v28  ;;  %472 = vst.msk [vmem:[#allocation2 + $0x139] sm:$0xff] %vm360_vm0, %v439_v29  ;;  %v5938_v41 = vld [vmem:[#allocation2 + $0x69] sm:$0xff]  ;;  %v5942_v42 = vld [vmem:[#allocation2 + $0x91] sm:$0xff] }
  0x33   : > { %807 = vrot.lane.b32.xlu1 %v5898_v27, %s5643_s20  ;;  %813 = vrot.lane.b32.xlu0 %v5906_v30, %s5643_s20  ;;  %471 = vst.msk [vmem:[#allocation2 + $0x129] sm:$0xff] %vm360_vm0, %v438_v33  ;;  %474 = vst.msk [vmem:[#allocation2 + $0x151] sm:$0xff] %vm360_vm0, %v441_v34  ;;  %v5946_v43 = vld [vmem:[#allocation2 + $0x81] sm:$0xff]  ;;  %v5950_v44 = vld [vmem:[#allocation2 + $0xa9] sm:$0xff] }
  0x34   : > { %473 = vst.msk [vmem:[#allocation2 + $0x141] sm:$0xff] %vm360_vm0, %v440_v35  ;;  %476 = vst.msk [vmem:[#allocation2 + $0x169] sm:$0xff] %vm360_vm0, %v443_v36  ;;  %v5954_v45 = vld [vmem:[#allocation2 + $0x99] sm:$0xff]  ;;  %v5958_v46 = vld [vmem:[#allocation2 + $0xc1] sm:$0xff] }
  0x35   : > { %475 = vst.msk [vmem:[#allocation2 + $0x159] sm:$0xff] %vm360_vm0, %v442_v37  ;;  %477 = vst.msk [vmem:[#allocation2 + $0x171] sm:$0xff] %vm360_vm0, %v444_v39  ;;  %v5962_v47 = vld [vmem:[#allocation2 + $0xb1] sm:$0xff]  ;;  %v5966_v48 = vld [vmem:[#allocation2 + $0xd9] sm:$0xff] }
  0x36   : > { %v5970_v49 = vld [vmem:[#allocation2 + $0xc9] sm:$0xff]  ;;  %v5974_v50 = vld [vmem:[#allocation2 + $0xf1] sm:$0xff]  ;;  %2497 = vst.msk [vmem:[#allocation3] sm:$0xff] %vm1825_vm1, %v5642_v0  ;;  %2498 = vst.msk [vmem:[#allocation3 + $0x8] sm:$0xff] %vm1825_vm1, %v5642_v0 }
  0x37   : > { %811 = vrot.lane.b32.xlu1 %v5910_v31, %s5643_s20  ;;  %817 = vrot.lane.b32.xlu0 %v5914_v32, %s5643_s20  ;;  %v5978_v51 = vld [vmem:[#allocation2 + $0xe1] sm:$0xff]  ;;  %v5982_v52 = vld [vmem:[#allocation2 + $0x109] sm:$0xff]  ;;  %2499 = vst.msk [vmem:[#allocation3 + $0x10] sm:$0xff] %vm1825_vm1, %v5642_v0  ;;  %2500 = vst.msk [vmem:[#allocation3 + $0x18] sm:$0xff] %vm1825_vm1, %v5642_v0 }
  0x38   : > { %v5986_v53 = vld [vmem:[#allocation2 + $0xf9] sm:$0xff]  ;;  %v5990_v54 = vld [vmem:[#allocation2 + $0x121] sm:$0xff]  ;;  %2501 = vst.msk [vmem:[#allocation3 + $0x20] sm:$0xff] %vm1825_vm1, %v5642_v0  ;;  %2502 = vst.msk [vmem:[#allocation3 + $0x28] sm:$0xff] %vm1825_vm1, %v5642_v0 }
  0x39   : > { %v5994_v55 = vld [vmem:[#allocation2 + $0x111] sm:$0xff]  ;;  %v5998_v56 = vld [vmem:[#allocation2 + $0x139] sm:$0xff]  ;;  %2503 = vst.msk [vmem:[#allocation3 + $0x30] sm:$0xff] %vm1825_vm1, %v5642_v0  ;;  %2504 = vst.msk [vmem:[#allocation3 + $0x38] sm:$0xff] %vm1825_vm1, %v5642_v0 }
  0x3a   : > { %2505 = vst.msk [vmem:[#allocation3 + $0x40] sm:$0xff] %vm1825_vm1, %v5642_v0  ;;  %2506 = vst.msk [vmem:[#allocation3 + $0x48] sm:$0xff] %vm1825_vm1, %v5642_v0  ;;  %v6110_v57 = vld [vmem:[#allocation2 + $0x129] sm:$0xff]  ;;  %v6116_v59 = vld [vmem:[#allocation2 + $0x151] sm:$0xff] }
  0x3b   : > { %815 = vrot.lane.b32.xlu1 %v5926_v38, %s5643_s20  ;;  %821 = vrot.lane.b32.xlu0 %v5934_v40, %s5643_s20  ;;  %2507 = vst.msk [vmem:[#allocation3 + $0x50] sm:$0xff] %vm1825_vm1, %v5642_v0  ;;  %2508 = vst.msk [vmem:[#allocation3 + $0x58] sm:$0xff] %vm1825_vm1, %v5642_v0  ;;  %v6120_v60 = vld [vmem:[#allocation2 + $0x141] sm:$0xff]  ;;  %v6124_v61 = vld [vmem:[#allocation2 + $0x169] sm:$0xff] }
  0x3c   : > { %2509 = vst.msk [vmem:[#allocation3 + $0x60] sm:$0xff] %vm1825_vm1, %v5642_v0  ;;  %2510 = vst.msk [vmem:[#allocation3 + $0x68] sm:$0xff] %vm1825_vm1, %v5642_v0  ;;  %v6130_v63 = vld [vmem:[#allocation2 + $0x159] sm:$0xff]  ;;  %v6136_v1 = vld [vmem:[#allocation2 + $0x171] sm:$0xff] }
  0x3d   : > { %2511 = vst.msk [vmem:[#allocation3 + $0x70] sm:$0xff] %vm1825_vm1, %v5642_v0  ;;  %2512 = vst.msk [vmem:[#allocation3 + $0x78] sm:$0xff] %vm1825_vm1, %v5642_v0  ;;  %v6139_v2 = vld [vmem:[#allocation2 + $0x1a] sm:$0xff]  ;;  %v6145_v4 = vld [vmem:[#allocation2 + $0x32] sm:$0xff] }
  0x3e   : > { %2513 = vst.msk [vmem:[#allocation3 + $0x80] sm:$0xff] %vm1825_vm1, %v5642_v0  ;;  %2514 = vst.msk [vmem:[#allocation3 + $0x88] sm:$0xff] %vm1825_vm1, %v5642_v0  ;;  %v6148_v5 = vld [vmem:[#allocation2 + $0x22] sm:$0xff]  ;;  %v6152_v6 = vld [vmem:[#allocation2 + $0x4a] sm:$0xff] }
  0x3f   : > { %819 = vrot.lane.b32.xlu1 %v5938_v41, %s5643_s20  ;;  %825 = vrot.lane.b32.xlu0 %v5942_v42, %s5643_s20  ;;  %2515 = vst.msk [vmem:[#allocation3 + $0x90] sm:$0xff] %vm1825_vm1, %v5642_v0  ;;  %2516 = vst.msk [vmem:[#allocation3 + $0x98] sm:$0xff] %vm1825_vm1, %v5642_v0  ;;  %v6156_v7 = vld [vmem:[#allocation2 + $0x3a] sm:$0xff]  ;;  %v6160_v8 = vld [vmem:[#allocation2 + $0x62] sm:$0xff] }
  0x40   : > { %2517 = vst.msk [vmem:[#allocation3 + $0xa0] sm:$0xff] %vm1825_vm1, %v5642_v0  ;;  %2518 = vst.msk [vmem:[#allocation3 + $0xa8] sm:$0xff] %vm1825_vm1, %v5642_v0  ;;  %v6164_v9 = vld [vmem:[#allocation2 + $0x52] sm:$0xff]  ;;  %v6168_v10 = vld [vmem:[#allocation2 + $0x7a] sm:$0xff] }
  0x41   : > { %2519 = vst.msk [vmem:[#allocation3 + $0xb0] sm:$0xff] %vm1825_vm1, %v5642_v0  ;;  %2520 = vst.msk [vmem:[#allocation3 + $0xb8] sm:$0xff] %vm1825_vm1, %v5642_v0  ;;  %v6172_v11 = vld [vmem:[#allocation2 + $0x6a] sm:$0xff]  ;;  %v6176_v12 = vld [vmem:[#allocation2 + $0x92] sm:$0xff] }
  0x42   : > { %2521 = vst.msk [vmem:[#allocation3 + $0xc0] sm:$0xff] %vm1825_vm1, %v5642_v0  ;;  %2522 = vst.msk [vmem:[#allocation3 + $0xc8] sm:$0xff] %vm1825_vm1, %v5642_v0  ;;  %v6180_v13 = vld [vmem:[#allocation2 + $0x82] sm:$0xff]  ;;  %v6184_v14 = vld [vmem:[#allocation2 + $0xaa] sm:$0xff] }
  0x43   : > { %823 = vrot.lane.b32.xlu1 %v5946_v43, %s5643_s20  ;;  %829 = vrot.lane.b32.xlu0 %v5950_v44, %s5643_s20  ;;  %2523 = vst.msk [vmem:[#allocation3 + $0xd0] sm:$0xff] %vm1825_vm1, %v5642_v0  ;;  %2524 = vst.msk [vmem:[#allocation3 + $0xd8] sm:$0xff] %vm1825_vm1, %v5642_v0  ;;  %v6188_v15 = vld [vmem:[#allocation2 + $0x9a] sm:$0xff]  ;;  %v6192_v16 = vld [vmem:[#allocation2 + $0xc2] sm:$0xff] }
  0x44   : > { %2525 = vst.msk [vmem:[#allocation3 + $0xe0] sm:$0xff] %vm1825_vm1, %v5642_v0  ;;  %2526 = vst.msk [vmem:[#allocation3 + $0xe8] sm:$0xff] %vm1825_vm1, %v5642_v0  ;;  %v6196_v17 = vld [vmem:[#allocation2 + $0xb2] sm:$0xff]  ;;  %v6200_v18 = vld [vmem:[#allocation2 + $0xda] sm:$0xff] }
  0x45   : > { %2527 = vst.msk [vmem:[#allocation3 + $0xf0] sm:$0xff] %vm1825_vm1, %v5642_v0  ;;  %2528 = vst.msk [vmem:[#allocation3 + $0xf8] sm:$0xff] %vm1825_vm1, %v5642_v0  ;;  %v6204_v19 = vld [vmem:[#allocation2 + $0xca] sm:$0xff]  ;;  %v6208_v20 = vld [vmem:[#allocation2 + $0xf2] sm:$0xff] }
  0x46   : > { %2529 = vst.msk [vmem:[#allocation3 + $0x100] sm:$0xff] %vm1825_vm1, %v5642_v0  ;;  %2530 = vst.msk [vmem:[#allocation3 + $0x108] sm:$0xff] %vm1825_vm1, %v5642_v0  ;;  %v6212_v21 = vld [vmem:[#allocation2 + $0xe2] sm:$0xff]  ;;  %v6216_v22 = vld [vmem:[#allocation2 + $0x10a] sm:$0xff] }
  0x47   : > { %827 = vrot.lane.b32.xlu1 %v5954_v45, %s5643_s20  ;;  %833 = vrot.lane.b32.xlu0 %v5958_v46, %s5643_s20  ;;  %2531 = vst.msk [vmem:[#allocation3 + $0x110] sm:$0xff] %vm1825_vm1, %v5642_v0  ;;  %2532 = vst.msk [vmem:[#allocation3 + $0x118] sm:$0xff] %vm1825_vm1, %v5642_v0  ;;  %v6220_v23 = vld [vmem:[#allocation2 + $0xfa] sm:$0xff]  ;;  %v6224_v24 = vld [vmem:[#allocation2 + $0x122] sm:$0xff] }
  0x48   : > { %2533 = vst.msk [vmem:[#allocation3 + $0x120] sm:$0xff] %vm1825_vm1, %v5642_v0  ;;  %2534 = vst.msk [vmem:[#allocation3 + $0x128] sm:$0xff] %vm1825_vm1, %v5642_v0  ;;  %v6228_v28 = vld [vmem:[#allocation2 + $0x112] sm:$0xff]  ;;  %v6232_v29 = vld [vmem:[#allocation2 + $0x13a] sm:$0xff] }
  0x49   : > { %2535 = vst.msk [vmem:[#allocation3 + $0x130] sm:$0xff] %vm1825_vm1, %v5642_v0  ;;  %2536 = vst.msk [vmem:[#allocation3 + $0x138] sm:$0xff] %vm1825_vm1, %v5642_v0  ;;  %v6238_v34 = vld [vmem:[#allocation2 + $0x12a] sm:$0xff]  ;;  %v6242_v35 = vld [vmem:[#allocation2 + $0x152] sm:$0xff] }
  0x4a   : > { %2537 = vst.msk [vmem:[#allocation3 + $0x140] sm:$0xff] %vm1825_vm1, %v5642_v0  ;;  %2538 = vst.msk [vmem:[#allocation3 + $0x148] sm:$0xff] %vm1825_vm1, %v5642_v0  ;;  %v6248_v37 = vld [vmem:[#allocation2 + $0x142] sm:$0xff] }
  0x4b   : > { %831 = vrot.lane.b32.xlu1 %v5962_v47, %s5643_s20  ;;  %837 = vrot.lane.b32.xlu0 %v5966_v48, %s5643_s20  ;;  %2539 = vst.msk [vmem:[#allocation3 + $0x150] sm:$0xff] %vm1825_vm1, %v5642_v0  ;;  %2540 = vst.msk [vmem:[#allocation3 + $0x158] sm:$0xff] %vm1825_vm1, %v5642_v0 }
  0x4c   : > { %2541 = vst.msk [vmem:[#allocation3 + $0x160] sm:$0xff] %vm1825_vm1, %v5642_v0  ;;  %2542 = vst.msk [vmem:[#allocation3 + $0x168] sm:$0xff] %vm1825_vm1, %v5642_v0 }
  0x4d   : > { %2543 = vst.msk [vmem:[#allocation3 + $0x170] sm:$0xff] %vm1825_vm1, %v5642_v0  ;;  %2544 = vst.msk [vmem:[#allocation3 + $0x178] sm:$0xff] %vm1825_vm1, %v5642_v0 }
  0x4e   : > { %2545 = vst.msk [vmem:[#allocation3 + $0x180] sm:$0xff] %vm1825_vm1, %v5642_v0  ;;  %2546 = vst.msk [vmem:[#allocation3 + $0x188] sm:$0xff] %vm1825_vm1, %v5642_v0 }
  0x4f   : > { %835 = vrot.lane.b32.xlu1 %v5970_v49, %s5643_s20  ;;  %841 = vrot.lane.b32.xlu0 %v5974_v50, %s5643_s20  ;;  %2547 = vst.msk [vmem:[#allocation3 + $0x190] sm:$0xff] %vm1825_vm1, %v5642_v0  ;;  %2548 = vst.msk [vmem:[#allocation3 + $0x198] sm:$0xff] %vm1825_vm1, %v5642_v0 }
  0x50   : > { %2549 = vst.msk [vmem:[#allocation3 + $0x1a0] sm:$0xff] %vm1825_vm1, %v5642_v0  ;;  %2550 = vst.msk [vmem:[#allocation3 + $0x1a8] sm:$0xff] %vm1825_vm1, %v5642_v0  ;;  %v544_v0 = vld [vmem:[#allocation2 + $0x2] sm:$0xff] }
  0x51   : > { %478 = vst.msk [vmem:[#allocation2 + $0x181] sm:$0xff] %vm360_vm0, %v445_v58  ;;  %479 = vst.msk [vmem:[#allocation2 + $0x189] sm:$0xff] %vm360_vm0, %v446_v62  ;;  %v6254_v58 = vld [vmem:[#allocation2 + $0x16a] sm:$0xff] }
  0x52   : > { %9101 = vst [vmem:[#allocation6_spill] sm:$0xff] %v6248_v37  ;;  %9103 = vst [vmem:[#allocation8_spill] sm:$0xff] %v6254_v58 }
  0x53   : > { %839 = vrot.lane.b32.xlu1 %v5978_v51, %s5643_s20  ;;  %845 = vrot.lane.b32.xlu0 %v5982_v52, %s5643_s20 }
  0x57   : > { %843 = vrot.lane.b32.xlu1 %v5986_v53, %s5643_s20  ;;  %849 = vrot.lane.b32.xlu0 %v5990_v54, %s5643_s20 }
  0x5b   : > { %847 = vrot.lane.b32.xlu1 %v5994_v55, %s5643_s20  ;;  %853 = vrot.lane.b32.xlu0 %v5998_v56, %s5643_s20 }
  0x5f   : > { %851 = vrot.lane.b32.xlu1 %v6110_v57, %s5643_s20  ;;  %857 = vrot.lane.b32.xlu0 %v6116_v59, %s5643_s20 }
  0x63   : > { %855 = vrot.lane.b32.xlu1 %v6120_v60, %s5643_s20  ;;  %861 = vrot.lane.b32.xlu0 %v6124_v61, %s5643_s20 }
  0x67   : > { %859 = vrot.lane.b32.xlu1 %v6130_v63, %s5643_s20  ;;  %929 = vrot.lane.b32.xlu0 %v544_v0, %s5644_s21  ;;  %v6260_v0 = vld [vmem:[#allocation2 + $0x15a] sm:$0xff] }
  0x68   : > { %9105 = vst [vmem:[#allocation10_spill] sm:$0xff] %v6260_v0 }
  0x6b   : > { %863 = vrot.lane.b32.xlu1 %v6136_v1, %s5643_s20  ;;  %933 = vrot.lane.b32.xlu0 %v6139_v2, %s5644_s21  ;;  %s5654_s20 = smov 64  }
  0x6f   : > { %931 = vrot.lane.b32.xlu1 %v545_v3, %s5644_s21  ;;  %937 = vrot.lane.b32.xlu0 %v6145_v4, %s5644_s21 }
  0x73   : > { %935 = vrot.lane.b32.xlu1 %v6148_v5, %s5644_s21  ;;  %941 = vrot.lane.b32.xlu0 %v6152_v6, %s5644_s21 }
  0x77   : > { %939 = vrot.lane.b32.xlu1 %v6156_v7, %s5644_s21  ;;  %945 = vrot.lane.b32.xlu0 %v6160_v8, %s5644_s21 }
  0x7b   : > { %943 = vrot.lane.b32.xlu1 %v6164_v9, %s5644_s21  ;;  %949 = vrot.lane.b32.xlu0 %v6168_v10, %s5644_s21 }
  0x7f   : > { %947 = vrot.lane.b32.xlu1 %v6172_v11, %s5644_s21  ;;  %953 = vrot.lane.b32.xlu0 %v6176_v12, %s5644_s21 }
  0x83   : > { %951 = vrot.lane.b32.xlu1 %v6180_v13, %s5644_s21  ;;  %957 = vrot.lane.b32.xlu0 %v6184_v14, %s5644_s21 }
  0x86   : > { %v6234_v33 = vpop.permute.xlu0 %801 }
  0x87   : > { %955 = vrot.lane.b32.xlu1 %v6188_v15, %s5644_s21  ;;  %961 = vrot.lane.b32.xlu0 %v6192_v16, %s5644_s21  ;;  %9099 = vst [vmem:[#allocation4_spill] sm:$0xff] %v6234_v33  ;;  %v6270_v33 = vld [vmem:[#allocation2 + $0x172] sm:$0xff] }
  0x88   : > { %9108 = vst [vmem:[#allocation13_spill] sm:$0xff] %v6270_v33 }
  0x8a   : > { %v6244_v36 = vpop.permute.xlu0 %803 }
  0x8b   : > { %959 = vrot.lane.b32.xlu1 %v6196_v17, %s5644_s21  ;;  %965 = vrot.lane.b32.xlu0 %v6200_v18, %s5644_s21  ;;  %9100 = vst [vmem:[#allocation5_spill] sm:$0xff] %v6244_v36 }
  0x8f   : > { %963 = vrot.lane.b32.xlu1 %v6204_v19, %s5644_s21  ;;  %969 = vrot.lane.b32.xlu0 %v6208_v20, %s5644_s21 }
  0x93   : > { %967 = vrot.lane.b32.xlu1 %v6212_v21, %s5644_s21  ;;  %973 = vrot.lane.b32.xlu0 %v6216_v22, %s5644_s21 }
  0x97   : > { %971 = vrot.lane.b32.xlu1 %v6220_v23, %s5644_s21  ;;  %977 = vrot.lane.b32.xlu0 %v6224_v24, %s5644_s21 }
  0x9b   : > { %975 = vrot.lane.b32.xlu1 %v6228_v28, %s5644_s21  ;;  %981 = vrot.lane.b32.xlu0 %v6232_v29, %s5644_s21 }
  0x9f   : > { %979 = vrot.lane.b32.xlu1 %v6238_v34, %s5644_s21  ;;  %985 = vrot.lane.b32.xlu0 %v6242_v35, %s5644_s21 }
  0xa1   : > { %v6252_v39 = vpop.permute.xlu1 %805  ;;  %v6256_v62 = vpop.permute.xlu0 %809 }
  0xa2   : > { %9102 = vst [vmem:[#allocation7_spill] sm:$0xff] %v6252_v39  ;;  %9104 = vst [vmem:[#allocation9_spill] sm:$0xff] %v6256_v62  ;;  %v482_v39 = vld [vmem:[#allocation2 + $0x18] sm:$0xff] }
  0xa3   : > { %983 = vrot.lane.b32.xlu1 %v6248_v37, %s5644_s21  ;;  %989 = vrot.lane.b32.xlu0 %v6254_v58, %s5644_s21  ;;  %v6279_v58 = vld [vmem:[#allocation2 + $0x30] sm:$0xff] }
  0xa4   : > { %9111 = vst [vmem:[#allocation16_spill] sm:$0xff] %v6279_v58 }
  0xa5   : > { %v6264_v3 = vpop.permute.xlu1 %807  ;;  %v6266_v36 = vpop.permute.xlu0 %813 }
  0xa6   : > { %9106 = vst [vmem:[#allocation11_spill] sm:$0xff] %v6264_v3  ;;  %9107 = vst [vmem:[#allocation12_spill] sm:$0xff] %v6266_v36  ;;  %v483_v3 = vld [vmem:[#allocation2 + $0x20] sm:$0xff] }
  0xa7   : > { %987 = vrot.lane.b32.xlu1 %v6260_v0, %s5644_s21  ;;  %1057 = vrot.lane.b32.xlu0 %v482_v39, %s5645_s22  ;;  %v6288_v39 = vld [vmem:[#allocation2 + $0x48] sm:$0xff] }
  0xa8   : > { %9114 = vst [vmem:[#allocation19_spill] sm:$0xff] %v6288_v39 }
  0xa9   : > { %v6273_v62 = vpop.permute.xlu1 %811  ;;  %v6275_v37 = vpop.permute.xlu0 %817 }
  0xaa   : > { %9109 = vst [vmem:[#allocation14_spill] sm:$0xff] %v6273_v62  ;;  %9110 = vst [vmem:[#allocation15_spill] sm:$0xff] %v6275_v37  ;;  %v6294_v62 = vld [vmem:[#allocation2 + $0x38] sm:$0xff] }
  0xab   : > { %991 = vrot.lane.b32.xlu1 %v6270_v33, %s5644_s21  ;;  %1061 = vrot.lane.b32.xlu0 %v6279_v58, %s5645_s22  ;;  %9116 = vst [vmem:[#allocation21_spill] sm:$0xff] %v6294_v62 }
  0xad   : > { %v6283_v36 = vpop.permute.xlu1 %815  ;;  %v6285_v0 = vpop.permute.xlu0 %821 }
  0xae   : > { %9112 = vst [vmem:[#allocation17_spill] sm:$0xff] %v6283_v36  ;;  %9113 = vst [vmem:[#allocation18_spill] sm:$0xff] %v6285_v0  ;;  %v6300_v36 = vld [vmem:[#allocation2 + $0x60] sm:$0xff]  ;;  %v6306_v0 = vld [vmem:[#allocation2 + $0x50] sm:$0xff] }
  0xaf   : > { %1059 = vrot.lane.b32.xlu1 %v483_v3, %s5645_s22  ;;  %1065 = vrot.lane.b32.xlu0 %v6288_v39, %s5645_s22  ;;  %9118 = vst [vmem:[#allocation23_spill] sm:$0xff] %v6300_v36  ;;  %9120 = vst [vmem:[#allocation25_spill] sm:$0xff] %v6306_v0 }
  0xb1   : > { %v6292_v37 = vpop.permute.xlu1 %819  ;;  %v6296_v33 = vpop.permute.xlu0 %825 }
  0xb2   : > { %9115 = vst [vmem:[#allocation20_spill] sm:$0xff] %v6292_v37  ;;  %9117 = vst [vmem:[#allocation22_spill] sm:$0xff] %v6296_v33  ;;  %v6312_v37 = vld [vmem:[#allocation2 + $0x78] sm:$0xff] }
  0xb3   : > { %1063 = vrot.lane.b32.xlu1 %v6294_v62, %s5645_s22  ;;  %1069 = vrot.lane.b32.xlu0 %v6300_v36, %s5645_s22  ;;  %9122 = vst [vmem:[#allocation27_spill] sm:$0xff] %v6312_v37  ;;  %v6318_v62 = vld [vmem:[#allocation2 + $0x68] sm:$0xff] }
  0xb4   : > { %9124 = vst [vmem:[#allocation29_spill] sm:$0xff] %v6318_v62 }
  0xb5   : > { %v6304_v3 = vpop.permute.xlu1 %823  ;;  %v6308_v58 = vpop.permute.xlu0 %829 }
  0xb6   : > { %9119 = vst [vmem:[#allocation24_spill] sm:$0xff] %v6304_v3  ;;  %9121 = vst [vmem:[#allocation26_spill] sm:$0xff] %v6308_v58  ;;  %v6324_v3 = vld [vmem:[#allocation2 + $0x90] sm:$0xff] }
  0xb7   : > { %1067 = vrot.lane.b32.xlu1 %v6306_v0, %s5645_s22  ;;  %1073 = vrot.lane.b32.xlu0 %v6312_v37, %s5645_s22  ;;  %9126 = vst [vmem:[#allocation31_spill] sm:$0xff] %v6324_v3  ;;  %v6330_v0 = vld [vmem:[#allocation2 + $0x80] sm:$0xff] }
  0xb8   : > { %9128 = vst [vmem:[#allocation33_spill] sm:$0xff] %v6330_v0 }
  0xb9   : > { %v6316_v33 = vpop.permute.xlu1 %827  ;;  %v6320_v39 = vpop.permute.xlu0 %833 }
  0xba   : > { %9123 = vst [vmem:[#allocation28_spill] sm:$0xff] %v6316_v33  ;;  %9125 = vst [vmem:[#allocation30_spill] sm:$0xff] %v6320_v39  ;;  %v6336_v33 = vld [vmem:[#allocation2 + $0xa8] sm:$0xff] }
  0xbb   : > { %1071 = vrot.lane.b32.xlu1 %v6318_v62, %s5645_s22  ;;  %1077 = vrot.lane.b32.xlu0 %v6324_v3, %s5645_s22  ;;  %9130 = vst [vmem:[#allocation35_spill] sm:$0xff] %v6336_v33  ;;  %v6342_v62 = vld [vmem:[#allocation2 + $0x98] sm:$0xff] }
  0xbc   : > { %9132 = vst [vmem:[#allocation37_spill] sm:$0xff] %v6342_v62 }
  0xbd   : > { %v6328_v58 = vpop.permute.xlu1 %831  ;;  %v6332_v36 = vpop.permute.xlu0 %837 }
  0xbe   : > { %9127 = vst [vmem:[#allocation32_spill] sm:$0xff] %v6328_v58  ;;  %9129 = vst [vmem:[#allocation34_spill] sm:$0xff] %v6332_v36  ;;  %v6348_v58 = vld [vmem:[#allocation2 + $0xc0] sm:$0xff] }
  0xbf   : > { %1075 = vrot.lane.b32.xlu1 %v6330_v0, %s5645_s22  ;;  %1081 = vrot.lane.b32.xlu0 %v6336_v33, %s5645_s22  ;;  %9134 = vst [vmem:[#allocation39_spill] sm:$0xff] %v6348_v58  ;;  %v6354_v0 = vld [vmem:[#allocation2 + $0xb0] sm:$0xff] }
  0xc0   : > { %9136 = vst [vmem:[#allocation41_spill] sm:$0xff] %v6354_v0 }
  0xc1   : > { %v6340_v39 = vpop.permute.xlu1 %835  ;;  %v6344_v37 = vpop.permute.xlu0 %841 }
  0xc2   : > { %9131 = vst [vmem:[#allocation36_spill] sm:$0xff] %v6340_v39  ;;  %9133 = vst [vmem:[#allocation38_spill] sm:$0xff] %v6344_v37  ;;  %v6360_v39 = vld [vmem:[#allocation2 + $0xd8] sm:$0xff] }
  0xc3   : > { %1079 = vrot.lane.b32.xlu1 %v6342_v62, %s5645_s22  ;;  %1085 = vrot.lane.b32.xlu0 %v6348_v58, %s5645_s22  ;;  %9138 = vst [vmem:[#allocation43_spill] sm:$0xff] %v6360_v39  ;;  %v6366_v62 = vld [vmem:[#allocation2 + $0xc8] sm:$0xff] }
  0xc4   : > { %9140 = vst [vmem:[#allocation45_spill] sm:$0xff] %v6366_v62 }
  0xc5   : > { %v6352_v36 = vpop.permute.xlu1 %839  ;;  %v6356_v3 = vpop.permute.xlu0 %845 }
  0xc6   : > { %9135 = vst [vmem:[#allocation40_spill] sm:$0xff] %v6352_v36  ;;  %9137 = vst [vmem:[#allocation42_spill] sm:$0xff] %v6356_v3  ;;  %v6372_v36 = vld [vmem:[#allocation2 + $0xf0] sm:$0xff] }
  0xc7   : > { %1083 = vrot.lane.b32.xlu1 %v6354_v0, %s5645_s22  ;;  %1089 = vrot.lane.b32.xlu0 %v6360_v39, %s5645_s22  ;;  %9142 = vst [vmem:[#allocation47_spill] sm:$0xff] %v6372_v36  ;;  %v6378_v0 = vld [vmem:[#allocation2 + $0xe0] sm:$0xff] }
  0xc8   : > { %9144 = vst [vmem:[#allocation49_spill] sm:$0xff] %v6378_v0 }
  0xc9   : > { %v6364_v37 = vpop.permute.xlu1 %843  ;;  %v6368_v33 = vpop.permute.xlu0 %849 }
  0xca   : > { %9139 = vst [vmem:[#allocation44_spill] sm:$0xff] %v6364_v37  ;;  %9141 = vst [vmem:[#allocation46_spill] sm:$0xff] %v6368_v33  ;;  %v6384_v37 = vld [vmem:[#allocation2 + $0x108] sm:$0xff] }
  0xcb   : > { %1087 = vrot.lane.b32.xlu1 %v6366_v62, %s5645_s22  ;;  %1093 = vrot.lane.b32.xlu0 %v6372_v36, %s5645_s22  ;;  %9146 = vst [vmem:[#allocation51_spill] sm:$0xff] %v6384_v37  ;;  %v6390_v62 = vld [vmem:[#allocation2 + $0xf8] sm:$0xff] }
  0xcc   : > { %9148 = vst [vmem:[#allocation53_spill] sm:$0xff] %v6390_v62 }
  0xcd   : > { %v6376_v3 = vpop.permute.xlu1 %847  ;;  %v6380_v58 = vpop.permute.xlu0 %853 }
  0xce   : > { %9143 = vst [vmem:[#allocation48_spill] sm:$0xff] %v6376_v3  ;;  %9145 = vst [vmem:[#allocation50_spill] sm:$0xff] %v6380_v58  ;;  %v6396_v3 = vld [vmem:[#allocation2 + $0x120] sm:$0xff] }
  0xcf   : > { %1091 = vrot.lane.b32.xlu1 %v6378_v0, %s5645_s22  ;;  %1097 = vrot.lane.b32.xlu0 %v6384_v37, %s5645_s22  ;;  %9150 = vst [vmem:[#allocation55_spill] sm:$0xff] %v6396_v3  ;;  %v6402_v0 = vld [vmem:[#allocation2 + $0x110] sm:$0xff] }
  0xd0   : > { %9152 = vst [vmem:[#allocation57_spill] sm:$0xff] %v6402_v0 }
  0xd1   : > { %v6388_v33 = vpop.permute.xlu1 %851  ;;  %v6392_v39 = vpop.permute.xlu0 %857 }
  0xd2   : > { %9147 = vst [vmem:[#allocation52_spill] sm:$0xff] %v6388_v33  ;;  %9149 = vst [vmem:[#allocation54_spill] sm:$0xff] %v6392_v39  ;;  %v6408_v33 = vld [vmem:[#allocation2 + $0x138] sm:$0xff] }
  0xd3   : > { %1095 = vrot.lane.b32.xlu1 %v6390_v62, %s5645_s22  ;;  %1101 = vrot.lane.b32.xlu0 %v6396_v3, %s5645_s22  ;;  %9154 = vst [vmem:[#allocation59_spill] sm:$0xff] %v6408_v33  ;;  %v6414_v62 = vld [vmem:[#allocation2 + $0x128] sm:$0xff] }
  0xd4   : > { %9156 = vst [vmem:[#allocation61_spill] sm:$0xff] %v6414_v62 }
  0xd5   : > { %v6400_v58 = vpop.permute.xlu1 %855  ;;  %v6404_v36 = vpop.permute.xlu0 %861 }
  0xd6   : > { %9151 = vst [vmem:[#allocation56_spill] sm:$0xff] %v6400_v58  ;;  %9153 = vst [vmem:[#allocation58_spill] sm:$0xff] %v6404_v36  ;;  %v6420_v58 = vld [vmem:[#allocation2 + $0x150] sm:$0xff] }
  0xd7   : > { %1099 = vrot.lane.b32.xlu1 %v6402_v0, %s5645_s22  ;;  %1105 = vrot.lane.b32.xlu0 %v6408_v33, %s5645_s22  ;;  %9158 = vst [vmem:[#allocation63_spill] sm:$0xff] %v6420_v58  ;;  %v6426_v0 = vld [vmem:[#allocation2 + $0x140] sm:$0xff] }
  0xd8   : > { %9160 = vst [vmem:[#allocation65_spill] sm:$0xff] %v6426_v0  ;;  %v6440_v33 = vld [vmem:[#allocation2 + $0x180] sm:$0xff] }
  0xd9   : > { %v6412_v39 = vpop.permute.xlu1 %859  ;;  %v6416_v37 = vpop.permute.xlu0 %929 }
  0xda   : > { %9155 = vst [vmem:[#allocation60_spill] sm:$0xff] %v6412_v39  ;;  %9157 = vst [vmem:[#allocation62_spill] sm:$0xff] %v6416_v37  ;;  %v6432_v39 = vld [vmem:[#allocation2 + $0x168] sm:$0xff] }
  0xdb   : > { %1103 = vrot.lane.b32.xlu1 %v6414_v62, %s5645_s22  ;;  %1109 = vrot.lane.b32.xlu0 %v6420_v58, %s5645_s22  ;;  %v6438_v62 = vld [vmem:[#allocation2 + $0x158] sm:$0xff] }
  0xdc   : > { %9163 = vst [vmem:[#allocation68_spill] sm:$0xff] %v6438_v62 }
  0xdd   : > { %v6424_v36 = vpop.permute.xlu1 %863  ;;  %v6428_v3 = vpop.permute.xlu0 %933 }
  0xde   : > { %9159 = vst [vmem:[#allocation64_spill] sm:$0xff] %v6424_v36  ;;  %9161 = vst [vmem:[#allocation66_spill] sm:$0xff] %v6428_v3  ;;  %v6450_v3 = vld [vmem:[#allocation2 + $0x170] sm:$0xff] }
  0xdf   : > { %1107 = vrot.lane.b32.xlu1 %v6426_v0, %s5645_s22  ;;  %1113 = vrot.lane.b32.xlu0 %v6432_v39, %s5645_s22 }
  0xe1   : > { %v6436_v37 = vpop.permute.xlu1 %931  ;;  %v6442_v58 = vpop.permute.xlu0 %937 }
  0xe2   : > { %9162 = vst [vmem:[#allocation67_spill] sm:$0xff] %v6436_v37  ;;  %9164 = vst [vmem:[#allocation69_spill] sm:$0xff] %v6442_v58  ;;  %v6456_v37 = vld [vmem:[#allocation2 + $0x188] sm:$0xff] }
  0xe3   : > { %1111 = vrot.lane.b32.xlu1 %v6438_v62, %s5645_s22  ;;  %1117 = vrot.lane.b32.xlu0 %v6440_v33, %s5645_s22 }
  0xe5   : > { %v6448_v36 = vpop.permute.xlu1 %935  ;;  %v6452_v0 = vpop.permute.xlu0 %941 }
  0xe6   : > { %9165 = vst [vmem:[#allocation70_spill] sm:$0xff] %v6448_v36  ;;  %9166 = vst [vmem:[#allocation71_spill] sm:$0xff] %v6452_v0 }
  0xe7   : > { %1115 = vrot.lane.b32.xlu1 %v6450_v3, %s5645_s22  ;;  %1185 = vrot.lane.b32.xlu0 %v5889_v25, %s5646_s23 }
  0xe9   : > { %v6460_v58 = vpop.permute.xlu1 %939  ;;  %v6462_v62 = vpop.permute.xlu0 %945 }
  0xea   : > { %9167 = vst [vmem:[#allocation72_spill] sm:$0xff] %v6460_v58  ;;  %9168 = vst [vmem:[#allocation73_spill] sm:$0xff] %v6462_v62 }
  0xeb   : > { %1119 = vrot.lane.b32.xlu1 %v6456_v37, %s5645_s22  ;;  %1189 = vrot.lane.b32.xlu0 %v5891_v26, %s5646_s23  ;;  %s5650_s22 = smov 32  }
  0xed   : > { %v6468_v0 = vpop.permute.xlu1 %943  ;;  %v6470_v36 = vpop.permute.xlu0 %949 }
  0xef   : > { %1187 = vrot.lane.b32.xlu1 %v5898_v27, %s5646_s23  ;;  %1193 = vrot.lane.b32.xlu0 %v5906_v30, %s5646_s23 }
  0xf1   : > { %v6476_v25 = vpop.permute.xlu1 %947  ;;  %v6478_v58 = vpop.permute.xlu0 %953 }
  0xf2   : > { %9169 = vst [vmem:[#allocation74_spill] sm:$0xff] %v6478_v58 }
  0xf3   : > { %1191 = vrot.lane.b32.xlu1 %v5910_v31, %s5646_s23  ;;  %1197 = vrot.lane.b32.xlu0 %v5914_v32, %s5646_s23 }
  0xf5   : > { %v6484_v26 = vpop.permute.xlu1 %951  ;;  %v6486_v62 = vpop.permute.xlu0 %957 }
  0xf6   : > { %9170 = vst [vmem:[#allocation75_spill] sm:$0xff] %v6484_v26  ;;  %9171 = vst [vmem:[#allocation76_spill] sm:$0xff] %v6486_v62  ;;  %v750_v62 = vld [vmem:[#allocation2 + $0xca] sm:$0xff] }
  0xf7   : > { %1195 = vrot.lane.b32.xlu1 %v5926_v38, %s5646_s23  ;;  %1201 = vrot.lane.b32.xlu0 %v5934_v40, %s5646_s23  ;;  %v5586_v26 = vld [vmem:[#allocation2 + $0x30] sm:$0xff] }
  0xf9   : > { %v6492_v27 = vpop.permute.xlu1 %955  ;;  %v6494_v30 = vpop.permute.xlu0 %961 }
  0xfa   : > { %9172 = vst [vmem:[#allocation77_spill] sm:$0xff] %v6492_v27  ;;  %9173 = vst [vmem:[#allocation78_spill] sm:$0xff] %v6494_v30  ;;  %v756_v27 = vld [vmem:[#allocation2 + $0x112] sm:$0xff] }
  0xfb   : > { %1199 = vrot.lane.b32.xlu1 %v5938_v41, %s5646_s23  ;;  %1205 = vrot.lane.b32.xlu0 %v5942_v42, %s5646_s23 }
  0xfd   : > { %v6500_v31 = vpop.permute.xlu1 %959  ;;  %v6502_v32 = vpop.permute.xlu0 %965 }
  0xfe   : > { %9174 = vst [vmem:[#allocation79_spill] sm:$0xff] %v6500_v31  ;;  %9175 = vst [vmem:[#allocation80_spill] sm:$0xff] %v6502_v32  ;;  %v724_v31 = vld [vmem:[#allocation2 + $0x111] sm:$0xff] }
  0xff   : > { %1203 = vrot.lane.b32.xlu1 %v5946_v43, %s5646_s23  ;;  %1209 = vrot.lane.b32.xlu0 %v5950_v44, %s5646_s23 }
 0x101   : > { %v6508_v38 = vpop.permute.xlu1 %963  ;;  %v6510_v40 = vpop.permute.xlu0 %969 }
 0x102   : > { %9176 = vst [vmem:[#allocation81_spill] sm:$0xff] %v6508_v38  ;;  %9177 = vst [vmem:[#allocation82_spill] sm:$0xff] %v6510_v40  ;;  %v713_v38 = vld [vmem:[#allocation2 + $0x91] sm:$0xff] }
 0x103   : > { %1207 = vrot.lane.b32.xlu1 %v5954_v45, %s5646_s23  ;;  %1213 = vrot.lane.b32.xlu0 %v5958_v46, %s5646_s23 }
 0x105   : > { %v6516_v41 = vpop.permute.xlu1 %967  ;;  %v6518_v42 = vpop.permute.xlu0 %973 }
 0x106   : > { %9178 = vst [vmem:[#allocation83_spill] sm:$0xff] %v6516_v41  ;;  %9179 = vst [vmem:[#allocation84_spill] sm:$0xff] %v6518_v42 }
 0x107   : > { %1211 = vrot.lane.b32.xlu1 %v5962_v47, %s5646_s23  ;;  %1217 = vrot.lane.b32.xlu0 %v5966_v48, %s5646_s23 }
 0x109   : > { %v6524_v43 = vpop.permute.xlu1 %971  ;;  %v6526_v44 = vpop.permute.xlu0 %977 }
 0x10a   : > { %9180 = vst [vmem:[#allocation85_spill] sm:$0xff] %v6524_v43  ;;  %9181 = vst [vmem:[#allocation86_spill] sm:$0xff] %v6526_v44  ;;  %v9222_v44 = vld [vmem:[#allocation25_spill] sm:$0xff] }
 0x10b   : > { %1215 = vrot.lane.b32.xlu1 %v5970_v49, %s5646_s23  ;;  %1221 = vrot.lane.b32.xlu0 %v5974_v50, %s5646_s23 }
 0x10d   : > { %v6532_v45 = vpop.permute.xlu1 %975  ;;  %v6534_v46 = vpop.permute.xlu0 %981 }
 0x10e   : > { %9182 = vst [vmem:[#allocation87_spill] sm:$0xff] %v6532_v45  ;;  %9183 = vst [vmem:[#allocation88_spill] sm:$0xff] %v6534_v46 }
 0x10f   : > { %1219 = vrot.lane.b32.xlu1 %v5978_v51, %s5646_s23  ;;  %1225 = vrot.lane.b32.xlu0 %v5982_v52, %s5646_s23 }
 0x111   : > { %v6540_v47 = vpop.permute.xlu1 %979  ;;  %v6542_v48 = vpop.permute.xlu0 %985 }
 0x112   : > { %9184 = vst [vmem:[#allocation89_spill] sm:$0xff] %v6540_v47  ;;  %9185 = vst [vmem:[#allocation90_spill] sm:$0xff] %v6542_v48  ;;  %v9220_v47 = vld [vmem:[#allocation23_spill] sm:$0xff] }
 0x113   : > { %1223 = vrot.lane.b32.xlu1 %v5986_v53, %s5646_s23  ;;  %1229 = vrot.lane.b32.xlu0 %v5990_v54, %s5646_s23 }
 0x115   : > { %v6548_v49 = vpop.permute.xlu1 %983  ;;  %v6550_v50 = vpop.permute.xlu0 %989 }
 0x116   : > { %9186 = vst [vmem:[#allocation91_spill] sm:$0xff] %v6548_v49  ;;  %9187 = vst [vmem:[#allocation92_spill] sm:$0xff] %v6550_v50 }
 0x117   : > { %1227 = vrot.lane.b32.xlu1 %v5994_v55, %s5646_s23  ;;  %1233 = vrot.lane.b32.xlu0 %v5998_v56, %s5646_s23  ;;  %v6574_v56 = vld [vmem:[#allocation2 + $0x181] sm:$0xff] }
 0x119   : > { %v6556_v51 = vpop.permute.xlu1 %987  ;;  %v6558_v52 = vpop.permute.xlu0 %1057 }
 0x11a   : > { %9188 = vst [vmem:[#allocation93_spill] sm:$0xff] %v6556_v51 }
 0x11b   : > { %1231 = vrot.lane.b32.xlu1 %v6110_v57, %s5646_s23  ;;  %1237 = vrot.lane.b32.xlu0 %v6116_v59, %s5646_s23 }
 0x11d   : > { %v6564_v53 = vpop.permute.xlu1 %991  ;;  %v6566_v54 = vpop.permute.xlu0 %1061 }
 0x11e   : > { %9189 = vst [vmem:[#allocation94_spill] sm:$0xff] %v6564_v53 }
 0x11f   : > { %1235 = vrot.lane.b32.xlu1 %v6120_v60, %s5646_s23  ;;  %1241 = vrot.lane.b32.xlu0 %v6124_v61, %s5646_s23  ;;  %v6588_v60 = vld [vmem:[#allocation2 + $0x189] sm:$0xff] }
 0x121   : > { %v6572_v55 = vpop.permute.xlu1 %1059  ;;  %v6576_v50 = vpop.permute.xlu0 %1065 }
 0x123   : > { %1239 = vrot.lane.b32.xlu1 %v6130_v63, %s5646_s23  ;;  %1245 = vrot.lane.b32.xlu0 %v6574_v56, %s5646_s23 }
 0x125   : > { %v6582_v57 = vpop.permute.xlu1 %1063  ;;  %v6584_v59 = vpop.permute.xlu0 %1069 }
 0x127   : > { %1243 = vrot.lane.b32.xlu1 %v6136_v1, %s5646_s23  ;;  %1313 = vrot.lane.b32.xlu0 %v6139_v2, %s5647_s24 }
 0x129   : > { %v6592_v61 = vpop.permute.xlu1 %1067  ;;  %v6594_v53 = vpop.permute.xlu0 %1073 }
 0x12b   : > { %1247 = vrot.lane.b32.xlu1 %v6588_v60, %s5646_s23  ;;  %1317 = vrot.lane.b32.xlu0 %v6145_v4, %s5647_s24 }
 0x12d   : > { %v6600_v63 = vpop.permute.xlu1 %1071  ;;  %v6602_v51 = vpop.permute.xlu0 %1077 }
 0x12e   : > { %9190 = vst [vmem:[#allocation95_spill] sm:$0xff] %v6602_v51  ;;  %v9326_v51 = vld [vmem:[#allocation62_spill] sm:$0xff] }
 0x12f   : > { %1315 = vrot.lane.b32.xlu1 %v6148_v5, %s5647_s24  ;;  %1321 = vrot.lane.b32.xlu0 %v6152_v6, %s5647_s24 }
 0x131   : > { %v6608_v1 = vpop.permute.xlu1 %1075  ;;  %v6610_v2 = vpop.permute.xlu0 %1081 }
 0x132   : > { %9191 = vst [vmem:[#allocation96_spill] sm:$0xff] %v6610_v2 }
 0x133   : > { %1319 = vrot.lane.b32.xlu1 %v6156_v7, %s5647_s24  ;;  %1325 = vrot.lane.b32.xlu0 %v6160_v8, %s5647_s24 }
 0x135   : > { %v6616_v4 = vpop.permute.xlu1 %1079  ;;  %v6618_v48 = vpop.permute.xlu0 %1085 }
 0x136   : > { %9192 = vst [vmem:[#allocation97_spill] sm:$0xff] %v6616_v4  ;;  %9193 = vst [vmem:[#allocation98_spill] sm:$0xff] %v6618_v48 }
 0x137   : > { %1323 = vrot.lane.b32.xlu1 %v6164_v9, %s5647_s24  ;;  %1329 = vrot.lane.b32.xlu0 %v6168_v10, %s5647_s24 }
 0x139   : > { %v6624_v5 = vpop.permute.xlu1 %1083  ;;  %v6626_v6 = vpop.permute.xlu0 %1089 }
 0x13a   : > { %9194 = vst [vmem:[#allocation99_spill] sm:$0xff] %v6624_v5  ;;  %9195 = vst [vmem:[#allocation100_spill] sm:$0xff] %v6626_v6  ;;  %v754_v5 = vld [vmem:[#allocation2 + $0xfa] sm:$0xff] }
 0x13b   : > { %1327 = vrot.lane.b32.xlu1 %v6172_v11, %s5647_s24  ;;  %1333 = vrot.lane.b32.xlu0 %v6176_v12, %s5647_s24 }
 0x13d   : > { %v6632_v7 = vpop.permute.xlu1 %1087  ;;  %v6634_v8 = vpop.permute.xlu0 %1093 }
 0x13e   : > { %9196 = vst [vmem:[#allocation101_spill] sm:$0xff] %v6632_v7  ;;  %9197 = vst [vmem:[#allocation102_spill] sm:$0xff] %v6634_v8  ;;  %v9238_v8 = vld [vmem:[#allocation41_spill] sm:$0xff] }
 0x13f   : > { %1331 = vrot.lane.b32.xlu1 %v6180_v13, %s5647_s24  ;;  %1337 = vrot.lane.b32.xlu0 %v6184_v14, %s5647_s24  ;;  %v717_v7 = vld [vmem:[#allocation2 + $0xc1] sm:$0xff] }
 0x141   : > { %v6640_v9 = vpop.permute.xlu1 %1091  ;;  %v6642_v10 = vpop.permute.xlu0 %1097 }
 0x142   : > { %9198 = vst [vmem:[#allocation103_spill] sm:$0xff] %v6640_v9  ;;  %9199 = vst [vmem:[#allocation104_spill] sm:$0xff] %v6642_v10  ;;  %v9234_v10 = vld [vmem:[#allocation37_spill] sm:$0xff]  ;;  %v711_v9 = vld [vmem:[#allocation2 + $0x79] sm:$0xff] }
 0x143   : > { %1335 = vrot.lane.b32.xlu1 %v6188_v15, %s5647_s24  ;;  %1341 = vrot.lane.b32.xlu0 %v6192_v16, %s5647_s24 }
 0x145   : > { %v6648_v11 = vpop.permute.xlu1 %1095  ;;  %v6650_v12 = vpop.permute.xlu0 %1101 }
 0x146   : > { %9200 = vst [vmem:[#allocation105_spill] sm:$0xff] %v6648_v11  ;;  %9201 = vst [vmem:[#allocation106_spill] sm:$0xff] %v6650_v12  ;;  %v9226_v12 = vld [vmem:[#allocation29_spill] sm:$0xff] }
 0x147   : > { %1339 = vrot.lane.b32.xlu1 %v6196_v17, %s5647_s24  ;;  %1345 = vrot.lane.b32.xlu0 %v6200_v18, %s5647_s24 }
 0x149   : > { %v6656_v13 = vpop.permute.xlu1 %1099  ;;  %v6658_v14 = vpop.permute.xlu0 %1105 }
 0x14a   : > { %9202 = vst [vmem:[#allocation107_spill] sm:$0xff] %v6656_v13  ;;  %9203 = vst [vmem:[#allocation108_spill] sm:$0xff] %v6658_v14  ;;  %v9230_v13 = vld [vmem:[#allocation33_spill] sm:$0xff] }
 0x14b   : > { %1343 = vrot.lane.b32.xlu1 %v6204_v19, %s5647_s24  ;;  %1349 = vrot.lane.b32.xlu0 %v6208_v20, %s5647_s24 }
 0x14d   : > { %v6664_v15 = vpop.permute.xlu1 %1103  ;;  %v6666_v16 = vpop.permute.xlu0 %1109 }
 0x14e   : > { %9204 = vst [vmem:[#allocation109_spill] sm:$0xff] %v6664_v15  ;;  %9205 = vst [vmem:[#allocation110_spill] sm:$0xff] %v6666_v16  ;;  %v9223_v15 = vld [vmem:[#allocation27_spill] sm:$0xff] }
 0x14f   : > { %1347 = vrot.lane.b32.xlu1 %v6212_v21, %s5647_s24  ;;  %1353 = vrot.lane.b32.xlu0 %v6216_v22, %s5647_s24 }
 0x151   : > { %v6672_v17 = vpop.permute.xlu1 %1107  ;;  %v6674_v18 = vpop.permute.xlu0 %1113 }
 0x152   : > { %9206 = vst [vmem:[#allocation111_spill] sm:$0xff] %v6672_v17  ;;  %9207 = vst [vmem:[#allocation112_spill] sm:$0xff] %v6674_v18 }
 0x153   : > { %1351 = vrot.lane.b32.xlu1 %v6220_v23, %s5647_s24  ;;  %1357 = vrot.lane.b32.xlu0 %v6224_v24, %s5647_s24 }
 0x155   : > { %v6680_v19 = vpop.permute.xlu1 %1111  ;;  %v6682_v20 = vpop.permute.xlu0 %1117 }
 0x156   : > { %9208 = vst [vmem:[#allocation113_spill] sm:$0xff] %v6680_v19  ;;  %9209 = vst [vmem:[#allocation114_spill] sm:$0xff] %v6682_v20  ;;  %v9212_v20 = vld [vmem:[#allocation6_spill] sm:$0xff]  ;;  %v9216_v19 = vld [vmem:[#allocation16_spill] sm:$0xff] }
 0x157   : > { %1355 = vrot.lane.b32.xlu1 %v6228_v28, %s5647_s24  ;;  %1361 = vrot.lane.b32.xlu0 %v6232_v29, %s5647_s24  ;;  %v9213_v28 = vld [vmem:[#allocation8_spill] sm:$0xff] }
 0x159   : > { %v6688_v21 = vpop.permute.xlu1 %1115  ;;  %v6690_v22 = vpop.permute.xlu0 %1185 }
 0x15a   : > { %9210 = vst [vmem:[#allocation115_spill] sm:$0xff] %v6688_v21  ;;  %v6706_v21 = vld [vmem:[#allocation2 + $0x182] sm:$0xff] }
 0x15b   : > { %1359 = vrot.lane.b32.xlu1 %v6238_v34, %s5647_s24  ;;  %1365 = vrot.lane.b32.xlu0 %v6242_v35, %s5647_s24  ;;  %v9214_v34 = vld [vmem:[#allocation10_spill] sm:$0xff] }
 0x15d   : > { %v6696_v23 = vpop.permute.xlu1 %1119  ;;  %v6698_v24 = vpop.permute.xlu0 %1189 }
 0x15e   : > { %9211 = vst [vmem:[#allocation116_spill] sm:$0xff] %v6696_v23 }
 0x15f   : > { %1363 = vrot.lane.b32.xlu1 %v9212_v20, %s5647_s24  ;;  %1369 = vrot.lane.b32.xlu0 %v9213_v28, %s5647_s24  ;;  %v9215_v20 = vld [vmem:[#allocation13_spill] sm:$0xff] }
 0x160   : > { %v6720_v28 = vld [vmem:[#allocation2 + $0x18a] sm:$0xff] }
 0x161   : > { %v6704_v29 = vpop.permute.xlu1 %1187  ;;  %v6708_v18 = vpop.permute.xlu0 %1193 }
 0x163   : > { %1367 = vrot.lane.b32.xlu1 %v9214_v34, %s5647_s24  ;;  %1373 = vrot.lane.b32.xlu0 %v6706_v21, %s5647_s24  ;;  %v9217_v34 = vld [vmem:[#allocation19_spill] sm:$0xff] }
 0x165   : > { %v6714_v35 = vpop.permute.xlu1 %1191  ;;  %v6716_v23 = vpop.permute.xlu0 %1197 }
 0x167   : > { %1371 = vrot.lane.b32.xlu1 %v9215_v20, %s5647_s24  ;;  %1441 = vrot.lane.b32.xlu0 %v9216_v19, %s5648_s25  ;;  %v9219_v20 = vld [vmem:[#allocation21_spill] sm:$0xff] }
 0x169   : > { %v6724_v49 = vpop.permute.xlu1 %1195  ;;  %v6726_v16 = vpop.permute.xlu0 %1201 }
 0x16b   : > { %1375 = vrot.lane.b32.xlu1 %v6720_v28, %s5647_s24  ;;  %1445 = vrot.lane.b32.xlu0 %v9217_v34, %s5648_s25 }
 0x16d   : > { %v6732_v46 = vpop.permute.xlu1 %1199  ;;  %v6734_v17 = vpop.permute.xlu0 %1205 }
 0x16e   : > { %9218 = vst [vmem:[#allocation6_spill] sm:$0xff] %v6734_v17 }
 0x16f   : > { %1443 = vrot.lane.b32.xlu1 %v9219_v20, %s5648_s25  ;;  %1449 = vrot.lane.b32.xlu0 %v9220_v47, %s5648_s25  ;;  %v9227_v20 = vld [vmem:[#allocation31_spill] sm:$0xff] }
 0x171   : > { %v6740_v19 = vpop.permute.xlu1 %1203  ;;  %v6742_v14 = vpop.permute.xlu0 %1209 }
 0x172   : > { %9221 = vst [vmem:[#allocation8_spill] sm:$0xff] %v6742_v14 }
 0x173   : > { %1447 = vrot.lane.b32.xlu1 %v9222_v44, %s5648_s25  ;;  %1453 = vrot.lane.b32.xlu0 %v9223_v15, %s5648_s25  ;;  %v9231_v44 = vld [vmem:[#allocation35_spill] sm:$0xff] }
 0x175   : > { %v6748_v34 = vpop.permute.xlu1 %1207  ;;  %v6750_v45 = vpop.permute.xlu0 %1213 }
 0x176   : > { %9224 = vst [vmem:[#allocation10_spill] sm:$0xff] %v6748_v34  ;;  %9225 = vst [vmem:[#allocation13_spill] sm:$0xff] %v6750_v45 }
 0x177   : > { %1451 = vrot.lane.b32.xlu1 %v9226_v12, %s5648_s25  ;;  %1457 = vrot.lane.b32.xlu0 %v9227_v20, %s5648_s25  ;;  %v9235_v12 = vld [vmem:[#allocation39_spill] sm:$0xff] }
 0x179   : > { %v6756_v47 = vpop.permute.xlu1 %1211  ;;  %v6758_v42 = vpop.permute.xlu0 %1217 }
 0x17a   : > { %9228 = vst [vmem:[#allocation16_spill] sm:$0xff] %v6756_v47  ;;  %9229 = vst [vmem:[#allocation19_spill] sm:$0xff] %v6758_v42  ;;  %v752_v47 = vld [vmem:[#allocation2 + $0xe2] sm:$0xff] }
 0x17b   : > { %1455 = vrot.lane.b32.xlu1 %v9230_v13, %s5648_s25  ;;  %1461 = vrot.lane.b32.xlu0 %v9231_v44, %s5648_s25  ;;  %v9239_v13 = vld [vmem:[#allocation43_spill] sm:$0xff] }
 0x17d   : > { %v6764_v15 = vpop.permute.xlu1 %1215  ;;  %v6766_v43 = vpop.permute.xlu0 %1221 }
 0x17e   : > { %9232 = vst [vmem:[#allocation21_spill] sm:$0xff] %v6764_v15  ;;  %9233 = vst [vmem:[#allocation23_spill] sm:$0xff] %v6766_v43  ;;  %v9242_v43 = vld [vmem:[#allocation45_spill] sm:$0xff] }
 0x17f   : > { %1459 = vrot.lane.b32.xlu1 %v9234_v10, %s5648_s25  ;;  %1465 = vrot.lane.b32.xlu0 %v9235_v12, %s5648_s25  ;;  %v9243_v10 = vld [vmem:[#allocation47_spill] sm:$0xff]  ;;  %v715_v15 = vld [vmem:[#allocation2 + $0xa9] sm:$0xff] }
 0x181   : > { %v6772_v20 = vpop.permute.xlu1 %1219  ;;  %v6774_v11 = vpop.permute.xlu0 %1225 }
 0x182   : > { %9236 = vst [vmem:[#allocation25_spill] sm:$0xff] %v6772_v20  ;;  %9237 = vst [vmem:[#allocation27_spill] sm:$0xff] %v6774_v11  ;;  %v9246_v11 = vld [vmem:[#allocation49_spill] sm:$0xff] }
 0x183   : > { %1463 = vrot.lane.b32.xlu1 %v9238_v8, %s5648_s25  ;;  %1469 = vrot.lane.b32.xlu0 %v9239_v13, %s5648_s25  ;;  %v9247_v8 = vld [vmem:[#allocation51_spill] sm:$0xff]  ;;  %v709_v20 = vld [vmem:[#allocation2 + $0x61] sm:$0xff] }
 0x185   : > { %v6780_v44 = vpop.permute.xlu1 %1223  ;;  %v6782_v41 = vpop.permute.xlu0 %1229 }
 0x186   : > { %9240 = vst [vmem:[#allocation29_spill] sm:$0xff] %v6780_v44  ;;  %9241 = vst [vmem:[#allocation31_spill] sm:$0xff] %v6782_v41  ;;  %v9250_v41 = vld [vmem:[#allocation53_spill] sm:$0xff] }
 0x187   : > { %1467 = vrot.lane.b32.xlu1 %v9242_v43, %s5648_s25  ;;  %1473 = vrot.lane.b32.xlu0 %v9243_v10, %s5648_s25  ;;  %v9251_v43 = vld [vmem:[#allocation55_spill] sm:$0xff] }
 0x189   : > { %v6788_v12 = vpop.permute.xlu1 %1227  ;;  %v6790_v40 = vpop.permute.xlu0 %1233 }
 0x18a   : > { %9244 = vst [vmem:[#allocation33_spill] sm:$0xff] %v6788_v12  ;;  %9245 = vst [vmem:[#allocation35_spill] sm:$0xff] %v6790_v40  ;;  %v9254_v40 = vld [vmem:[#allocation57_spill] sm:$0xff] }
 0x18b   : > { %1471 = vrot.lane.b32.xlu1 %v9246_v11, %s5648_s25  ;;  %1477 = vrot.lane.b32.xlu0 %v9247_v8, %s5648_s25  ;;  %v9255_v11 = vld [vmem:[#allocation59_spill] sm:$0xff] }
 0x18d   : > { %v6796_v13 = vpop.permute.xlu1 %1231  ;;  %v6798_v44 = vpop.permute.xlu0 %1237 }
 0x18e   : > { %9248 = vst [vmem:[#allocation37_spill] sm:$0xff] %v6796_v13  ;;  %9249 = vst [vmem:[#allocation39_spill] sm:$0xff] %v6798_v44  ;;  %v9258_v44 = vld [vmem:[#allocation61_spill] sm:$0xff] }
 0x18f   : > { %1475 = vrot.lane.b32.xlu1 %v9250_v41, %s5648_s25  ;;  %1481 = vrot.lane.b32.xlu0 %v9251_v43, %s5648_s25  ;;  %v9259_v41 = vld [vmem:[#allocation63_spill] sm:$0xff] }
 0x191   : > { %v6804_v10 = vpop.permute.xlu1 %1235  ;;  %v6806_v12 = vpop.permute.xlu0 %1241 }
 0x192   : > { %9252 = vst [vmem:[#allocation41_spill] sm:$0xff] %v6804_v10  ;;  %9253 = vst [vmem:[#allocation43_spill] sm:$0xff] %v6806_v12  ;;  %v9261_v12 = vld [vmem:[#allocation65_spill] sm:$0xff] }
 0x193   : > { %1479 = vrot.lane.b32.xlu1 %v9254_v40, %s5648_s25  ;;  %1485 = vrot.lane.b32.xlu0 %v9255_v11, %s5648_s25 }
 0x195   : > { %v6812_v8 = vpop.permute.xlu1 %1239  ;;  %v6814_v13 = vpop.permute.xlu0 %1245 }
 0x196   : > { %9256 = vst [vmem:[#allocation45_spill] sm:$0xff] %v6812_v8  ;;  %9257 = vst [vmem:[#allocation47_spill] sm:$0xff] %v6814_v13  ;;  %v9263_v13 = vld [vmem:[#allocation68_spill] sm:$0xff]  ;;  %v707_v8 = vld [vmem:[#allocation2 + $0x49] sm:$0xff] }
 0x197   : > { %1483 = vrot.lane.b32.xlu1 %v9258_v44, %s5648_s25  ;;  %1489 = vrot.lane.b32.xlu0 %v9259_v41, %s5648_s25  ;;  %v703_v41 = vld [vmem:[#allocation2 + $0x198] sm:$0xff] }
 0x199   : > { %v6820_v43 = vpop.permute.xlu1 %1243  ;;  %v6822_v10 = vpop.permute.xlu0 %1313 }
 0x19a   : > { %9260 = vst [vmem:[#allocation49_spill] sm:$0xff] %v6820_v43 }
 0x19b   : > { %1487 = vrot.lane.b32.xlu1 %v9261_v12, %s5648_s25  ;;  %1493 = vrot.lane.b32.xlu0 %v6432_v39, %s5648_s25  ;;  %v705_v12 = vld [vmem:[#allocation2 + $0x31] sm:$0xff] }
 0x19d   : > { %v6828_v40 = vpop.permute.xlu1 %1247  ;;  %v6830_v11 = vpop.permute.xlu0 %1317 }
 0x19e   : > { %9262 = vst [vmem:[#allocation51_spill] sm:$0xff] %v6828_v40 }
 0x19f   : > { %1491 = vrot.lane.b32.xlu1 %v9263_v13, %s5648_s25  ;;  %1497 = vrot.lane.b32.xlu0 %v6440_v33, %s5648_s25  ;;  %v704_v13 = vld [vmem:[#allocation2 + $0x1a0] sm:$0xff] }
 0x1a1   : > { %v6836_v44 = vpop.permute.xlu1 %1315  ;;  %v6838_v43 = vpop.permute.xlu0 %1321 }
 0x1a3   : > { %1495 = vrot.lane.b32.xlu1 %v6450_v3, %s5648_s25  ;;  %1501 = vrot.lane.b32.xlu0 %v703_v41, %s5648_s25  ;;  %v706_v3 = vld [vmem:[#allocation2 + $0x39] sm:$0xff] }
 0x1a5   : > { %v6843_v39 = vpop.permute.xlu1 %1319  ;;  %v6845_v40 = vpop.permute.xlu0 %1325 }
 0x1a7   : > { %1499 = vrot.lane.b32.xlu1 %v6456_v37, %s5648_s25  ;;  %1569 = vrot.lane.b32.xlu0 %v705_v12, %s5649_s26  ;;  %v708_v37 = vld [vmem:[#allocation2 + $0x51] sm:$0xff] }
 0x1a9   : > { %v6850_v33 = vpop.permute.xlu1 %1323  ;;  %v6852_v32 = vpop.permute.xlu0 %1329 }
 0x1ab   : > { %1503 = vrot.lane.b32.xlu1 %v704_v13, %s5648_s25  ;;  %1573 = vrot.lane.b32.xlu0 %v707_v8, %s5649_s26  ;;  %v710_v13 = vld [vmem:[#allocation2 + $0x69] sm:$0xff] }
 0x1ad   : > { %v6856_v41 = vpop.permute.xlu1 %1327  ;;  %v6858_v42 = vpop.permute.xlu0 %1333 }
 0x1ae   : > { %9264 = vst [vmem:[#allocation53_spill] sm:$0xff] %v6858_v42 }
 0x1af   : > { %1571 = vrot.lane.b32.xlu1 %v706_v3, %s5649_s26  ;;  %1577 = vrot.lane.b32.xlu0 %v709_v20, %s5649_s26  ;;  %v712_v3 = vld [vmem:[#allocation2 + $0x81] sm:$0xff] }
 0x1b1   : > { %v6862_v12 = vpop.permute.xlu1 %1331  ;;  %v6864_v6 = vpop.permute.xlu0 %1337 }
 0x1b2   : > { %9265 = vst [vmem:[#allocation55_spill] sm:$0xff] %v6862_v12  ;;  %9266 = vst [vmem:[#allocation57_spill] sm:$0xff] %v6864_v6  ;;  %v9328_v12 = vld [vmem:[#allocation67_spill] sm:$0xff] }
 0x1b3   : > { %1575 = vrot.lane.b32.xlu1 %v708_v37, %s5649_s26  ;;  %1581 = vrot.lane.b32.xlu0 %v711_v9, %s5649_s26  ;;  %v714_v37 = vld [vmem:[#allocation2 + $0x99] sm:$0xff] }
 0x1b5   : > { %v6868_v8 = vpop.permute.xlu1 %1335  ;;  %v6870_v30 = vpop.permute.xlu0 %1341 }
 0x1b6   : > { %9267 = vst [vmem:[#allocation59_spill] sm:$0xff] %v6868_v8  ;;  %9268 = vst [vmem:[#allocation61_spill] sm:$0xff] %v6870_v30  ;;  %v722_v30 = vld [vmem:[#allocation2 + $0xf9] sm:$0xff] }
 0x1b7   : > { %1579 = vrot.lane.b32.xlu1 %v710_v13, %s5649_s26  ;;  %1585 = vrot.lane.b32.xlu0 %v713_v38, %s5649_s26  ;;  %v716_v13 = vld [vmem:[#allocation2 + $0xb1] sm:$0xff] }
 0x1b9   : > { %v6874_v20 = vpop.permute.xlu1 %1339  ;;  %v6876_v45 = vpop.permute.xlu0 %1345 }
 0x1ba   : > { %9269 = vst [vmem:[#allocation63_spill] sm:$0xff] %v6874_v20  ;;  %9270 = vst [vmem:[#allocation65_spill] sm:$0xff] %v6876_v45  ;;  %v2060_v45 = vld [vmem:[%s9058_s1 + $0x20] sm:$0xf] }
 0x1bb   : > { %1583 = vrot.lane.b32.xlu1 %v712_v3, %s5649_s26  ;;  %1589 = vrot.lane.b32.xlu0 %v715_v15, %s5649_s26  ;;  %v719_v3 = vld [vmem:[#allocation2 + $0xd9] sm:$0xff] }
 0x1bc   : > { %5380 = vmatprep.subr.msk.mxu0 %vm2158_vm2, %v2060_v45  ;;  %5554 = vmatprep.subr.msk.mxu1 %vm2158_vm2, %v2060_v45 }
 0x1bd   : > { %v6880_v9 = vpop.permute.xlu1 %1343  ;;  %v6882_v48 = vpop.permute.xlu0 %1349  ;;  %5381 = vmatpush3.msk.msra.mxu0 %vm2158_vm2, %v2060_v45  ;;  %5559 = vmatpush3.msk.msra.mxu1 %vm2158_vm2, %v2060_v45  ;;  %v2057_v45 = vld [vmem:[%s9058_s1 + $0x8] sm:$0xff] }
 0x1be   : > { %9271 = vst [vmem:[#allocation68_spill] sm:$0xff] %v6880_v9  ;;  %9272 = vst [vmem:[#allocation117_spill] sm:$0xff] %v6882_v48  ;;  %v2056_v9 = vld [vmem:[%s9058_s1] sm:$0xff] }
 0x1bf   : > { %1587 = vrot.lane.b32.xlu1 %v714_v37, %s5649_s26  ;;  %1593 = vrot.lane.b32.xlu0 %v717_v7, %s5649_s26  ;;  %v2059_v7 = vld [vmem:[%s9058_s1 + $0x18] sm:$0xff]  ;;  %v718_v37 = vld [vmem:[#allocation2 + $0xc9] sm:$0xff] }
 0x1c0   : > { %5382 = vmatprep.subr.mxu0 %v2059_v7  ;;  %5555 = vmatprep.subr.mxu1 %v2059_v7 }
 0x1c1   : > { %v6886_v38 = vpop.permute.xlu1 %1347  ;;  %v6893_v15 = vpop.permute.xlu0 %1353  ;;  %5383 = vmatpush3.msra.mxu0 %v2059_v7  ;;  %5560 = vmatpush3.msra.mxu1 %v2059_v7 }
 0x1c2   : > { %9273 = vst [vmem:[#allocation118_spill] sm:$0xff] %v6886_v38  ;;  %9274 = vst [vmem:[#allocation119_spill] sm:$0xff] %v6893_v15  ;;  %v2058_v15 = vld [vmem:[%s9058_s1 + $0x10] sm:$0xff] }
 0x1c3   : > { %1591 = vrot.lane.b32.xlu1 %v716_v13, %s5649_s26  ;;  %1597 = vrot.lane.b32.xlu0 %v719_v3, %s5649_s26  ;;  %v721_v13 = vld [vmem:[#allocation2 + $0xf1] sm:$0xff]  ;;  %v720_v3 = vld [vmem:[#allocation2 + $0xe1] sm:$0xff] }
 0x1c4   : > { %5384 = vmatprep.subr.mxu0 %v2058_v15  ;;  %5556 = vmatprep.subr.mxu1 %v2058_v15 }
 0x1c5   : > { %v6902_v48 = vpop.permute.xlu1 %1351  ;;  %v6907_v38 = vpop.permute.xlu0 %1357  ;;  %5385 = vmatpush3.msra.mxu0 %v2058_v15  ;;  %5561 = vmatpush3.msra.mxu1 %v2058_v15 }
 0x1c6   : > { %9275 = vst [vmem:[#allocation120_spill] sm:$0xff] %v6902_v48  ;;  %9276 = vst [vmem:[#allocation121_spill] sm:$0xff] %v6907_v38  ;;  %5386 = vmatprep.subr.mxu0 %v2057_v45  ;;  %v723_v38 = vld [vmem:[#allocation2 + $0x109] sm:$0xff]  ;;  %5557 = vmatprep.subr.mxu1 %v2057_v45 }
 0x1c7   : > { %1595 = vrot.lane.b32.xlu1 %v718_v37, %s5649_s26  ;;  %1601 = vrot.lane.b32.xlu0 %v721_v13, %s5649_s26  ;;  %v725_v13 = vld [vmem:[#allocation2 + $0x121] sm:$0xff] }
 0x1c8   : > { %5387 = vmatpush3.msra.mxu0 %v2057_v45  ;;  %5562 = vmatpush3.msra.mxu1 %v2057_v45 }
 0x1c9   : > { %v6914_v48 = vpop.permute.xlu1 %1355  ;;  %5388 = vmatprep.subr.mxu0 %v2056_v9  ;;  %v6919_v37 = vpop.permute.xlu0 %1361  ;;  %5558 = vmatprep.subr.mxu1 %v2056_v9 }
 0x1ca   : > { %9277 = vst [vmem:[#allocation122_spill] sm:$0xff] %v6914_v48  ;;  %9278 = vst [vmem:[#allocation123_spill] sm:$0xff] %v6919_v37  ;;  %5389 = vmatpush3.msra.mxu0 %v2056_v9  ;;  %5563 = vmatpush3.msra.mxu1 %v2056_v9  ;;  %v738_v37 = vld [vmem:[#allocation2 + $0x3a] sm:$0xff]  ;;  %v739_v9 = vld [vmem:[#allocation2 + $0x4a] sm:$0xff] }
 0x1cb   : > { %1599 = vrot.lane.b32.xlu1 %v720_v3, %s5649_s26  ;;  %1605 = vrot.lane.b32.xlu0 %v723_v38, %s5649_s26  ;;  %v737_v38 = vld [vmem:[#allocation2 + $0x32] sm:$0xff] }
 0x1cd   : > { %v6923_v7 = vpop.permute.xlu1 %1359  ;;  %v6925_v48 = vpop.permute.xlu0 %1365 }
 0x1ce   : > { %9279 = vst [vmem:[#allocation124_spill] sm:$0xff] %v6923_v7  ;;  %9280 = vst [vmem:[#allocation125_spill] sm:$0xff] %v6925_v48  ;;  %v740_v48 = vld [vmem:[#allocation2 + $0x52] sm:$0xff] }
 0x1cf   : > { %1603 = vrot.lane.b32.xlu1 %v722_v30, %s5649_s26  ;;  %1609 = vrot.lane.b32.xlu0 %v725_v13, %s5649_s26 }
 0x1d1   : > { %v6929_v3 = vpop.permute.xlu1 %1363  ;;  %v6931_v15 = vpop.permute.xlu0 %1369 }
 0x1d2   : > { %9281 = vst [vmem:[#allocation126_spill] sm:$0xff] %v6929_v3  ;;  %9282 = vst [vmem:[#allocation127_spill] sm:$0xff] %v6931_v15  ;;  %v742_v3 = vld [vmem:[#allocation2 + $0x6a] sm:$0xff] }
 0x1d3   : > { %1607 = vrot.lane.b32.xlu1 %v724_v31, %s5649_s26  ;;  %1699 = vrot.lane.b32.xlu0 %v738_v37, %s5650_s22  ;;  %v741_v31 = vld [vmem:[#allocation2 + $0x62] sm:$0xff] }
 0x1d5   : > { %v6935_v45 = vpop.permute.xlu1 %1367  ;;  %v6937_v30 = vpop.permute.xlu0 %1373 }
 0x1d6   : > { %9283 = vst [vmem:[#allocation128_spill] sm:$0xff] %v6935_v45  ;;  %9284 = vst [vmem:[#allocation129_spill] sm:$0xff] %v6937_v30  ;;  %v744_v45 = vld [vmem:[#allocation2 + $0x82] sm:$0xff]  ;;  %v746_v30 = vld [vmem:[#allocation2 + $0x9a] sm:$0xff] }
 0x1d7   : > { %1697 = vrot.lane.b32.xlu1 %v737_v38, %s5650_s22  ;;  %1703 = vrot.lane.b32.xlu0 %v740_v48, %s5650_s22  ;;  %v743_v38 = vld [vmem:[#allocation2 + $0x7a] sm:$0xff] }
 0x1d9   : > { %v6941_v13 = vpop.permute.xlu1 %1371  ;;  %v6943_v15 = vpop.permute.xlu0 %1441 }
 0x1da   : > { %9285 = vst [vmem:[#allocation130_spill] sm:$0xff] %v6941_v13 }
 0x1db   : > { %1701 = vrot.lane.b32.xlu1 %v739_v9, %s5650_s22  ;;  %1707 = vrot.lane.b32.xlu0 %v742_v3, %s5650_s22  ;;  %v745_v9 = vld [vmem:[#allocation2 + $0x92] sm:$0xff] }
 0x1dd   : > { %v6947_v37 = vpop.permute.xlu1 %1375  ;;  %v6949_v7 = vpop.permute.xlu0 %1445 }
 0x1de   : > { %9286 = vst [vmem:[#allocation131_spill] sm:$0xff] %v6947_v37  ;;  %v748_v37 = vld [vmem:[#allocation2 + $0xb2] sm:$0xff] }
 0x1df   : > { %1705 = vrot.lane.b32.xlu1 %v741_v31, %s5650_s22  ;;  %1711 = vrot.lane.b32.xlu0 %v744_v45, %s5650_s22  ;;  %v747_v31 = vld [vmem:[#allocation2 + $0xaa] sm:$0xff] }
 0x1e1   : > { %v6953_v48 = vpop.permute.xlu1 %1443  ;;  %v6955_v13 = vpop.permute.xlu0 %1449 }
 0x1e3   : > { %1709 = vrot.lane.b32.xlu1 %v743_v38, %s5650_s22  ;;  %1715 = vrot.lane.b32.xlu0 %v746_v30, %s5650_s22  ;;  %v749_v38 = vld [vmem:[#allocation2 + $0xc2] sm:$0xff] }
 0x1e5   : > { %v6959_v3 = vpop.permute.xlu1 %1447  ;;  %v6961_v20 = vpop.permute.xlu0 %1453 }
 0x1e7   : > { %1713 = vrot.lane.b32.xlu1 %v745_v9, %s5650_s22  ;;  %1719 = vrot.lane.b32.xlu0 %v748_v37, %s5650_s22  ;;  %v751_v9 = vld [vmem:[#allocation2 + $0xda] sm:$0xff] }
 0x1e9   : > { %v6965_v45 = vpop.permute.xlu1 %1451  ;;  %v6967_v6 = vpop.permute.xlu0 %1457 }
 0x1ea   : > { %9287 = vst [vmem:[#allocation132_spill] sm:$0xff] %v6967_v6 }
 0x1eb   : > { %1717 = vrot.lane.b32.xlu1 %v747_v31, %s5650_s22  ;;  %1723 = vrot.lane.b32.xlu0 %v750_v62, %s5650_s22  ;;  %v753_v31 = vld [vmem:[#allocation2 + $0xf2] sm:$0xff] }
 0x1ed   : > { %v6971_v30 = vpop.permute.xlu1 %1455  ;;  %v6973_v14 = vpop.permute.xlu0 %1461 }
 0x1ee   : > { %9288 = vst [vmem:[#allocation133_spill] sm:$0xff] %v6973_v14  ;;  %v757_v14 = vld [vmem:[#allocation2 + $0x122] sm:$0xff] }
 0x1ef   : > { %1721 = vrot.lane.b32.xlu1 %v749_v38, %s5650_s22  ;;  %1727 = vrot.lane.b32.xlu0 %v752_v47, %s5650_s22  ;;  %v755_v38 = vld [vmem:[#allocation2 + $0x10a] sm:$0xff] }
 0x1f1   : > { %v6977_v37 = vpop.permute.xlu1 %1459  ;;  %v6979_v2 = vpop.permute.xlu0 %1465 }
 0x1f2   : > { %9289 = vst [vmem:[#allocation134_spill] sm:$0xff] %v6977_v37  ;;  %9290 = vst [vmem:[#allocation135_spill] sm:$0xff] %v6979_v2  ;;  %v727_v2 = vld [vmem:[#allocation2 + $0x139] sm:$0xff] }
 0x1f3   : > { %1725 = vrot.lane.b32.xlu1 %v751_v9, %s5650_s22  ;;  %1731 = vrot.lane.b32.xlu0 %v754_v5, %s5650_s22  ;;  %v726_v9 = vld [vmem:[#allocation2 + $0x129] sm:$0xff] }
 0x1f5   : > { %v6983_v62 = vpop.permute.xlu1 %1463  ;;  %v6985_v8 = vpop.permute.xlu0 %1469 }
 0x1f6   : > { %9291 = vst [vmem:[#allocation136_spill] sm:$0xff] %v6983_v62  ;;  %9292 = vst [vmem:[#allocation137_spill] sm:$0xff] %v6985_v8  ;;  %v759_v8 = vld [vmem:[#allocation2 + $0x13a] sm:$0xff] }
 0x1f7   : > { %1729 = vrot.lane.b32.xlu1 %v753_v31, %s5650_s22  ;;  %1735 = vrot.lane.b32.xlu0 %v756_v27, %s5650_s22  ;;  %v758_v31 = vld [vmem:[#allocation2 + $0x12a] sm:$0xff] }
 0x1f9   : > { %v6989_v47 = vpop.permute.xlu1 %1467  ;;  %v6991_v58 = vpop.permute.xlu0 %1473 }
 0x1fa   : > { %9293 = vst [vmem:[#allocation138_spill] sm:$0xff] %v6989_v47  ;;  %9294 = vst [vmem:[#allocation139_spill] sm:$0xff] %v6991_v58  ;;  %v729_v58 = vld [vmem:[#allocation2 + $0x151] sm:$0xff] }
 0x1fb   : > { %1733 = vrot.lane.b32.xlu1 %v755_v38, %s5650_s22  ;;  %1737 = vrot.lane.b32.xlu0 %v757_v14, %s5650_s22  ;;  %v728_v38 = vld [vmem:[#allocation2 + $0x141] sm:$0xff] }
 0x1fd   : > { %v6995_v5 = vpop.permute.xlu1 %1471  ;;  %v6997_v62 = vpop.permute.xlu0 %1477 }
 0x1fe   : > { %9295 = vst [vmem:[#allocation140_spill] sm:$0xff] %v6995_v5  ;;  %9296 = vst [vmem:[#allocation141_spill] sm:$0xff] %v6997_v62  ;;  %v761_v62 = vld [vmem:[#allocation2 + $0x152] sm:$0xff] }
 0x1ff   : > { %1611 = vrot.lane.b32.xlu1 %v726_v9, %s5649_s26  ;;  %1613 = vrot.lane.b32.xlu0 %v727_v2, %s5649_s26  ;;  %v760_v9 = vld [vmem:[#allocation2 + $0x142] sm:$0xff] }
 0x201   : > { %v7001_v27 = vpop.permute.xlu1 %1475  ;;  %v7003_v47 = vpop.permute.xlu0 %1481 }
 0x202   : > { %9297 = vst [vmem:[#allocation142_spill] sm:$0xff] %v7001_v27  ;;  %9298 = vst [vmem:[#allocation143_spill] sm:$0xff] %v7003_v47  ;;  %v731_v47 = vld [vmem:[#allocation2 + $0x169] sm:$0xff] }
 0x203   : > { %1739 = vrot.lane.b32.xlu1 %v758_v31, %s5650_s22  ;;  %1741 = vrot.lane.b32.xlu0 %v759_v8, %s5650_s22  ;;  %v730_v31 = vld [vmem:[#allocation2 + $0x159] sm:$0xff] }
 0x205   : > { %v7007_v14 = vpop.permute.xlu1 %1479  ;;  %v7009_v5 = vpop.permute.xlu0 %1485 }
 0x206   : > { %9299 = vst [vmem:[#allocation144_spill] sm:$0xff] %v7007_v14  ;;  %9300 = vst [vmem:[#allocation145_spill] sm:$0xff] %v7009_v5  ;;  %v763_v5 = vld [vmem:[#allocation2 + $0x16a] sm:$0xff] }
 0x207   : > { %1615 = vrot.lane.b32.xlu1 %v728_v38, %s5649_s26  ;;  %1617 = vrot.lane.b32.xlu0 %v729_v58, %s5649_s26  ;;  %v762_v38 = vld [vmem:[#allocation2 + $0x15a] sm:$0xff] }
 0x209   : > { %v7013_v2 = vpop.permute.xlu1 %1483  ;;  %v7015_v27 = vpop.permute.xlu0 %1489 }
 0x20a   : > { %9301 = vst [vmem:[#allocation146_spill] sm:$0xff] %v7013_v2  ;;  %9302 = vst [vmem:[#allocation147_spill] sm:$0xff] %v7015_v27 }
 0x20b   : > { %1743 = vrot.lane.b32.xlu1 %v760_v9, %s5650_s22  ;;  %1745 = vrot.lane.b32.xlu0 %v761_v62, %s5650_s22  ;;  %v732_v9 = vld [vmem:[#allocation2 + $0x171] sm:$0xff] }
 0x20d   : > { %v7019_v8 = vpop.permute.xlu1 %1487  ;;  %v7021_v14 = vpop.permute.xlu0 %1493 }
 0x20e   : > { %9303 = vst [vmem:[#allocation148_spill] sm:$0xff] %v7019_v8  ;;  %9304 = vst [vmem:[#allocation149_spill] sm:$0xff] %v7021_v14 }
 0x20f   : > { %1619 = vrot.lane.b32.xlu1 %v730_v31, %s5649_s26  ;;  %1621 = vrot.lane.b32.xlu0 %v731_v47, %s5649_s26  ;;  %v764_v31 = vld [vmem:[#allocation2 + $0x172] sm:$0xff] }
 0x211   : > { %v7025_v58 = vpop.permute.xlu1 %1491  ;;  %v7027_v2 = vpop.permute.xlu0 %1497 }
 0x212   : > { %9305 = vst [vmem:[#allocation150_spill] sm:$0xff] %v7025_v58  ;;  %9306 = vst [vmem:[#allocation151_spill] sm:$0xff] %v7027_v2 }
 0x213   : > { %1747 = vrot.lane.b32.xlu1 %v762_v38, %s5650_s22  ;;  %1749 = vrot.lane.b32.xlu0 %v763_v5, %s5650_s22  ;;  %v735_v38 = vld [vmem:[#allocation2 + $0x199] sm:$0xff] }
 0x215   : > { %v7031_v62 = vpop.permute.xlu1 %1495  ;;  %v7033_v27 = vpop.permute.xlu0 %1501 }
 0x216   : > { %9307 = vst [vmem:[#allocation152_spill] sm:$0xff] %v7031_v62  ;;  %9308 = vst [vmem:[#allocation153_spill] sm:$0xff] %v7033_v27 }
 0x217   : > { %1623 = vrot.lane.b32.xlu1 %v732_v9, %s5649_s26  ;;  %1625 = vrot.lane.b32.xlu0 %v6574_v56, %s5649_s26  ;;  %v767_v9 = vld [vmem:[#allocation2 + $0x19a] sm:$0xff] }
 0x219   : > { %v7038_v47 = vpop.permute.xlu1 %1499  ;;  %v7040_v14 = vpop.permute.xlu0 %1569 }
 0x21a   : > { %9309 = vst [vmem:[#allocation154_spill] sm:$0xff] %v7038_v47 }
 0x21b   : > { %1751 = vrot.lane.b32.xlu1 %v764_v31, %s5650_s22  ;;  %1753 = vrot.lane.b32.xlu0 %v6706_v21, %s5650_s22  ;;  %v736_v31 = vld [vmem:[#allocation2 + $0x1a1] sm:$0xff] }
 0x21d   : > { %v7045_v5 = vpop.permute.xlu1 %1503  ;;  %v7047_v2 = vpop.permute.xlu0 %1573 }
 0x21e   : > { %9310 = vst [vmem:[#allocation155_spill] sm:$0xff] %v7045_v5 }
 0x21f   : > { %1627 = vrot.lane.b32.xlu1 %v6588_v60, %s5649_s26  ;;  %1629 = vrot.lane.b32.xlu0 %v735_v38, %s5649_s26  ;;  %v768_v60 = vld [vmem:[#allocation2 + $0x1a2] sm:$0xff] }
 0x221   : > { %v7052_v56 = vpop.permute.xlu1 %1571  ;;  %v7054_v27 = vpop.permute.xlu0 %1577 }
 0x223   : > { %1755 = vrot.lane.b32.xlu1 %v6720_v28, %s5650_s22  ;;  %1757 = vrot.lane.b32.xlu0 %v767_v9, %s5650_s22 }
 0x225   : > { %v7059_v21 = vpop.permute.xlu1 %1575  ;;  %v7061_v5 = vpop.permute.xlu0 %1581 }
 0x227   : > { %1631 = vrot.lane.b32.xlu1 %v736_v31, %s5649_s26 }
 0x229   : > { %v7064_v47 = vpop.permute.xlu1 %1579  ;;  %v7066_v38 = vpop.permute.xlu0 %1585 }
 0x22a   : > { %9311 = vst [vmem:[#allocation156_spill] sm:$0xff] %v7066_v38  ;;  %v481_v38 = vld [vmem:[#allocation2 + $0x8] sm:$0xff] }
 0x22b   : > { %1759 = vrot.lane.b32.xlu1 %v768_v60, %s5650_s22  ;;  %v480_v60 = vld [vmem:[#allocation2] sm:$0xff] }
 0x22d   : > { %v7069_v62 = vpop.permute.xlu1 %1583  ;;  %v7071_v58 = vpop.permute.xlu0 %1589 }
 0x22e   : > { %9312 = vst [vmem:[#allocation157_spill] sm:$0xff] %v7071_v58  ;;  %v9322_v58 = vld [vmem:[#allocation4_spill] sm:$0xff] }
 0x231   : > { %v7073_v28 = vpop.permute.xlu1 %1587  ;;  %v7075_v9 = vpop.permute.xlu0 %1593 }
 0x232   : > { %9313 = vst [vmem:[#allocation158_spill] sm:$0xff] %v7073_v28  ;;  %9314 = vst [vmem:[#allocation159_spill] sm:$0xff] %v7075_v9  ;;  %v1793_v9 = vsel %vm360_vm0, %v480_v60, %v9322_v58  ;;  %v5585_v28 = vld [vmem:[#allocation2 + $0x18] sm:$0xff] }
 0x235   : > { %v7077_v8 = vpop.permute.xlu1 %1591  ;;  %v7079_v42 = vpop.permute.xlu0 %1597 }
 0x236   : > { %9315 = vst [vmem:[#allocation160_spill] sm:$0xff] %v7077_v8  ;;  %9316 = vst [vmem:[#allocation161_spill] sm:$0xff] %v7079_v42  ;;  %v9324_v42 = vld [vmem:[#allocation5_spill] sm:$0xff] }
 0x239   : > { %v7081_v31 = vpop.permute.xlu1 %1595  ;;  %v7083_v34 = vpop.permute.xlu0 %1601 }
 0x23a   : > { %9317 = vst [vmem:[#allocation162_spill] sm:$0xff] %v7081_v31  ;;  %9318 = vst [vmem:[#allocation163_spill] sm:$0xff] %v7083_v34  ;;  %v1794_v31 = vsel %vm360_vm0, %v481_v38, %v9324_v42  ;;  %v9325_v34 = vld [vmem:[#allocation7_spill] sm:$0xff]  ;;  %v5587_v38 = vld [vmem:[#allocation2 + $0x20] sm:$0xff] }
 0x23b   : > { %v1827_v58 = vsel %vm1825_vm1, %v1794_v31, %v9328_v12 }
 0x23d   : > { %v7085_v17 = vpop.permute.xlu1 %1599  ;;  %v7087_v4 = vpop.permute.xlu0 %1605 }
 0x23e   : > { %9319 = vst [vmem:[#allocation164_spill] sm:$0xff] %v7085_v17  ;;  %9320 = vst [vmem:[#allocation165_spill] sm:$0xff] %v7087_v4  ;;  %v1795_v17 = vsel %vm360_vm0, %v5585_v28, %v9325_v34  ;;  %v1826_v4 = vsel %vm1825_vm1, %v1793_v9, %v9326_v51  ;;  %v1860_v51 = vsel %vm1858_vm3, %v1827_v58, %v6572_v55  ;;  %v9331_v9 = vld [vmem:[#allocation66_spill] sm:$0xff] }
 0x23f   : > { %v1859_v60 = vsel %vm1858_vm3, %v1826_v4, %v6558_v52  ;;  %v1828_v52 = vsel %vm1825_vm1, %v1795_v17, %v9331_v9  ;;  %v1893_v4 = vsel %vm1891_vm4, %v1860_v51, %v6704_v29  ;;  %v9332_v58 = vld [vmem:[#allocation70_spill] sm:$0xff]  ;;  %v9334_v9 = vld [vmem:[#allocation15_spill] sm:$0xff] }
 0x240   : > { %v1892_v28 = vsel %vm1891_vm4, %v1859_v60, %v6690_v22  ;;  %v1926_v55 = vsel %vm1924_vm5, %v1893_v4, %v6836_v44  ;;  %v1861_v17 = vsel %vm1858_vm3, %v1828_v52, %v6566_v54  ;;  %v9333_v54 = vld [vmem:[#allocation14_spill] sm:$0xff]  ;;  %v9335_v52 = vld [vmem:[#allocation69_spill] sm:$0xff] }
 0x241   : > { %v7089_v37 = vpop.permute.xlu1 %1603  ;;  %v7093_v8 = vpop.permute.xlu0 %1609  ;;  %v1959_v29 = vsel %vm1957_vm6, %v1926_v55, %v6953_v48 }
 0x242   : > { %9321 = vst [vmem:[#allocation166_spill] sm:$0xff] %v7089_v37  ;;  %9323 = vst [vmem:[#allocation4_spill] sm:$0xff] %v7093_v8  ;;  %v9327_v37 = vld [vmem:[#allocation9_spill] sm:$0xff]  ;;  %v9329_v8 = vld [vmem:[#allocation11_spill] sm:$0xff]  ;;  %v1992_v51 = vsel %vm1990_vm7, %v1959_v29, %v7052_v56 }
 0x243   : > { %v1797_v6 = vsel %vm360_vm0, %v5586_v26, %v9327_v37  ;;  %v1796_v34 = vsel %vm360_vm0, %v5587_v38, %v9329_v8  ;;  %v5588_v26 = vld [vmem:[#allocation2 + $0x48] sm:$0xff]  ;;  %v9330_v37 = vld [vmem:[#allocation12_spill] sm:$0xff]  ;;  %v1925_v8 = vsel %vm1924_vm5, %v1892_v28, %v6822_v10  ;;  %v5589_v28 = vld [vmem:[#allocation2 + $0x38] sm:$0xff] }
 0x244   : > { %v1799_v12 = vsel %vm360_vm0, %v5588_v26, %v9330_v37  ;;  %v1958_v22 = vsel %vm1957_vm6, %v1925_v8, %v6943_v15  ;;  %v1829_v60 = vsel %vm1825_vm1, %v1796_v34, %v9332_v58  ;;  %v1894_v15 = vsel %vm1891_vm4, %v1861_v17, %v6698_v24  ;;  %v5590_v24 = vld [vmem:[#allocation2 + $0x60] sm:$0xff]  ;;  %v5591_v29 = vld [vmem:[#allocation2 + $0x50] sm:$0xff] }
 0x245   : > { %v7107_v42 = vpop.permute.xlu1 %1607  ;;  %v1700_v31 = vpop.permute.xlu0 %1699  ;;  %v1991_v10 = vsel %vm1990_vm7, %v1958_v22, %v7040_v14  ;;  %v1862_v44 = vsel %vm1858_vm3, %v1829_v60, %v6582_v57  ;;  %v1798_v26 = vsel %vm360_vm0, %v5589_v28, %v9333_v54  ;;  %v1927_v14 = vsel %vm1924_vm5, %v1894_v15, %v6830_v11  ;;  %v9336_v11 = vld [vmem:[#allocation72_spill] sm:$0xff]  ;;  %v9339_v15 = vld [vmem:[#allocation71_spill] sm:$0xff] }
 0x246   : > { %v1895_v48 = vsel %vm1891_vm4, %v1862_v44, %v6714_v35  ;;  %v2025_v57 = vsel %vm2023_vm8, %v1992_v51, %v1700_v31  ;;  %v1801_v56 = vsel %vm360_vm0, %v5590_v24, %v9334_v9  ;;  %v1830_v4 = vsel %vm1825_vm1, %v1797_v6, %v9335_v52  ;;  %v9338_v44 = vld [vmem:[#allocation18_spill] sm:$0xff]  ;;  %v9342_v9 = vld [vmem:[#allocation73_spill] sm:$0xff] }
 0x247   : > { %v1928_v8 = vsel %vm1924_vm5, %v1895_v48, %v6843_v39  ;;  %v1960_v35 = vsel %vm1957_vm6, %v1927_v14, %v6949_v7  ;;  %v1831_v31 = vsel %vm1825_vm1, %v1798_v26, %v9336_v11  ;;  %v1863_v55 = vsel %vm1858_vm3, %v1830_v4, %v6576_v50  ;;  %v9337_v50 = vld [vmem:[#allocation17_spill] sm:$0xff]  ;;  %v9341_v24 = vld [vmem:[#allocation22_spill] sm:$0xff] }
 0x248   : > { %v1961_v22 = vsel %vm1957_vm6, %v1928_v8, %v6959_v3  ;;  %v1993_v6 = vsel %vm1990_vm7, %v1960_v35, %v7047_v2  ;;  %v1864_v39 = vsel %vm1858_vm3, %v1831_v31, %v6592_v61  ;;  %v1896_v7 = vsel %vm1891_vm4, %v1863_v55, %v6708_v18  ;;  %v5592_v18 = vld [vmem:[#allocation2 + $0x78] sm:$0xff]  ;;  %v5593_v14 = vld [vmem:[#allocation2 + $0x68] sm:$0xff]  ;;  %v5595_v55 = vld [vmem:[#allocation2 + $0x80] sm:$0xff] }
 0x249   : > { %v1698_v38 = vpop.permute.xlu1 %1697  ;;  %v1704_v37 = vpop.permute.xlu0 %1703  ;;  %v1994_v60 = vsel %vm1990_vm7, %v1961_v22, %v7059_v21  ;;  %v1897_v3 = vsel %vm1891_vm4, %v1864_v39, %v6724_v49  ;;  %v1929_v2 = vsel %vm1924_vm5, %v1896_v7, %v6838_v43  ;;  %v1803_v21 = vsel %vm360_vm0, %v5592_v18, %v9338_v44  ;;  %v9345_v7 = vld [vmem:[#allocation55_spill] sm:$0xff]  ;;  %v9351_v18 = vld [vmem:[#allocation97_spill] sm:$0xff] }
 0x24a   : > { %v2024_v34 = vsel %vm2023_vm8, %v1991_v10, %v1698_v38  ;;  %v1800_v10 = vsel %vm360_vm0, %v5591_v29, %v9337_v50  ;;  %v2027_v61 = vsel %vm2023_vm8, %v1994_v60, %v1704_v37  ;;  %v1832_v51 = vsel %vm1825_vm1, %v1799_v12, %v9339_v15  ;;  %v9348_v50 = vld [vmem:[#allocation95_spill] sm:$0xff] }
 0x24b   : > { %5390 = vmatprep.mubr.msk.f32.mxu0 %vm2061_vm9, %v2024_v34  ;;  %v1930_v34 = vsel %vm1924_vm5, %v1897_v3, %v6850_v33  ;;  %v1962_v49 = vsel %vm1957_vm6, %v1929_v2, %v6955_v13  ;;  %v1833_v43 = vsel %vm1825_vm1, %v1800_v10, %v6468_v0  ;;  %v1865_v28 = vsel %vm1858_vm3, %v1832_v51, %v6584_v59  ;;  %v9340_v59 = vld [vmem:[#allocation20_spill] sm:$0xff]  ;;  %v9349_v3 = vld [vmem:[#allocation134_spill] sm:$0xff] }
 0x24c   : > { %5391 = vmatmul.mubr.msk.f32.vlgmr.msra.gmra.mxu0 %vm2061_vm9, %v2025_v57  ;;  %v1963_v54 = vsel %vm1957_vm6, %v1930_v34, %v6965_v45  ;;  %v1995_v12 = vsel %vm1990_vm7, %v1962_v49, %v7054_v27  ;;  %v1866_v33 = vsel %vm1858_vm3, %v1833_v43, %v6600_v63  ;;  %v1898_v13 = vsel %vm1891_vm4, %v1865_v28, %v6716_v23  ;;  %v5594_v23 = vld [vmem:[#allocation2 + $0x90] sm:$0xff]  ;;  %v5597_v43 = vld [vmem:[#allocation2 + $0x98] sm:$0xff]  ;;  %v9354_v28 = vld [vmem:[#allocation28_spill] sm:$0xff] }
 0x24d   : > { %v1702_v58 = vpop.permute.xlu1 %1701  ;;  %v1708_v38 = vpop.permute.xlu0 %1707  ;;  %v1996_v48 = vsel %vm1990_vm7, %v1963_v54, %v7064_v47  ;;  %v1802_v57 = vsel %vm360_vm0, %v5593_v14, %v9340_v59  ;;  %v1899_v45 = vsel %vm1891_vm4, %v1866_v33, %v6732_v46  ;;  %v1931_v27 = vsel %vm1924_vm5, %v1898_v13, %v6845_v40  ;;  %v9353_v51 = vld [vmem:[#allocation158_spill] sm:$0xff]  ;;  %v9356_v33 = vld [vmem:[#allocation53_spill] sm:$0xff]  ;;  %v5598_v14 = vld [vmem:[#allocation2 + $0xc0] sm:$0xff] }
 0x24e   : > { %v2026_v17 = vsel %vm2023_vm8, %v1993_v6, %v1702_v58  ;;  %v2029_v63 = vsel %vm2023_vm8, %v1996_v48, %v1708_v38  ;;  %v1805_v47 = vsel %vm360_vm0, %v5594_v23, %v9341_v24  ;;  %v1834_v52 = vsel %vm1825_vm1, %v1801_v56, %v9342_v9  ;;  %v9344_v58 = vld [vmem:[#allocation26_spill] sm:$0xff]  ;;  %v9360_v23 = vld [vmem:[#allocation133_spill] sm:$0xff] }
 0x24f   : > { %5393 = vmatprep.mubr.msk.f32.mxu0 %vm2061_vm9, %v2026_v17  ;;  %v1932_v4 = vsel %vm1924_vm5, %v1899_v45, %v6856_v41  ;;  %v1964_v46 = vsel %vm1957_vm6, %v1931_v27, %v6961_v20  ;;  %v1835_v40 = vsel %vm1825_vm1, %v1802_v57, %v6476_v25  ;;  %v1867_v8 = vsel %vm1858_vm3, %v1834_v52, %v6594_v53  ;;  %v9343_v53 = vld [vmem:[#allocation24_spill] sm:$0xff]  ;;  %v9357_v59 = vld [vmem:[#allocation30_spill] sm:$0xff]  ;;  %v9361_v9 = vld [vmem:[#allocation77_spill] sm:$0xff] }
 0x250   : > { %5394 = vmatmul.mubr.msk.f32.gmra.mxu0 %vm2061_vm9, %v2027_v61  ;;  %v1965_v35 = vsel %vm1957_vm6, %v1932_v4, %v6971_v30  ;;  %v1997_v56 = vsel %vm1990_vm7, %v1964_v46, %v7061_v5  ;;  %v1868_v41 = vsel %vm1858_vm3, %v1835_v40, %v6608_v1  ;;  %v1900_v20 = vsel %vm1891_vm4, %v1867_v8, %v6726_v16  ;;  %v5596_v16 = vld [vmem:[#allocation2 + $0xa8] sm:$0xff]  ;;  %v9346_v17 = vld [vmem:[#allocation132_spill] sm:$0xff]  ;;  %v9358_v45 = vld [vmem:[#allocation74_spill] sm:$0xff] }
 0x251   : > { %v1706_v26 = vpop.permute.xlu1 %1705  ;;  %v1712_v37 = vpop.permute.xlu0 %1711  ;;  %v1998_v31 = vsel %vm1990_vm7, %v1965_v35, %v7069_v62  ;;  %v1804_v22 = vsel %vm360_vm0, %v5595_v55, %v9343_v53  ;;  %v1901_v30 = vsel %vm1891_vm4, %v1868_v41, %v6740_v19  ;;  %v1933_v5 = vsel %vm1924_vm5, %v1900_v20, %v6852_v32  ;;  %v9347_v32 = vld [vmem:[#allocation75_spill] sm:$0xff]  ;;  %v9350_v61 = vld [vmem:[#allocation156_spill] sm:$0xff]  ;;  %v9364_v35 = vld [vmem:[#allocation157_spill] sm:$0xff] }
 0x252   : > { %v2028_v0 = vsel %vm2023_vm8, %v1995_v12, %v1706_v26  ;;  %v2031_v1 = vsel %vm2023_vm8, %v1998_v31, %v1712_v37  ;;  %v1807_v62 = vsel %vm360_vm0, %v5596_v16, %v9344_v58  ;;  %v1836_v39 = vsel %vm1825_vm1, %v1803_v21, %v6470_v36  ;;  %v9352_v21 = vld [vmem:[#allocation6_spill] sm:$0xff]  ;;  %v9362_v4 = vld [vmem:[#allocation96_spill] sm:$0xff]  ;;  %v9370_v16 = vld [vmem:[#allocation57_spill] sm:$0xff] }
 0x253   : > { %5396 = vmatprep.mubr.msk.f32.mxu0 %vm2061_vm9, %v2028_v0  ;;  %v1934_v60 = vsel %vm1924_vm5, %v1901_v30, %v9345_v7  ;;  %v1966_v19 = vsel %vm1957_vm6, %v1933_v5, %v9346_v17  ;;  %v1837_v29 = vsel %vm1825_vm1, %v1804_v22, %v9347_v32  ;;  %v1869_v10 = vsel %vm1858_vm3, %v1836_v39, %v9348_v50  ;;  %v9355_v12 = vld [vmem:[#allocation10_spill] sm:$0xff]  ;;  %v9363_v40 = vld [vmem:[#allocation136_spill] sm:$0xff]  ;;  %v9373_v50 = vld [vmem:[#allocation63_spill] sm:$0xff] }
 0x254   : > { %5397 = vmatmul.mubr.msk.f32.gmra.mxu0 %vm2061_vm9, %v2029_v63  ;;  %v1967_v2 = vsel %vm1957_vm6, %v1934_v60, %v9349_v3  ;;  %v1999_v36 = vsel %vm1990_vm7, %v1966_v19, %v9350_v61  ;;  %v1870_v44 = vsel %vm1858_vm3, %v1837_v29, %v9351_v18  ;;  %v1902_v15 = vsel %vm1891_vm4, %v1869_v10, %v9352_v21  ;;  %v9359_v63 = vld [vmem:[#allocation59_spill] sm:$0xff]  ;;  %v9366_v20 = vld [vmem:[#allocation8_spill] sm:$0xff]  ;;  %v5599_v22 = vld [vmem:[#allocation2 + $0xb0] sm:$0xff] }
 0x255   : > { %v1710_v11 = vpop.permute.xlu1 %1709  ;;  %v1716_v6 = vpop.permute.xlu0 %1715  ;;  %v2000_v34 = vsel %vm1990_vm7, %v1967_v2, %v9353_v51  ;;  %v1806_v54 = vsel %vm360_vm0, %v5597_v43, %v9354_v28  ;;  %v1903_v26 = vsel %vm1891_vm4, %v1870_v44, %v9355_v12  ;;  %v1935_v13 = vsel %vm1924_vm5, %v1902_v15, %v9356_v33  ;;  %v9368_v30 = vld [vmem:[#allocation32_spill] sm:$0xff]  ;;  %v5600_v60 = vld [vmem:[#allocation2 + $0xd8] sm:$0xff]  ;;  %v9371_v17 = vld [vmem:[#allocation34_spill] sm:$0xff] }
 0x256   : > { %v2030_v25 = vsel %vm2023_vm8, %v1997_v56, %v1710_v11  ;;  %v2033_v48 = vsel %vm2023_vm8, %v2000_v34, %v1716_v6  ;;  %v1809_v57 = vsel %vm360_vm0, %v5598_v14, %v9357_v59  ;;  %v1838_v27 = vsel %vm1825_vm1, %v1805_v47, %v9358_v45  ;;  %v9365_v11 = vld [vmem:[#allocation99_spill] sm:$0xff]  ;;  %v9372_v32 = vld [vmem:[#allocation76_spill] sm:$0xff]  ;;  %v9377_v44 = vld [vmem:[#allocation138_spill] sm:$0xff] }
 0x257   : > { %5399 = vmatprep.mubr.msk.f32.mxu0 %vm2061_vm9, %v2030_v25  ;;  %v1936_v37 = vsel %vm1924_vm5, %v1903_v26, %v9359_v63  ;;  %v1968_v24 = vsel %vm1957_vm6, %v1935_v13, %v9360_v23  ;;  %v1839_v52 = vsel %vm1825_vm1, %v1806_v54, %v9361_v9  ;;  %v1871_v46 = vsel %vm1858_vm3, %v1838_v27, %v9362_v4  ;;  %v9367_v25 = vld [vmem:[#allocation160_spill] sm:$0xff]  ;;  %v9374_v3 = vld [vmem:[#allocation135_spill] sm:$0xff]  ;;  %v9379_v34 = vld [vmem:[#allocation101_spill] sm:$0xff] }
 0x258   : > { %5400 = vmatmul.mubr.msk.f32.gmra.mxu0 %vm2061_vm9, %v2031_v1  ;;  %v1969_v8 = vsel %vm1957_vm6, %v1936_v37, %v9363_v40  ;;  %v2001_v47 = vsel %vm1990_vm7, %v1968_v24, %v9364_v35  ;;  %v1872_v41 = vsel %vm1858_vm3, %v1839_v52, %v9365_v11  ;;  %v1904_v31 = vsel %vm1891_vm4, %v1871_v46, %v9366_v20  ;;  %v9369_v1 = vld [vmem:[#allocation16_spill] sm:$0xff]  ;;  %v9375_v61 = vld [vmem:[#allocation79_spill] sm:$0xff]  ;;  %v9380_v43 = vld [vmem:[#allocation13_spill] sm:$0xff] }
 0x259   : > { %v1714_v38 = vpop.permute.xlu1 %1713  ;;  %v1720_v0 = vpop.permute.xlu0 %1719  ;;  %v2002_v55 = vsel %vm1990_vm7, %v1969_v8, %v9367_v25  ;;  %v1808_v5 = vsel %vm360_vm0, %v5599_v22, %v9368_v30  ;;  %v1905_v6 = vsel %vm1891_vm4, %v1872_v41, %v9369_v1  ;;  %v1937_v58 = vsel %vm1924_vm5, %v1904_v31, %v9370_v16  ;;  %v9378_v15 = vld [vmem:[#allocation159_spill] sm:$0xff]  ;;  %v9381_v54 = vld [vmem:[#allocation162_spill] sm:$0xff]  ;;  %v5601_v33 = vld [vmem:[#allocation2 + $0xc8] sm:$0xff] }
 0x25a   : > { %v2032_v49 = vsel %vm2023_vm8, %v1999_v36, %v1714_v38  ;;  %v2035_v39 = vsel %vm2023_vm8, %v2002_v55, %v1720_v0  ;;  %v1811_v19 = vsel %vm360_vm0, %v5600_v60, %v9371_v17  ;;  %v1840_v29 = vsel %vm1825_vm1, %v1807_v62, %v9372_v32  ;;  %v9376_v38 = vld [vmem:[#allocation98_spill] sm:$0xff]  ;;  %v9382_v13 = vld [vmem:[#allocation36_spill] sm:$0xff]  ;;  %v9383_v0 = vld [vmem:[#allocation21_spill] sm:$0xff] }
 0x25b   : > { %5402 = vmatprep.mubr.msk.f32.mxu0 %vm2061_vm9, %v2032_v49  ;;  %v1938_v10 = vsel %vm1924_vm5, %v1905_v6, %v9373_v50  ;;  %v1970_v2 = vsel %vm1957_vm6, %v1937_v58, %v9374_v3  ;;  %v1841_v36 = vsel %vm1825_vm1, %v1808_v5, %v9375_v61  ;;  %v1873_v18 = vsel %vm1858_vm3, %v1840_v29, %v9376_v38  ;;  %v9384_v59 = vld [vmem:[#allocation61_spill] sm:$0xff]  ;;  %v5602_v37 = vld [vmem:[#allocation2 + $0xf0] sm:$0xff]  ;;  %v9387_v4 = vld [vmem:[#allocation68_spill] sm:$0xff] }
 0x25c   : > { %5403 = vmatmul.mubr.msk.f32.gmra.mxu0 %vm2061_vm9, %v2033_v48  ;;  %v1971_v21 = vsel %vm1957_vm6, %v1938_v10, %v9377_v44  ;;  %v2003_v62 = vsel %vm1990_vm7, %v1970_v2, %v9378_v15  ;;  %v1874_v49 = vsel %vm1858_vm3, %v1841_v36, %v9379_v34  ;;  %v1906_v28 = vsel %vm1891_vm4, %v1873_v18, %v9380_v43  ;;  %v9385_v23 = vld [vmem:[#allocation38_spill] sm:$0xff]  ;;  %v9388_v40 = vld [vmem:[#allocation137_spill] sm:$0xff]  ;;  %v9391_v41 = vld [vmem:[#allocation140_spill] sm:$0xff] }
 0x25d   : > { %v1718_v56 = vpop.permute.xlu1 %1717  ;;  %v1724_v7 = vpop.permute.xlu0 %1723  ;;  %v2004_v12 = vsel %vm1990_vm7, %v1971_v21, %v9381_v54  ;;  %v1810_v48 = vsel %vm360_vm0, %v5601_v33, %v9382_v13  ;;  %v1907_v14 = vsel %vm1891_vm4, %v1874_v49, %v9383_v0  ;;  %v1939_v45 = vsel %vm1924_vm5, %v1906_v28, %v9384_v59  ;;  %v9386_v9 = vld [vmem:[#allocation78_spill] sm:$0xff]  ;;  %v9389_v35 = vld [vmem:[#allocation81_spill] sm:$0xff]  ;;  %v9393_v55 = vld [vmem:[#allocation103_spill] sm:$0xff] }
 0x25e   : > { %v2034_v53 = vsel %vm2023_vm8, %v2001_v47, %v1718_v56  ;;  %v2037_v27 = vsel %vm2023_vm8, %v2004_v12, %v1724_v7  ;;  %v1813_v24 = vsel %vm360_vm0, %v5602_v37, %v9385_v23  ;;  %v1842_v52 = vsel %vm1825_vm1, %v1809_v57, %v9386_v9  ;;  %v9390_v56 = vld [vmem:[#allocation100_spill] sm:$0xff]  ;;  %v9392_v31 = vld [vmem:[#allocation161_spill] sm:$0xff]  ;;  %v9394_v22 = vld [vmem:[#allocation19_spill] sm:$0xff] }
 0x25f   : > { %5405 = vmatprep.mubr.msk.f32.mxu0 %vm2061_vm9, %v2034_v53  ;;  %v1940_v46 = vsel %vm1924_vm5, %v1907_v14, %v9387_v4  ;;  %v1972_v8 = vsel %vm1957_vm6, %v1939_v45, %v9388_v40  ;;  %v1843_v47 = vsel %vm1825_vm1, %v1810_v48, %v9389_v35  ;;  %v1875_v11 = vsel %vm1858_vm3, %v1842_v52, %v9390_v56  ;;  %v9395_v5 = vld [vmem:[#allocation164_spill] sm:$0xff]  ;;  %v9397_v7 = vld [vmem:[#allocation25_spill] sm:$0xff]  ;;  %v9400_v2 = vld [vmem:[#allocation82_spill] sm:$0xff] }
 0x260   : > { %5406 = vmatmul.mubr.msk.f32.gmra.mxu0 %vm2061_vm9, %v2035_v39  ;;  %v1973_v20 = vsel %vm1957_vm6, %v1940_v46, %v9391_v41  ;;  %v2005_v57 = vsel %vm1990_vm7, %v1972_v8, %v9392_v31  ;;  %v1876_v53 = vsel %vm1858_vm3, %v1843_v47, %v9393_v55  ;;  %v1908_v30 = vsel %vm1891_vm4, %v1875_v11, %v9394_v22  ;;  %v5603_v16 = vld [vmem:[#allocation2 + $0xe0] sm:$0xff]  ;;  %v9398_v17 = vld [vmem:[#allocation65_spill] sm:$0xff]  ;;  %v9401_v36 = vld [vmem:[#allocation118_spill] sm:$0xff] }
 0x261   : > { %v1722_v51 = vpop.permute.xlu1 %1721  ;;  %v1728_v63 = vpop.permute.xlu0 %1727  ;;  %v2006_v1 = vsel %vm1990_vm7, %v1973_v20, %v9395_v5  ;;  %v9396_v58 = vld [vmem:[#allocation40_spill] sm:$0xff]  ;;  %v1909_v60 = vsel %vm1891_vm4, %v1876_v53, %v9397_v7  ;;  %v1941_v32 = vsel %vm1924_vm5, %v1908_v30, %v9398_v17  ;;  %v1846_v61 = vsel %vm1825_vm1, %v1813_v24, %v9400_v2  ;;  %v9402_v18 = vld [vmem:[#allocation139_spill] sm:$0xff]  ;;  %v9405_v34 = vld [vmem:[#allocation142_spill] sm:$0xff] }
 0x262   : > { %v2036_v26 = vsel %vm2023_vm8, %v2003_v62, %v1722_v51  ;;  %v1812_v39 = vsel %vm360_vm0, %v5603_v16, %v9396_v58  ;;  %v2039_v29 = vsel %vm2023_vm8, %v2006_v1, %v1728_v63  ;;  %v9399_v10 = vld [vmem:[#allocation80_spill] sm:$0xff]  ;;  %v1942_v38 = vsel %vm1924_vm5, %v1909_v60, %v9401_v36  ;;  %v9403_v21 = vld [vmem:[#allocation83_spill] sm:$0xff]  ;;  %v9404_v62 = vld [vmem:[#allocation102_spill] sm:$0xff] }
 0x263   : > { %5408 = vmatprep.mubr.msk.f32.mxu0 %vm2061_vm9, %v2036_v26  ;;  %v1844_v3 = vsel %vm1825_vm1, %v1811_v19, %v9399_v10  ;;  %v1974_v44 = vsel %vm1957_vm6, %v1941_v32, %v9402_v18  ;;  %v1845_v15 = vsel %vm1825_vm1, %v1812_v39, %v9403_v21  ;;  %v1975_v19 = vsel %vm1957_vm6, %v1942_v38, %v9405_v34  ;;  %v9406_v49 = vld [vmem:[#allocation163_spill] sm:$0xff]  ;;  %v9407_v54 = vld [vmem:[#allocation105_spill] sm:$0xff]  ;;  %v9409_v13 = vld [vmem:[#allocation166_spill] sm:$0xff] }
 0x264   : > { %5409 = vmatmul.mubr.msk.f32.gmra.mxu0 %vm2061_vm9, %v2037_v27  ;;  %v1877_v51 = vsel %vm1858_vm3, %v1844_v3, %v9404_v62  ;;  %v2007_v43 = vsel %vm1990_vm7, %v1974_v44, %v9406_v49  ;;  %v1878_v12 = vsel %vm1858_vm3, %v1845_v15, %v9407_v54  ;;  %v9408_v26 = vld [vmem:[#allocation23_spill] sm:$0xff]  ;;  %v2008_v48 = vsel %vm1990_vm7, %v1975_v19, %v9409_v13  ;;  %v9410_v14 = vld [vmem:[#allocation104_spill] sm:$0xff]  ;;  %v9411_v45 = vld [vmem:[#allocation29_spill] sm:$0xff] }
 0x265   : > { %v1726_v25 = vpop.permute.xlu1 %1725  ;;  %v1732_v50 = vpop.permute.xlu0 %1731  ;;  %v1910_v33 = vsel %vm1891_vm4, %v1877_v51, %v9408_v26  ;;  %v1879_v59 = vsel %vm1858_vm3, %v1846_v61, %v9410_v14  ;;  %v1911_v27 = vsel %vm1891_vm4, %v1878_v12, %v9411_v45  ;;  %v9412_v63 = vld [vmem:[#allocation117_spill] sm:$0xff]  ;;  %v9413_v9 = vld [vmem:[#allocation27_spill] sm:$0xff]  ;;  %v9414_v4 = vld [vmem:[#allocation120_spill] sm:$0xff] }
 0x266   : > { %v2038_v6 = vsel %vm2023_vm8, %v2005_v57, %v1726_v25  ;;  %v1943_v37 = vsel %vm1924_vm5, %v1910_v33, %v9412_v63  ;;  %v2041_v23 = vsel %vm2023_vm8, %v2008_v48, %v1732_v50  ;;  %v1912_v52 = vsel %vm1891_vm4, %v1879_v59, %v9413_v9  ;;  %v9415_v40 = vld [vmem:[#allocation141_spill] sm:$0xff]  ;;  %v9416_v35 = vld [vmem:[#allocation119_spill] sm:$0xff]  ;;  %v9417_v56 = vld [vmem:[#allocation144_spill] sm:$0xff] }
 0x267   : > { %5411 = vmatprep.mubr.msk.f32.mxu0 %vm2061_vm9, %v2038_v6  ;;  %v1944_v46 = vsel %vm1924_vm5, %v1911_v27, %v9414_v4  ;;  %v1976_v8 = vsel %vm1957_vm6, %v1943_v37, %v9415_v40  ;;  %v1945_v47 = vsel %vm1924_vm5, %v1912_v52, %v9416_v35  ;;  %v9418_v41 = vld [vmem:[#allocation165_spill] sm:$0xff]  ;;  %v9419_v57 = vld [vmem:[#allocation143_spill] sm:$0xff]  ;;  %v9420_v30 = vld [vmem:[#allocation44_spill] sm:$0xff] }
 0x268   : > { %5412 = vmatmul.mubr.msk.f32.gmra.mxu0 %vm2061_vm9, %v2039_v29  ;;  %v1977_v11 = vsel %vm1957_vm6, %v1944_v46, %v9417_v56  ;;  %v2009_v20 = vsel %vm1990_vm7, %v1976_v8, %v9418_v41  ;;  %v1978_v25 = vsel %vm1957_vm6, %v1945_v47, %v9419_v57  ;;  %v5604_v22 = vld [vmem:[#allocation2 + $0xf8] sm:$0xff]  ;;  %v9421_v1 = vld [vmem:[#allocation4_spill] sm:$0xff]  ;;  %v9422_v39 = vld [vmem:[#allocation85_spill] sm:$0xff] }
 0x269   : > { %v1730_v28 = vpop.permute.xlu1 %1729  ;;  %v1736_v24 = vpop.permute.xlu0 %1735  ;;  %v2010_v55 = vsel %vm1990_vm7, %v1977_v11, %v7107_v42  ;;  %v1814_v5 = vsel %vm360_vm0, %v5604_v22, %v9420_v30  ;;  %v2011_v6 = vsel %vm1990_vm7, %v1978_v25, %v9421_v1  ;;  %v5605_v42 = vld [vmem:[#allocation2 + $0x108] sm:$0xff]  ;;  %v9423_v17 = vld [vmem:[#allocation42_spill] sm:$0xff]  ;;  %v9424_v29 = vld [vmem:[#allocation107_spill] sm:$0xff] }
 0x26a   : > { %v2040_v0 = vsel %vm2023_vm8, %v2007_v43, %v1730_v28  ;;  %v2043_v16 = vsel %vm2023_vm8, %v2010_v55, %v1736_v24  ;;  %v1847_v7 = vsel %vm1825_vm1, %v1814_v5, %v9422_v39  ;;  %v1815_v32 = vsel %vm360_vm0, %v5605_v42, %v9423_v17  ;;  %v9425_v3 = vld [vmem:[#allocation84_spill] sm:$0xff]  ;;  %v9426_v61 = vld [vmem:[#allocation33_spill] sm:$0xff]  ;;  %v9427_v38 = vld [vmem:[#allocation106_spill] sm:$0xff] }
 0x26b   : > { %5414 = vmatprep.mubr.msk.f32.mxu1 %vm2061_vm9, %v2040_v0  ;;  %v1880_v50 = vsel %vm1858_vm3, %v1847_v7, %v9424_v29  ;;  %v1848_v2 = vsel %vm1825_vm1, %v1815_v32, %v9425_v3  ;;  %v9428_v44 = vld [vmem:[#allocation122_spill] sm:$0xff]  ;;  %v9429_v62 = vld [vmem:[#allocation31_spill] sm:$0xff]  ;;  %v9431_v49 = vld [vmem:[#allocation121_spill] sm:$0xff] }
 0x26c   : > { %5415 = vmatmul.mubr.msk.f32.vlgmr.msra.gmra.mxu1 %vm2061_vm9, %v2041_v23  ;;  %v1913_v36 = vsel %vm1891_vm4, %v1880_v50, %v9426_v61  ;;  %v1881_v18 = vsel %vm1858_vm3, %v1848_v2, %v9427_v38  ;;  %v9430_v34 = vld [vmem:[#allocation146_spill] sm:$0xff]  ;;  %v9432_v12 = vld [vmem:[#allocation145_spill] sm:$0xff]  ;;  %v9433_v48 = vld [vmem:[#allocation48_spill] sm:$0xff] }
 0x26d   : > { %v1734_v31 = vpop.permute.xlu1 %1733  ;;  %v1738_v58 = vpop.permute.xlu0 %1737  ;;  %v1946_v21 = vsel %vm1924_vm5, %v1913_v36, %v9428_v44  ;;  %v1914_v51 = vsel %vm1891_vm4, %v1881_v18, %v9429_v62  ;;  %v5606_v13 = vld [vmem:[#allocation2 + $0x110] sm:$0xff]  ;;  %v9434_v45 = vld [vmem:[#allocation87_spill] sm:$0xff]  ;;  %v5607_v37 = vld [vmem:[#allocation2 + $0x120] sm:$0xff] }
 0x26e   : > { %v2042_v53 = vsel %vm2023_vm8, %v2009_v20, %v1734_v31  ;;  %v2044_v60 = vsel %vm2023_vm8, %v2011_v6, %v1738_v58  ;;  %v1979_v19 = vsel %vm1957_vm6, %v1946_v21, %v9430_v34  ;;  %v1947_v43 = vsel %vm1924_vm5, %v1914_v51, %v9431_v49  ;;  %v9435_v23 = vld [vmem:[#allocation46_spill] sm:$0xff]  ;;  %v9436_v9 = vld [vmem:[#allocation109_spill] sm:$0xff]  ;;  %v9439_v47 = vld [vmem:[#allocation108_spill] sm:$0xff] }
 0x26f   : > { %5417 = vmatprep.mubr.msk.f32.mxu1 %vm2061_vm9, %v2042_v53  ;;  %v1980_v26 = vsel %vm1957_vm6, %v1947_v43, %v9432_v12  ;;  %v1816_v0 = vsel %vm360_vm0, %v5606_v13, %v9433_v48  ;;  %v1817_v24 = vsel %vm360_vm0, %v5607_v37, %v9435_v23  ;;  %v9437_v46 = vld [vmem:[#allocation86_spill] sm:$0xff]  ;;  %v9438_v8 = vld [vmem:[#allocation37_spill] sm:$0xff]  ;;  %v9440_v11 = vld [vmem:[#allocation124_spill] sm:$0xff] }
 0x270   : > { %5418 = vmatmul.mubr.msk.f32.gmra.mxu1 %vm2061_vm9, %v2043_v16  ;;  %v1849_v27 = vsel %vm1825_vm1, %v1816_v0, %v9434_v45  ;;  %v1850_v40 = vsel %vm1825_vm1, %v1817_v24, %v9437_v46  ;;  %v9441_v31 = vld [vmem:[#allocation35_spill] sm:$0xff]  ;;  %v9442_v25 = vld [vmem:[#allocation148_spill] sm:$0xff]  ;;  %v5608_v58 = vld [vmem:[#allocation2 + $0x128] sm:$0xff] }
 0x271   : > { %5420 = vmatprep.mubr.msk.f32.mxu1 %vm2061_vm9, %v2044_v60  ;;  %v1612_v10 = vpop.permute.xlu1 %1611  ;;  %v1614_v15 = vpop.permute.xlu0 %1613  ;;  %v1882_v52 = vsel %vm1858_vm3, %v1849_v27, %v9436_v9  ;;  %v1883_v56 = vsel %vm1858_vm3, %v1850_v40, %v9439_v47  ;;  %v9443_v53 = vld [vmem:[#allocation123_spill] sm:$0xff]  ;;  %v9445_v39 = vld [vmem:[#allocation52_spill] sm:$0xff]  ;;  %v9446_v17 = vld [vmem:[#allocation89_spill] sm:$0xff] }
 0x272   : > { %v2012_v28 = vsel %vm1990_vm7, %v1979_v19, %v1612_v10  ;;  %v2013_v14 = vsel %vm1990_vm7, %v1980_v26, %v1614_v15  ;;  %v1915_v35 = vsel %vm1891_vm4, %v1882_v52, %v9438_v8  ;;  %v1916_v57 = vsel %vm1891_vm4, %v1883_v56, %v9441_v31  ;;  %v9444_v1 = vld [vmem:[#allocation147_spill] sm:$0xff]  ;;  %v9447_v10 = vld [vmem:[#allocation50_spill] sm:$0xff]  ;;  %v9449_v38 = vld [vmem:[#allocation88_spill] sm:$0xff] }
 0x273   : > { %v1948_v41 = vsel %vm1924_vm5, %v1915_v35, %v9440_v11  ;;  %v1949_v22 = vsel %vm1924_vm5, %v1916_v57, %v9443_v53  ;;  %v1818_v7 = vsel %vm360_vm0, %v5608_v58, %v9445_v39  ;;  %v5609_v50 = vld [vmem:[#allocation2 + $0x138] sm:$0xff]  ;;  %v9450_v44 = vld [vmem:[#allocation41_spill] sm:$0xff]  ;;  %v9451_v15 = vld [vmem:[#allocation110_spill] sm:$0xff] }
 0x274   : > { %v1981_v55 = vsel %vm1957_vm6, %v1948_v41, %v9442_v25  ;;  %v1982_v6 = vsel %vm1957_vm6, %v1949_v22, %v9444_v1  ;;  %v1851_v32 = vsel %vm1825_vm1, %v1818_v7, %v9446_v17  ;;  %v1819_v3 = vsel %vm360_vm0, %v5609_v50, %v9447_v10  ;;  %v9448_v2 = vld [vmem:[#allocation111_spill] sm:$0xff]  ;;  %v9452_v51 = vld [vmem:[#allocation126_spill] sm:$0xff]  ;;  %v9455_v12 = vld [vmem:[#allocation125_spill] sm:$0xff] }
 0x275   : > { %v1740_v54 = vpop.permute.xlu1 %1739  ;;  %v1742_v59 = vpop.permute.xlu0 %1741  ;;  %v1884_v61 = vsel %vm1858_vm3, %v1851_v32, %v9448_v2  ;;  %v1852_v18 = vsel %vm1825_vm1, %v1819_v3, %v9449_v38  ;;  %v9453_v49 = vld [vmem:[#allocation39_spill] sm:$0xff]  ;;  %v9456_v48 = vld [vmem:[#allocation149_spill] sm:$0xff]  ;;  %v9457_v45 = vld [vmem:[#allocation56_spill] sm:$0xff] }
 0x276   : > { %v2045_v33 = vsel %vm2023_vm8, %v2012_v28, %v1740_v54  ;;  %v2046_v63 = vsel %vm2023_vm8, %v2013_v14, %v1742_v59  ;;  %v1917_v21 = vsel %vm1891_vm4, %v1884_v61, %v9450_v44  ;;  %v1885_v62 = vsel %vm1858_vm3, %v1852_v18, %v9451_v15  ;;  %v9454_v28 = vld [vmem:[#allocation150_spill] sm:$0xff]  ;;  %v5610_v59 = vld [vmem:[#allocation2 + $0x140] sm:$0xff]  ;;  %v9458_v23 = vld [vmem:[#allocation91_spill] sm:$0xff] }
 0x277   : > { %5421 = vmatmul.mubr.msk.f32.gmra.mxu1 %vm2061_vm9, %v2045_v33  ;;  %v1950_v34 = vsel %vm1924_vm5, %v1917_v21, %v9452_v51  ;;  %v1918_v43 = vsel %vm1891_vm4, %v1885_v62, %v9453_v49  ;;  %v1820_v27 = vsel %vm360_vm0, %v5610_v59, %v9457_v45  ;;  %v5611_v52 = vld [vmem:[#allocation2 + $0x150] sm:$0xff]  ;;  %v9460_v40 = vld [vmem:[#allocation113_spill] sm:$0xff]  ;;  %v9464_v57 = vld [vmem:[#allocation128_spill] sm:$0xff] }
 0x278   : > { %5423 = vmatprep.mubr.msk.f32.mxu1 %vm2061_vm9, %v2046_v63  ;;  %v1983_v54 = vsel %vm1957_vm6, %v1950_v34, %v9454_v28  ;;  %v1951_v26 = vsel %vm1924_vm5, %v1918_v43, %v9455_v12  ;;  %v1853_v24 = vsel %vm1825_vm1, %v1820_v27, %v9458_v23  ;;  %v9461_v47 = vld [vmem:[#allocation90_spill] sm:$0xff]  ;;  %v9462_v11 = vld [vmem:[#allocation45_spill] sm:$0xff]  ;;  %v9465_v53 = vld [vmem:[#allocation43_spill] sm:$0xff] }
 0x279   : > { %v1616_v4 = vpop.permute.xlu1 %1615  ;;  %v1618_v20 = vpop.permute.xlu0 %1617  ;;  %v1984_v0 = vsel %vm1957_vm6, %v1951_v26, %v9456_v48  ;;  %v1886_v8 = vsel %vm1858_vm3, %v1853_v24, %v9460_v40  ;;  %v9467_v1 = vld [vmem:[#allocation127_spill] sm:$0xff]  ;;  %v9469_v17 = vld [vmem:[#allocation60_spill] sm:$0xff]  ;;  %v9470_v10 = vld [vmem:[#allocation93_spill] sm:$0xff] }
 0x27a   : > { %v2014_v30 = vsel %vm1990_vm7, %v1981_v55, %v1616_v4  ;;  %v2015_v60 = vsel %vm1990_vm7, %v1982_v6, %v1618_v20  ;;  %v9459_v4 = vld [vmem:[#allocation54_spill] sm:$0xff]  ;;  %v1919_v41 = vsel %vm1891_vm4, %v1886_v8, %v9462_v11  ;;  %v9463_v20 = vld [vmem:[#allocation112_spill] sm:$0xff]  ;;  %v9468_v39 = vld [vmem:[#allocation151_spill] sm:$0xff] }
 0x27b   : > { %v1821_v46 = vsel %vm360_vm0, %v5611_v52, %v9459_v4  ;;  %v1952_v25 = vsel %vm1924_vm5, %v1919_v41, %v9464_v57  ;;  %v5613_v61 = vld [vmem:[#allocation2 + $0x168] sm:$0xff]  ;;  %v9472_v18 = vld [vmem:[#allocation115_spill] sm:$0xff]  ;;  %v9473_v15 = vld [vmem:[#allocation92_spill] sm:$0xff] }
 0x27c   : > { %v1854_v56 = vsel %vm1825_vm1, %v1821_v46, %v9461_v47  ;;  %v9474_v51 = vld [vmem:[#allocation49_spill] sm:$0xff]  ;;  %v9476_v43 = vld [vmem:[#allocation130_spill] sm:$0xff]  ;;  %v9477_v12 = vld [vmem:[#allocation47_spill] sm:$0xff] }
 0x27d   : > { %v1744_v5 = vpop.permute.xlu1 %1743  ;;  %v1746_v42 = vpop.permute.xlu0 %1745  ;;  %v1887_v31 = vsel %vm1858_vm3, %v1854_v56, %v9463_v20  ;;  %v9479_v48 = vld [vmem:[#allocation129_spill] sm:$0xff]  ;;  %v5614_v23 = vld [vmem:[#allocation2 + $0x170] sm:$0xff]  ;;  %v9481_v24 = vld [vmem:[#allocation64_spill] sm:$0xff] }
 0x27e   : > { %v2047_v16 = vsel %vm2023_vm8, %v2014_v30, %v1744_v5  ;;  %v2048_v29 = vsel %vm2023_vm8, %v2015_v60, %v1746_v42  ;;  %v1920_v22 = vsel %vm1891_vm4, %v1887_v31, %v9465_v53  ;;  %v9466_v30 = vld [vmem:[#allocation152_spill] sm:$0xff]  ;;  %v5612_v42 = vld [vmem:[#allocation2 + $0x158] sm:$0xff]  ;;  %v9480_v45 = vld [vmem:[#allocation153_spill] sm:$0xff] }
 0x27f   : > { %5424 = vmatmul.mubr.msk.f32.gmra.mxu1 %vm2061_vm9, %v2047_v16  ;;  %v1985_v5 = vsel %vm1957_vm6, %v1952_v25, %v9466_v30  ;;  %v1953_v6 = vsel %vm1924_vm5, %v1920_v22, %v9467_v1  ;;  %v1822_v32 = vsel %vm360_vm0, %v5612_v42, %v9469_v17  ;;  %v9482_v46 = vld [vmem:[#allocation94_spill] sm:$0xff]  ;;  %v9483_v47 = vld [vmem:[#allocation116_spill] sm:$0xff]  ;;  %v9484_v41 = vld [vmem:[#allocation51_spill] sm:$0xff] }
 0x280   : > { %5426 = vmatprep.mubr.msk.f32.mxu1 %vm2061_vm9, %v2048_v29  ;;  %v1986_v7 = vsel %vm1957_vm6, %v1953_v6, %v9468_v39  ;;  %v1855_v3 = vsel %vm1825_vm1, %v1822_v32, %v9470_v10  ;;  %v9485_v31 = vld [vmem:[#allocation131_spill] sm:$0xff]  ;;  %v7606_v6 = vld [vmem:[%s9060_s3] ss:$0 sm:$0xff] }
 0x281   : > { %v1620_v36 = vpop.permute.xlu1 %1619  ;;  %v1622_v19 = vpop.permute.xlu0 %1621  ;;  %v1888_v44 = vsel %vm1858_vm3, %v1855_v3, %v9472_v18  ;;  %v9486_v25 = vld [vmem:[#allocation155_spill] sm:$0xff] }
 0x282   : > { %v2016_v33 = vsel %vm1990_vm7, %v1983_v54, %v1620_v36  ;;  %v2017_v63 = vsel %vm1990_vm7, %v1984_v0, %v1622_v19  ;;  %v9471_v36 = vld [vmem:[#allocation58_spill] sm:$0xff]  ;;  %v1921_v34 = vsel %vm1891_vm4, %v1888_v44, %v9474_v51 }
 0x283   : > { %v1823_v38 = vsel %vm360_vm0, %v5613_v61, %v9471_v36  ;;  %v9475_v19 = vld [vmem:[#allocation114_spill] sm:$0xff]  ;;  %v1954_v28 = vsel %vm1924_vm5, %v1921_v34, %v9476_v43 }
 0x284   : > { %v1856_v62 = vsel %vm1825_vm1, %v1823_v38, %v9473_v15 }
 0x285   : > { %v1748_v13 = vpop.permute.xlu1 %1747  ;;  %v1750_v37 = vpop.permute.xlu0 %1749  ;;  %v1889_v49 = vsel %vm1858_vm3, %v1856_v62, %v9475_v19 }
 0x286   : > { %v2049_v14 = vsel %vm2023_vm8, %v2016_v33, %v1748_v13  ;;  %v2050_v9 = vsel %vm2023_vm8, %v2017_v63, %v1750_v37  ;;  %v1922_v26 = vsel %vm1891_vm4, %v1889_v49, %v9477_v12  ;;  %v9478_v33 = vld [vmem:[#allocation154_spill] sm:$0xff]  ;;  %v2617_v37 = vld [vmem:[#allocation3 + $0x9] sm:$0xff] }
 0x287   : > { %5427 = vmatmul.mubr.msk.f32.gmra.mxu1 %vm2061_vm9, %v2049_v14  ;;  %v1987_v13 = vsel %vm1957_vm6, %v1954_v28, %v9478_v33  ;;  %v1955_v0 = vsel %vm1924_vm5, %v1922_v26, %v9479_v48  ;;  %2907 = vrot.lane.b32.xlu1 %v2617_v37, %s5644_s21 }
 0x288   : > { %5429 = vmatprep.mubr.msk.f32.mxu1 %vm2061_vm9, %v2050_v9  ;;  %v1988_v27 = vsel %vm1957_vm6, %v1955_v0, %v9480_v45  ;;  %v1824_v9 = vsel %vm360_vm0, %v5614_v23, %v9481_v24 }
 0x289   : > { %v1624_v35 = vpop.permute.xlu1 %1623  ;;  %v1626_v55 = vpop.permute.xlu0 %1625  ;;  %v1857_v40 = vsel %vm1825_vm1, %v1824_v9, %v9482_v46 }
 0x28a   : > { %v2018_v16 = vsel %vm1990_vm7, %v1985_v5, %v1624_v35  ;;  %v2019_v29 = vsel %vm1990_vm7, %v1986_v7, %v1626_v55  ;;  %v2616_v35 = vld [vmem:[#allocation3 + $0x1] sm:$0xff]  ;;  %v1890_v56 = vsel %vm1858_vm3, %v1857_v40, %v9483_v47  ;;  %v7601_v5 = vld [vmem:[%s9059_s2] ss:$0 sm:$0xff] }
 0x28b   : > { %2905 = vrot.lane.b32.xlu0 %v2616_v35, %s5644_s21  ;;  %v1923_v20 = vsel %vm1891_vm4, %v1890_v56, %v9484_v41 }
 0x28c   : > { %v1956_v57 = vsel %vm1924_vm5, %v1923_v20, %v9485_v31 }
 0x28d   : > { %v1752_v58 = vpop.permute.xlu1 %1751  ;;  %v1754_v50 = vpop.permute.xlu0 %1753  ;;  %v1989_v55 = vsel %vm1957_vm6, %v1956_v57, %v9486_v25 }
 0x28e   : > { %v2051_v60 = vsel %vm2023_vm8, %v2018_v16, %v1752_v58  ;;  %v2052_v2 = vsel %vm2023_vm8, %v2019_v29, %v1754_v50 }
 0x28f   : > { %5430 = vmatmul.mubr.msk.f32.gmra.mxu1 %vm2061_vm9, %v2051_v60 }
 0x290   : > { %5432 = vmatprep.mubr.msk.f32.mxu1 %vm2061_vm9, %v2052_v2 }
 0x291   : > { %v1628_v21 = vpop.permute.xlu1 %1627  ;;  %v1630_v54 = vpop.permute.xlu0 %1629 }
 0x292   : > { %v2020_v14 = vsel %vm1990_vm7, %v1987_v13, %v1628_v21  ;;  %v2021_v52 = vsel %vm1990_vm7, %v1988_v27, %v1630_v54 }
 0x295   : > { %v1756_v59 = vpop.permute.xlu1 %1755  ;;  %v1758_v4 = vpop.permute.xlu0 %1757 }
 0x296   : > { %v2053_v63 = vsel %vm2023_vm8, %v2020_v14, %v1756_v59  ;;  %v2054_v8 = vsel %vm2023_vm8, %v2021_v52, %v1758_v4 }
 0x297   : > { %5433 = vmatmul.mubr.msk.f32.gmra.mxu1 %vm2061_vm9, %v2053_v63 }
 0x298   : > { %5435 = vmatprep.mubr.msk.f32.mxu1 %vm2061_vm9, %v2054_v8 }
 0x299   : > { %v1632_v11 = vpop.permute.xlu1 %1631 }
 0x29a   : > { %v2022_v53 = vsel %vm1990_vm7, %v1989_v55, %v1632_v11 }
 0x29d   : > { %v1760_v22 = vpop.permute.xlu1 %1759 }
 0x29e   : > { %v2055_v30 = vsel %vm2023_vm8, %v2022_v53, %v1760_v22 }
 0x29f   : > { %5436 = vmatmul.mubr.msk.f32.gmra.mxu1 %vm2061_vm9, %v2055_v30 }
 0x30c   : > { %v5392_v1 = vpop.f32.mrf.mxu0 }
 0x30d   : > { %v2395_v16 = vmul.f32 %v5392_v1, %v7601_v5 }
 0x30e   : > { %v2228_v58 = vpop.f32.mrf.mxu0 }
 0x30f   : > { %v2434_v39 = vadd.f32 %v7606_v6, %v2395_v16  ;;  %v2394_v7 = vmul.f32 %v7601_v5, %v2228_v58 }
 0x310   : > { %v5395_v60 = vpop.f32.mrf.mxu0 }
 0x311   : > { %v2466_v42 = vmax.f32 %v2434_v39, 0.0  ;;  %v2433_v17 = vadd.f32 %v7606_v6, %v2394_v7  ;;  %v2397_v32 = vmul.f32 %v5395_v60, %v7601_v5 }
 0x312   : > { %v2238_v29 = vpop.f32.mrf.mxu0 }
 0x313   : > { %2553 = vst.msk [vmem:[#allocation3 + $0x21] sm:$0xff] %vm1825_vm1, %v2466_v42  ;;  %v2465_v50 = vmax.f32 %v2433_v17, 0.0  ;;  %v2436_v10 = vadd.f32 %v7606_v6, %v2397_v32  ;;  %v2396_v3 = vmul.f32 %v7601_v5, %v2238_v29 }
 0x314   : > { %v5398_v2 = vpop.f32.mrf.mxu0 }
 0x315   : > { %2552 = vst.msk [vmem:[#allocation3 + $0x19] sm:$0xff] %vm1825_vm1, %v2465_v50  ;;  %v2468_v61 = vmax.f32 %v2436_v10, 0.0  ;;  %v2435_v36 = vadd.f32 %v7606_v6, %v2396_v3  ;;  %v2399_v38 = vmul.f32 %v5398_v2, %v7601_v5 }
 0x316   : > { %v2248_v18 = vpop.f32.mrf.mxu0 }
 0x317   : > { %2555 = vst.msk [vmem:[#allocation3 + $0x39] sm:$0xff] %vm1825_vm1, %v2468_v61  ;;  %v2467_v44 = vmax.f32 %v2435_v36, 0.0  ;;  %v2438_v21 = vadd.f32 %v7606_v6, %v2399_v38  ;;  %v2398_v15 = vmul.f32 %v7601_v5, %v2248_v18 }
 0x318   : > { %v5401_v62 = vpop.f32.mrf.mxu0 }
 0x319   : > { %2554 = vst.msk [vmem:[#allocation3 + $0x31] sm:$0xff] %vm1825_vm1, %v2467_v44  ;;  %v2470_v51 = vmax.f32 %v2438_v21, 0.0  ;;  %v2437_v34 = vadd.f32 %v7606_v6, %v2398_v15  ;;  %v2401_v19 = vmul.f32 %v5401_v62, %v7601_v5 }
 0x31a   : > { %v2258_v49 = vpop.f32.mrf.mxu0  ;;  %v7625_v43 = vld [vmem:[#allocation3 + $0x21] sm:$0xff] }
 0x31b   : > { %2557 = vst.msk [vmem:[#allocation3 + $0x51] sm:$0xff] %vm1825_vm1, %v2470_v51  ;;  %v2469_v28 = vmax.f32 %v2437_v34, 0.0  ;;  %v2440_v54 = vadd.f32 %v7606_v6, %v2401_v19  ;;  %v2400_v12 = vmul.f32 %v7601_v5, %v2258_v49  ;;  %2911 = vrot.lane.b32.xlu1 %v7625_v43, %s5644_s21 }
 0x31c   : > { %v5404_v26 = vpop.f32.mrf.mxu0  ;;  %v7632_v33 = vld [vmem:[#allocation3 + $0x19] sm:$0xff] }
 0x31d   : > { %2556 = vst.msk [vmem:[#allocation3 + $0x49] sm:$0xff] %vm1825_vm1, %v2469_v28  ;;  %v2472_v13 = vmax.f32 %v2440_v54, 0.0  ;;  %v2439_v48 = vadd.f32 %v7606_v6, %v2400_v12  ;;  %v2403_v0 = vmul.f32 %v5404_v26, %v7601_v5  ;;  %2909 = vrot.lane.b32.xlu0 %v7632_v33, %s5644_s21 }
 0x31e   : > { %v2268_v14 = vpop.f32.mrf.mxu0  ;;  %v7639_v59 = vld [vmem:[#allocation3 + $0x39] sm:$0xff] }
 0x31f   : > { %2559 = vst.msk [vmem:[#allocation3 + $0x69] sm:$0xff] %vm1825_vm1, %v2472_v13  ;;  %v2471_v45 = vmax.f32 %v2439_v48, 0.0  ;;  %v2442_v27 = vadd.f32 %v7606_v6, %v2403_v0  ;;  %v2402_v63 = vmul.f32 %v7601_v5, %v2268_v14  ;;  %2915 = vrot.lane.b32.xlu1 %v7639_v59, %s5644_s21 }
 0x320   : > { %v5407_v37 = vpop.f32.mrf.mxu0  ;;  %v7646_v23 = vld [vmem:[#allocation3 + $0x31] sm:$0xff] }
 0x321   : > { %2558 = vst.msk [vmem:[#allocation3 + $0x61] sm:$0xff] %vm1825_vm1, %v2471_v45  ;;  %v2474_v24 = vmax.f32 %v2442_v27, 0.0  ;;  %v2441_v9 = vadd.f32 %v7606_v6, %v2402_v63  ;;  %v2405_v52 = vmul.f32 %v5407_v37, %v7601_v5  ;;  %2913 = vrot.lane.b32.xlu0 %v7646_v23, %s5644_s21 }
 0x322   : > { %v2278_v4 = vpop.f32.mrf.mxu0  ;;  %v7653_v46 = vld [vmem:[#allocation3 + $0x51] sm:$0xff] }
 0x323   : > { %2561 = vst.msk [vmem:[#allocation3 + $0x81] sm:$0xff] %vm1825_vm1, %v2474_v24  ;;  %v2473_v40 = vmax.f32 %v2441_v9, 0.0  ;;  %v2444_v8 = vadd.f32 %v7606_v6, %v2405_v52  ;;  %v2404_v35 = vmul.f32 %v7601_v5, %v2278_v4  ;;  %2919 = vrot.lane.b32.xlu1 %v7653_v46, %s5644_s21 }
 0x324   : > { %v5410_v47 = vpop.f32.mrf.mxu0  ;;  %v7660_v56 = vld [vmem:[#allocation3 + $0x49] sm:$0xff] }
 0x325   : > { %2560 = vst.msk [vmem:[#allocation3 + $0x79] sm:$0xff] %vm1825_vm1, %v2473_v40  ;;  %v2476_v11 = vmax.f32 %v2444_v8, 0.0  ;;  %v2443_v41 = vadd.f32 %v7606_v6, %v2404_v35  ;;  %v2407_v20 = vmul.f32 %v5410_v47, %v7601_v5  ;;  %2917 = vrot.lane.b32.xlu0 %v7660_v56, %s5644_s21 }
 0x326   : > { %v2288_v31 = vpop.f32.mrf.mxu0  ;;  %v7667_v57 = vld [vmem:[#allocation3 + $0x69] sm:$0xff] }
 0x327   : > { %2563 = vst.msk [vmem:[#allocation3 + $0x99] sm:$0xff] %vm1825_vm1, %v2476_v11  ;;  %v2475_v25 = vmax.f32 %v2443_v41, 0.0  ;;  %v2446_v55 = vadd.f32 %v7606_v6, %v2407_v20  ;;  %v2406_v53 = vmul.f32 %v7601_v5, %v2288_v31  ;;  %2923 = vrot.lane.b32.xlu1 %v7667_v57, %s5644_s21 }
 0x328   : > { %v5413_v22 = vpop.f32.mrf.mxu0  ;;  %v7674_v30 = vld [vmem:[#allocation3 + $0x61] sm:$0xff] }
 0x329   : > { %2562 = vst.msk [vmem:[#allocation3 + $0x91] sm:$0xff] %vm1825_vm1, %v2475_v25  ;;  %v2478_v1 = vmax.f32 %v2446_v55, 0.0  ;;  %v2445_v16 = vadd.f32 %v7606_v6, %v2406_v53  ;;  %v2409_v58 = vmul.f32 %v5413_v22, %v7601_v5  ;;  %2921 = vrot.lane.b32.xlu0 %v7674_v30, %s5644_s21 }
 0x32a   : > { %v2298_v39 = vpop.f32.mrf.mxu0  ;;  %v7681_v7 = vld [vmem:[#allocation3 + $0x81] sm:$0xff] }
 0x32b   : > { %2565 = vst.msk [vmem:[#allocation3 + $0xb1] sm:$0xff] %vm1825_vm1, %v2478_v1  ;;  %v2477_v60 = vmax.f32 %v2445_v16, 0.0  ;;  %v2448_v42 = vadd.f32 %v7606_v6, %v2409_v58  ;;  %v2408_v17 = vmul.f32 %v7601_v5, %v2298_v39  ;;  %2927 = vrot.lane.b32.xlu1 %v7681_v7, %s5644_s21 }
 0x32c   : > { %v5416_v32 = vpop.f32.mrf.mxu1  ;;  %v7688_v29 = vld [vmem:[#allocation3 + $0x79] sm:$0xff] }
 0x32d   : > { %2564 = vst.msk [vmem:[#allocation3 + $0xa9] sm:$0xff] %vm1825_vm1, %v2477_v60  ;;  %v2480_v50 = vmax.f32 %v2448_v42, 0.0  ;;  %v2447_v10 = vadd.f32 %v7606_v6, %v2408_v17  ;;  %v2411_v3 = vmul.f32 %v5416_v32, %v7601_v5  ;;  %2925 = vrot.lane.b32.xlu0 %v7688_v29, %s5644_s21 }
 0x32e   : > { %v2308_v2 = vpop.f32.mrf.mxu1  ;;  %v2629_v61 = vld [vmem:[#allocation3 + $0x99] sm:$0xff] }
 0x32f   : > { %2567 = vst.msk [vmem:[#allocation3 + $0xc9] sm:$0xff] %vm1825_vm1, %v2480_v50  ;;  %v2479_v36 = vmax.f32 %v2447_v10, 0.0  ;;  %v2450_v38 = vadd.f32 %v7606_v6, %v2411_v3  ;;  %v2410_v18 = vmul.f32 %v7601_v5, %v2308_v2  ;;  %2931 = vrot.lane.b32.xlu1 %v2629_v61, %s5644_s21 }
 0x330   : > { %v5419_v44 = vpop.f32.mrf.mxu1  ;;  %v2628_v21 = vld [vmem:[#allocation3 + $0x91] sm:$0xff] }
 0x331   : > { %2566 = vst.msk [vmem:[#allocation3 + $0xc1] sm:$0xff] %vm1825_vm1, %v2479_v36  ;;  %v2482_v15 = vmax.f32 %v2450_v38, 0.0  ;;  %v2449_v62 = vadd.f32 %v7606_v6, %v2410_v18  ;;  %v2413_v51 = vmul.f32 %v5419_v44, %v7601_v5  ;;  %2929 = vrot.lane.b32.xlu0 %v2628_v21, %s5644_s21 }
 0x332   : > { %v2318_v34 = vpop.f32.mrf.mxu1  ;;  %v2631_v19 = vld [vmem:[#allocation3 + $0xb1] sm:$0xff] }
 0x333   : > { %2569 = vst.msk [vmem:[#allocation3 + $0xe1] sm:$0xff] %vm1825_vm1, %v2482_v15  ;;  %v2481_v49 = vmax.f32 %v2449_v62, 0.0  ;;  %v2452_v28 = vadd.f32 %v7606_v6, %v2413_v51  ;;  %v2412_v54 = vmul.f32 %v7601_v5, %v2318_v34  ;;  %2935 = vrot.lane.b32.xlu1 %v2631_v19, %s5644_s21 }
 0x334   : > { %v2630_v12 = vld [vmem:[#allocation3 + $0xa9] sm:$0xff] }
 0x335   : > { %2568 = vst.msk [vmem:[#allocation3 + $0xd9] sm:$0xff] %vm1825_vm1, %v2481_v49  ;;  %v2484_v26 = vmax.f32 %v2452_v28, 0.0  ;;  %v2451_v13 = vadd.f32 %v7606_v6, %v2412_v54  ;;  %2933 = vrot.lane.b32.xlu0 %v2630_v12, %s5644_s21 }
 0x336   : > { %v2633_v48 = vld [vmem:[#allocation3 + $0xc9] sm:$0xff] }
 0x337   : > { %2571 = vst.msk [vmem:[#allocation3 + $0xf9] sm:$0xff] %vm1825_vm1, %v2484_v26  ;;  %v2483_v0 = vmax.f32 %v2451_v13, 0.0  ;;  %v5422_v14 = vpop.f32.mrf.mxu1  ;;  %2939 = vrot.lane.b32.xlu1 %v2633_v48, %s5644_s21 }
 0x338   : > { %v2415_v45 = vmul.f32 %v5422_v14, %v7601_v5  ;;  %v2632_v27 = vld [vmem:[#allocation3 + $0xc1] sm:$0xff] }
 0x339   : > { %2570 = vst.msk [vmem:[#allocation3 + $0xf1] sm:$0xff] %vm1825_vm1, %v2483_v0  ;;  %v2328_v63 = vpop.f32.mrf.mxu1  ;;  %2937 = vrot.lane.b32.xlu0 %v2632_v27, %s5644_s21 }
 0x33a   : > { %v2454_v37 = vadd.f32 %v7606_v6, %v2415_v45  ;;  %v2414_v24 = vmul.f32 %v7601_v5, %v2328_v63  ;;  %v2635_v9 = vld [vmem:[#allocation3 + $0xe1] sm:$0xff] }
 0x33b   : > { %2943 = vrot.lane.b32.xlu1 %v2635_v9, %s5644_s21 }
 0x33c   : > { %v2486_v52 = vmax.f32 %v2454_v37, 0.0  ;;  %v2453_v4 = vadd.f32 %v7606_v6, %v2414_v24  ;;  %v2634_v40 = vld [vmem:[#allocation3 + $0xd9] sm:$0xff] }
 0x33d   : > { %2941 = vrot.lane.b32.xlu0 %v2634_v40, %s5644_s21 }
 0x33e   : > { %2573 = vst.msk [vmem:[#allocation3 + $0x111] sm:$0xff] %vm1825_vm1, %v2486_v52  ;;  %v2485_v8 = vmax.f32 %v2453_v4, 0.0  ;;  %v2637_v35 = vld [vmem:[#allocation3 + $0xf9] sm:$0xff] }
 0x33f   : > { %v5425_v47 = vpop.f32.mrf.mxu1  ;;  %2947 = vrot.lane.b32.xlu1 %v2637_v35, %s5644_s21  ;;  %v2649_v35 = vld [vmem:[#allocation3 + $0xa] sm:$0xff] }
 0x340   : > { %2572 = vst.msk [vmem:[#allocation3 + $0x109] sm:$0xff] %vm1825_vm1, %v2485_v8  ;;  %v2417_v11 = vmul.f32 %v5425_v47, %v7601_v5  ;;  %v2636_v41 = vld [vmem:[#allocation3 + $0xf1] sm:$0xff]  ;;  %v2648_v47 = vld [vmem:[#allocation3 + $0x2] sm:$0xff] }
 0x341   : > { %v2338_v20 = vpop.f32.mrf.mxu1  ;;  %2945 = vrot.lane.b32.xlu0 %v2636_v41, %s5644_s21  ;;  %v7778_v41 = vld [vmem:[#allocation3 + $0x32] sm:$0xff] }
 0x342   : > { %v2456_v31 = vadd.f32 %v7606_v6, %v2417_v11  ;;  %v2416_v25 = vmul.f32 %v7601_v5, %v2338_v20  ;;  %v7774_v11 = vld [vmem:[#allocation3 + $0x3a] sm:$0xff]  ;;  %v7782_v20 = vld [vmem:[#allocation3 + $0x52] sm:$0xff] }
 0x344   : > { %v2488_v55 = vmax.f32 %v2456_v31, 0.0  ;;  %v2455_v53 = vadd.f32 %v7606_v6, %v2416_v25  ;;  %v7786_v31 = vld [vmem:[#allocation3 + $0x4a] sm:$0xff] }
 0x345   : > { %v2639_v22 = vld [vmem:[#allocation3 + $0x111] sm:$0xff] }
 0x346   : > { %2575 = vst.msk [vmem:[#allocation3 + $0x129] sm:$0xff] %vm1825_vm1, %v2488_v55  ;;  %v2487_v1 = vmax.f32 %v2455_v53, 0.0  ;;  %2951 = vrot.lane.b32.xlu1 %v2639_v22, %s5644_s21  ;;  %v7790_v25 = vld [vmem:[#allocation3 + $0x6a] sm:$0xff]  ;;  %v7794_v55 = vld [vmem:[#allocation3 + $0x62] sm:$0xff]  ;;  %v7802_v22 = vld [vmem:[#allocation3 + $0x7a] sm:$0xff] }
 0x347   : > { %v5428_v16 = vpop.f32.mrf.mxu1  ;;  %v2638_v58 = vld [vmem:[#allocation3 + $0x109] sm:$0xff] }
 0x348   : > { %2574 = vst.msk [vmem:[#allocation3 + $0x121] sm:$0xff] %vm1825_vm1, %v2487_v1  ;;  %v2419_v39 = vmul.f32 %v5428_v16, %v7601_v5  ;;  %2949 = vrot.lane.b32.xlu0 %v2638_v58, %s5644_s21  ;;  %v7798_v53 = vld [vmem:[#allocation3 + $0x82] sm:$0xff]  ;;  %v7806_v1 = vld [vmem:[#allocation3 + $0x9a] sm:$0xff]  ;;  %v7810_v16 = vld [vmem:[#allocation3 + $0x92] sm:$0xff] }
 0x349   : > { %v2348_v60 = vpop.f32.mrf.mxu1  ;;  %v7814_v58 = vld [vmem:[#allocation3 + $0xb2] sm:$0xff] }
 0x34a   : > { %v2458_v42 = vadd.f32 %v7606_v6, %v2419_v39  ;;  %v2418_v17 = vmul.f32 %v7601_v5, %v2348_v60  ;;  %v7818_v39 = vld [vmem:[#allocation3 + $0xaa] sm:$0xff]  ;;  %v7822_v60 = vpop.permute.xlu1 %2907 }
 0x34c   : > { %v2490_v32 = vmax.f32 %v2458_v42, 0.0  ;;  %v2457_v50 = vadd.f32 %v7606_v6, %v2418_v17  ;;  %v2665_v42 = vld [vmem:[#allocation3 + $0xca] sm:$0xff]  ;;  %v7825_v17 = vpop.permute.xlu0 %2905 }
 0x34d   : > { %v2641_v10 = vld [vmem:[#allocation3 + $0x129] sm:$0xff] }
 0x34e   : > { %2577 = vst.msk [vmem:[#allocation3 + $0x141] sm:$0xff] %vm1825_vm1, %v2490_v32  ;;  %v2489_v3 = vmax.f32 %v2457_v50, 0.0  ;;  %2955 = vrot.lane.b32.xlu1 %v2641_v10, %s5644_s21  ;;  %v2664_v32 = vld [vmem:[#allocation3 + $0xc2] sm:$0xff] }
 0x34f   : > { %v5431_v2 = vpop.f32.mrf.mxu1  ;;  %v2640_v61 = vld [vmem:[#allocation3 + $0x121] sm:$0xff] }
 0x350   : > { %2576 = vst.msk [vmem:[#allocation3 + $0x139] sm:$0xff] %vm1825_vm1, %v2489_v3  ;;  %v2421_v36 = vmul.f32 %v5431_v2, %v7601_v5  ;;  %2953 = vrot.lane.b32.xlu0 %v2640_v61, %s5644_s21  ;;  %v2667_v50 = vld [vmem:[#allocation3 + $0xe2] sm:$0xff]  ;;  %v2666_v3 = vld [vmem:[#allocation3 + $0xda] sm:$0xff] }
 0x351   : > { %v2358_v38 = vpop.f32.mrf.mxu1  ;;  %v2669_v61 = vld [vmem:[#allocation3 + $0xfa] sm:$0xff] }
 0x352   : > { %v2460_v18 = vadd.f32 %v7606_v6, %v2421_v36  ;;  %v2420_v44 = vmul.f32 %v7601_v5, %v2358_v38  ;;  %v2668_v36 = vld [vmem:[#allocation3 + $0xf2] sm:$0xff] }
 0x354   : > { %v2492_v21 = vmax.f32 %v2460_v18, 0.0  ;;  %v2459_v15 = vadd.f32 %v7606_v6, %v2420_v44  ;;  %v2671_v18 = vld [vmem:[#allocation3 + $0x112] sm:$0xff] }
 0x355   : > { %v2643_v62 = vld [vmem:[#allocation3 + $0x141] sm:$0xff] }
 0x356   : > { %2579 = vst.msk [vmem:[#allocation3 + $0x159] sm:$0xff] %vm1825_vm1, %v2492_v21  ;;  %v2491_v51 = vmax.f32 %v2459_v15, 0.0  ;;  %2959 = vrot.lane.b32.xlu1 %v2643_v62, %s5644_s21  ;;  %v2670_v21 = vld [vmem:[#allocation3 + $0x10a] sm:$0xff] }
 0x357   : > { %v5434_v34 = vpop.f32.mrf.mxu1  ;;  %v2642_v19 = vld [vmem:[#allocation3 + $0x139] sm:$0xff]  ;;  %v2673_v15 = vld [vmem:[#allocation3 + $0x12a] sm:$0xff] }
 0x358   : > { %2578 = vst.msk [vmem:[#allocation3 + $0x151] sm:$0xff] %vm1825_vm1, %v2491_v51  ;;  %v2423_v49 = vmul.f32 %v5434_v34, %v7601_v5  ;;  %2957 = vrot.lane.b32.xlu0 %v2642_v19, %s5644_s21  ;;  %v2672_v51 = vld [vmem:[#allocation3 + $0x122] sm:$0xff] }
 0x359   : > { %v2368_v28 = vpop.f32.mrf.mxu1  ;;  %v2675_v19 = vld [vmem:[#allocation3 + $0x142] sm:$0xff] }
 0x35a   : > { %v2462_v54 = vadd.f32 %v7606_v6, %v2423_v49  ;;  %v2422_v12 = vmul.f32 %v7601_v5, %v2368_v28  ;;  %v2674_v49 = vld [vmem:[#allocation3 + $0x13a] sm:$0xff] }
 0x35c   : > { %v2494_v26 = vmax.f32 %v2462_v54, 0.0  ;;  %v2461_v13 = vadd.f32 %v7606_v6, %v2422_v12 }
 0x35d   : > { %v2645_v48 = vld [vmem:[#allocation3 + $0x159] sm:$0xff] }
 0x35e   : > { %2581 = vst.msk [vmem:[#allocation3 + $0x171] sm:$0xff] %vm1825_vm1, %v2494_v26  ;;  %v2493_v0 = vmax.f32 %v2461_v13, 0.0  ;;  %2963 = vrot.lane.b32.xlu1 %v2645_v48, %s5644_s21  ;;  %v2677_v54 = vld [vmem:[#allocation3 + $0x15a] sm:$0xff] }
 0x35f   : > { %v5437_v14 = vpop.f32.mrf.mxu1  ;;  %v2644_v45 = vld [vmem:[#allocation3 + $0x151] sm:$0xff] }
 0x360   : > { %2580 = vst.msk [vmem:[#allocation3 + $0x169] sm:$0xff] %vm1825_vm1, %v2493_v0  ;;  %v2425_v27 = vmul.f32 %v5437_v14, %v7601_v5  ;;  %2961 = vrot.lane.b32.xlu0 %v2644_v45, %s5644_s21  ;;  %v2676_v26 = vld [vmem:[#allocation3 + $0x152] sm:$0xff]  ;;  %v7862_v45 = vld [vmem:[#allocation3 + $0x20] sm:$0xff] }
 0x361   : > { %v2378_v63 = vpop.f32.mrf.mxu1 }
 0x362   : > { %v2464_v37 = vadd.f32 %v7606_v6, %v2425_v27  ;;  %v2424_v24 = vmul.f32 %v7601_v5, %v2378_v63  ;;  %v7766_v5 = vld [vmem:[#allocation3 + $0x22] sm:$0xff]  ;;  %v7866_v27 = vld [vmem:[#allocation3 + $0x18] sm:$0xff] }
 0x364   : > { %v2496_v9 = vmax.f32 %v2464_v37, 0.0  ;;  %v2463_v52 = vadd.f32 %v7606_v6, %v2424_v24  ;;  %v7770_v6 = vld [vmem:[#allocation3 + $0x1a] sm:$0xff] }
 0x365   : > { %v2647_v4 = vld [vmem:[#allocation3 + $0x171] sm:$0xff] }
 0x366   : > { %2583 = vst.msk [vmem:[#allocation3 + $0x189] sm:$0xff] %vm1825_vm1, %v2496_v9  ;;  %v2495_v40 = vmax.f32 %v2463_v52, 0.0  ;;  %2967 = vrot.lane.b32.xlu1 %v2647_v4, %s5644_s21  ;;  %v2679_v13 = vld [vmem:[#allocation3 + $0x172] sm:$0xff] }
 0x367   : > { %v2646_v8 = vld [vmem:[#allocation3 + $0x169] sm:$0xff]  ;;  %v7872_v37 = vld [vmem:[#allocation3 + $0x38] sm:$0xff] }
 0x368   : > { %2582 = vst.msk [vmem:[#allocation3 + $0x181] sm:$0xff] %vm1825_vm1, %v2495_v40  ;;  %2965 = vrot.lane.b32.xlu0 %v2646_v8, %s5644_s21  ;;  %v2678_v0 = vld [vmem:[#allocation3 + $0x16a] sm:$0xff] }
 0x369   : > { %v7878_v9 = vld [vmem:[#allocation3 + $0x30] sm:$0xff]  ;;  %v7888_v40 = vld [vmem:[#allocation3 + $0x48] sm:$0xff] }
 0x36a   : > { %3035 = vrot.lane.b32.xlu1 %v2649_v35, %s5646_s23  ;;  %v7882_v52 = vld [vmem:[#allocation3 + $0x50] sm:$0xff]  ;;  %v7894_v35 = vld [vmem:[#allocation3 + $0x68] sm:$0xff] }
 0x36c   : > { %3033 = vrot.lane.b32.xlu0 %v2648_v47, %s5646_s23  ;;  %v7898_v47 = vld [vmem:[#allocation3 + $0x60] sm:$0xff] }
 0x36e   : > { %3039 = vrot.lane.b32.xlu1 %v7766_v5, %s5646_s23 }
 0x370   : > { %3037 = vrot.lane.b32.xlu0 %v7770_v6, %s5646_s23 }
 0x372   : > { %3043 = vrot.lane.b32.xlu1 %v7774_v11, %s5646_s23 }
 0x374   : > { %3041 = vrot.lane.b32.xlu0 %v7778_v41, %s5646_s23 }
 0x376   : > { %3047 = vrot.lane.b32.xlu1 %v7782_v20, %s5646_s23 }
 0x378   : > { %3045 = vrot.lane.b32.xlu0 %v7786_v31, %s5646_s23 }
 0x37a   : > { %3051 = vrot.lane.b32.xlu1 %v7790_v25, %s5646_s23 }
 0x37c   : > { %3049 = vrot.lane.b32.xlu0 %v7794_v55, %s5646_s23 }
 0x37e   : > { %3055 = vrot.lane.b32.xlu1 %v7798_v53, %s5646_s23 }
 0x380   : > { %3053 = vrot.lane.b32.xlu0 %v7802_v22, %s5646_s23 }
 0x382   : > { %3059 = vrot.lane.b32.xlu1 %v7806_v1, %s5646_s23 }
 0x384   : > { %3057 = vrot.lane.b32.xlu0 %v7810_v16, %s5646_s23 }
 0x386   : > { %3063 = vrot.lane.b32.xlu1 %v7814_v58, %s5646_s23 }
 0x388   : > { %3061 = vrot.lane.b32.xlu0 %v7818_v39, %s5646_s23 }
 0x38a   : > { %3067 = vrot.lane.b32.xlu1 %v2665_v42, %s5646_s23 }
 0x38c   : > { %3065 = vrot.lane.b32.xlu0 %v2664_v32, %s5646_s23  ;;  %v7904_v32 = vld [vmem:[#allocation3 + $0x80] sm:$0xff] }
 0x38d   : > { %v7828_v10 = vpop.permute.xlu1 %2911 }
 0x38e   : > { %3071 = vrot.lane.b32.xlu1 %v2667_v50, %s5646_s23 }
 0x38f   : > { %v7831_v2 = vpop.permute.xlu0 %2909 }
 0x390   : > { %3069 = vrot.lane.b32.xlu0 %v2666_v3, %s5646_s23  ;;  %v7910_v3 = vld [vmem:[#allocation3 + $0x78] sm:$0xff] }
 0x391   : > { %v7835_v38 = vpop.permute.xlu1 %2915 }
 0x392   : > { %3075 = vrot.lane.b32.xlu1 %v2669_v61, %s5646_s23  ;;  %v7914_v61 = vld [vmem:[#allocation3 + $0x98] sm:$0xff] }
 0x393   : > { %v7838_v44 = vpop.permute.xlu0 %2913 }
 0x394   : > { %3073 = vrot.lane.b32.xlu0 %v2668_v36, %s5646_s23 }
 0x395   : > { %v7842_v62 = vpop.permute.xlu1 %2919 }
 0x396   : > { %3079 = vrot.lane.b32.xlu1 %v2671_v18, %s5646_s23  ;;  %v7920_v18 = vld [vmem:[#allocation3 + $0x90] sm:$0xff] }
 0x397   : > { %v7845_v34 = vpop.permute.xlu0 %2917 }
 0x398   : > { %3077 = vrot.lane.b32.xlu0 %v2670_v21, %s5646_s23 }
 0x399   : > { %v7849_v28 = vpop.permute.xlu1 %2923 }
 0x39a   : > { %3083 = vrot.lane.b32.xlu1 %v2673_v15, %s5646_s23  ;;  %9487 = vst [vmem:[#allocation5_spill] sm:$0xff] %v7849_v28  ;;  %v7926_v15 = vld [vmem:[#allocation3 + $0xb0] sm:$0xff] }
 0x39b   : > { %v7852_v12 = vpop.permute.xlu0 %2921 }
 0x39c   : > { %3081 = vrot.lane.b32.xlu0 %v2672_v51, %s5646_s23  ;;  %9488 = vst [vmem:[#allocation7_spill] sm:$0xff] %v7852_v12  ;;  %v7930_v51 = vld [vmem:[#allocation3 + $0xa8] sm:$0xff]  ;;  %v4567_v12 = vld [vmem:[%s5844_s19 + $0x8] sm:$0xff] }
 0x39d   : > { %v7856_v48 = vpop.permute.xlu1 %2927 }
 0x39e   : > { %3087 = vrot.lane.b32.xlu1 %v2675_v19, %s5646_s23  ;;  %9489 = vst [vmem:[#allocation62_spill] sm:$0xff] %v7856_v48  ;;  %v2610_v48 = vld [vmem:[#allocation3 + $0x138] sm:$0xff] }
 0x39f   : > { %v7859_v14 = vpop.permute.xlu0 %2925 }
 0x3a0   : > { %3085 = vrot.lane.b32.xlu0 %v2674_v49, %s5646_s23  ;;  %9490 = vst [vmem:[#allocation9_spill] sm:$0xff] %v7859_v14  ;;  %v7936_v49 = vld [vmem:[#allocation3 + $0xc8] sm:$0xff] }
 0x3a1   : > { %v7868_v63 = vpop.permute.xlu1 %2931 }
 0x3a2   : > { %3091 = vrot.lane.b32.xlu1 %v2677_v54, %s5646_s23  ;;  %9491 = vst [vmem:[#allocation67_spill] sm:$0xff] %v7868_v63 }
 0x3a3   : > { %v7874_v24 = vpop.permute.xlu0 %2929 }
 0x3a4   : > { %3089 = vrot.lane.b32.xlu0 %v2676_v26, %s5646_s23  ;;  %9492 = vst [vmem:[#allocation11_spill] sm:$0xff] %v7874_v24  ;;  %v7942_v26 = vld [vmem:[#allocation3 + $0xc0] sm:$0xff] }
 0x3a5   : > { %v7884_v4 = vpop.permute.xlu1 %2935 }
 0x3a6   : > { %3095 = vrot.lane.b32.xlu1 %v2679_v13, %s5646_s23  ;;  %9493 = vst [vmem:[#allocation12_spill] sm:$0xff] %v7884_v4 }
 0x3a7   : > { %v7890_v8 = vpop.permute.xlu0 %2933 }
 0x3a8   : > { %3093 = vrot.lane.b32.xlu0 %v2678_v0, %s5646_s23  ;;  %9494 = vst [vmem:[#allocation66_spill] sm:$0xff] %v7890_v8  ;;  %v7948_v0 = vld [vmem:[#allocation3 + $0xe0] sm:$0xff] }
 0x3a9   : > { %v7900_v42 = vpop.permute.xlu1 %2939 }
 0x3aa   : > { %3163 = vrot.lane.b32.xlu1 %v7862_v45, %s5648_s25  ;;  %9495 = vst [vmem:[#allocation70_spill] sm:$0xff] %v7900_v42  ;;  %v7966_v42 = vld [vmem:[#allocation3 + $0xf0] sm:$0xff] }
 0x3ab   : > { %v7906_v50 = vpop.permute.xlu0 %2937 }
 0x3ac   : > { %3161 = vrot.lane.b32.xlu0 %v7866_v27, %s5648_s25  ;;  %9496 = vst [vmem:[#allocation14_spill] sm:$0xff] %v7906_v50  ;;  %v2607_v50 = vld [vmem:[#allocation3 + $0x110] sm:$0xff] }
 0x3ad   : > { %v7916_v36 = vpop.permute.xlu1 %2943 }
 0x3ae   : > { %3167 = vrot.lane.b32.xlu1 %v7872_v37, %s5648_s25  ;;  %9497 = vst [vmem:[#allocation15_spill] sm:$0xff] %v7916_v36  ;;  %v7954_v36 = vld [vmem:[#allocation3 + $0xd8] sm:$0xff] }
 0x3af   : > { %v7922_v21 = vpop.permute.xlu0 %2941 }
 0x3b0   : > { %3165 = vrot.lane.b32.xlu0 %v7878_v9, %s5648_s25  ;;  %9498 = vst [vmem:[#allocation69_spill] sm:$0xff] %v7922_v21  ;;  %v7960_v21 = vld [vmem:[#allocation3 + $0xf8] sm:$0xff] }
 0x3b1   : > { %v7932_v19 = vpop.permute.xlu1 %2947 }
 0x3b2   : > { %3171 = vrot.lane.b32.xlu1 %v7882_v52, %s5648_s25  ;;  %9499 = vst [vmem:[#allocation72_spill] sm:$0xff] %v7932_v19 }
 0x3b3   : > { %v7938_v54 = vpop.permute.xlu0 %2945 }
 0x3b4   : > { %3169 = vrot.lane.b32.xlu0 %v7888_v40, %s5648_s25  ;;  %9500 = vst [vmem:[#allocation17_spill] sm:$0xff] %v7938_v54 }
 0x3b6   : > { %3175 = vrot.lane.b32.xlu1 %v7894_v35, %s5648_s25 }
 0x3b8   : > { %3173 = vrot.lane.b32.xlu0 %v7898_v47, %s5648_s25  ;;  %v7944_v13 = vpop.permute.xlu1 %2951 }
 0x3b9   : > { %9501 = vst [vmem:[#allocation18_spill] sm:$0xff] %v7944_v13 }
 0x3ba   : > { %3179 = vrot.lane.b32.xlu1 %v7904_v32, %s5648_s25  ;;  %v7950_v19 = vpop.permute.xlu0 %2949 }
 0x3bb   : > { %9502 = vst [vmem:[#allocation71_spill] sm:$0xff] %v7950_v19 }
 0x3bc   : > { %3177 = vrot.lane.b32.xlu0 %v7910_v3, %s5648_s25 }
 0x3be   : > { %3183 = vrot.lane.b32.xlu1 %v7914_v61, %s5648_s25 }
 0x3c0   : > { %3181 = vrot.lane.b32.xlu0 %v7920_v18, %s5648_s25  ;;  %v7956_v54 = vpop.permute.xlu1 %2955 }
 0x3c1   : > { %9503 = vst [vmem:[#allocation20_spill] sm:$0xff] %v7956_v54  ;;  %v7975_v54 = vld [vmem:[#allocation3 + $0x108] sm:$0xff] }
 0x3c2   : > { %3187 = vrot.lane.b32.xlu1 %v7926_v15, %s5648_s25  ;;  %v7962_v13 = vpop.permute.xlu0 %2953 }
 0x3c3   : > { %9504 = vst [vmem:[#allocation22_spill] sm:$0xff] %v7962_v13  ;;  %v2609_v13 = vld [vmem:[#allocation3 + $0x128] sm:$0xff] }
 0x3c4   : > { %3185 = vrot.lane.b32.xlu0 %v7930_v51, %s5648_s25 }
 0x3c6   : > { %3191 = vrot.lane.b32.xlu1 %v7936_v49, %s5648_s25 }
 0x3c8   : > { %3189 = vrot.lane.b32.xlu0 %v7942_v26, %s5648_s25  ;;  %v7968_v19 = vpop.permute.xlu1 %2959 }
 0x3c9   : > { %9505 = vst [vmem:[#allocation73_spill] sm:$0xff] %v7968_v19  ;;  %v2608_v19 = vld [vmem:[#allocation3 + $0x120] sm:$0xff] }
 0x3ca   : > { %3195 = vrot.lane.b32.xlu1 %v7948_v0, %s5648_s25  ;;  %v7972_v4 = vpop.permute.xlu0 %2957 }
 0x3cb   : > { %9506 = vst [vmem:[#allocation24_spill] sm:$0xff] %v7972_v4  ;;  %v2611_v4 = vld [vmem:[#allocation3 + $0x140] sm:$0xff] }
 0x3cc   : > { %3193 = vrot.lane.b32.xlu0 %v7954_v36, %s5648_s25 }
 0x3ce   : > { %3199 = vrot.lane.b32.xlu1 %v7960_v21, %s5648_s25 }
 0x3d0   : > { %3197 = vrot.lane.b32.xlu0 %v7966_v42, %s5648_s25  ;;  %v7977_v8 = vpop.permute.xlu1 %2963 }
 0x3d1   : > { %9507 = vst [vmem:[#allocation26_spill] sm:$0xff] %v7977_v8  ;;  %v4165_v8 = vld [vmem:[%s9061_s4 + $0x40] sm:$0xff] }
 0x3d2   : > { %3203 = vrot.lane.b32.xlu1 %v2607_v50, %s5648_s25  ;;  %v7981_v63 = vpop.permute.xlu0 %2961  ;;  %5438 = vmatprep.subr.mxu1 %v4165_v8 }
 0x3d3   : > { %9508 = vst [vmem:[#allocation55_spill] sm:$0xff] %v7981_v63  ;;  %5439 = vmatpush3.msra.mxu1 %v4165_v8 }
 0x3d4   : > { %3201 = vrot.lane.b32.xlu0 %v7975_v54, %s5648_s25 }
 0x3d6   : > { %3207 = vrot.lane.b32.xlu1 %v2609_v13, %s5648_s25  ;;  %v2613_v13 = vld [vmem:[#allocation3 + $0x158] sm:$0xff] }
 0x3d8   : > { %v7984_v24 = vpop.permute.xlu1 %2967  ;;  %3205 = vrot.lane.b32.xlu0 %v2608_v19, %s5648_s25  ;;  %v4164_v19 = vld [vmem:[%s9061_s4 + $0x38] sm:$0xff] }
 0x3d9   : > { %9509 = vst [vmem:[#allocation132_spill] sm:$0xff] %v7984_v24  ;;  %5440 = vmatprep.subr.mxu1 %v4164_v19  ;;  %v4163_v24 = vld [vmem:[%s9061_s4 + $0x30] sm:$0xff] }
 0x3da   : > { %3211 = vrot.lane.b32.xlu1 %v2611_v4, %s5648_s25  ;;  %v7988_v50 = vpop.permute.xlu0 %2965  ;;  %5441 = vmatpush3.msra.mxu1 %v4164_v19  ;;  %v4161_v19 = vld [vmem:[%s9061_s4 + $0x20] sm:$0xff] }
 0x3db   : > { %9510 = vst [vmem:[#allocation75_spill] sm:$0xff] %v7988_v50  ;;  %v2612_v50 = vld [vmem:[#allocation3 + $0x150] sm:$0xff]  ;;  %5442 = vmatprep.subr.mxu1 %v4163_v24 }
 0x3dc   : > { %v7993_v14 = vpop.permute.xlu1 %3035  ;;  %3209 = vrot.lane.b32.xlu0 %v2610_v48, %s5648_s25  ;;  %5443 = vmatpush3.msra.mxu1 %v4163_v24  ;;  %v4162_v48 = vld [vmem:[%s9061_s4 + $0x28] sm:$0xff]  ;;  %v4160_v24 = vld [vmem:[%s9061_s4 + $0x18] sm:$0xff] }
 0x3dd   : > { %5444 = vmatprep.subr.mxu1 %v4162_v48 }
 0x3de   : > { %3215 = vrot.lane.b32.xlu1 %v2613_v13, %s5648_s25  ;;  %v8000_v4 = vpop.permute.xlu0 %3033  ;;  %v2614_v13 = vld [vmem:[#allocation3 + $0x168] sm:$0xff]  ;;  %5445 = vmatpush3.msra.mxu1 %v4162_v48 }
 0x3df   : > { %5446 = vmatprep.subr.mxu1 %v4161_v19 }
 0x3e0   : > { %v8005_v63 = vpop.permute.xlu1 %3039  ;;  %3213 = vrot.lane.b32.xlu0 %v2612_v50, %s5648_s25  ;;  %5447 = vmatpush3.msra.mxu1 %v4161_v19  ;;  %v4159_v50 = vld [vmem:[%s9061_s4 + $0x10] sm:$0xff]  ;;  %v4598_v19 = vld [vmem:[%s9064_s7] sm:$0xf] }
 0x3e1   : > { %5448 = vmatprep.subr.mxu1 %v4160_v24  ;;  %5504 = vmatprep.subr.msk.mxu0 %vm2158_vm2, %v4598_v19 }
 0x3e2   : > { %3289 = vrot.lane.b32.xlu1 %v7632_v33, %s5650_s22  ;;  %v8013_v8 = vpop.permute.xlu0 %3037  ;;  %5449 = vmatpush3.msra.mxu1 %v4160_v24 }
 0x3e3   : > { %5450 = vmatprep.subr.mxu1 %v4159_v50  ;;  %5505 = vmatpush3.msk.msra.mxu0 %vm2158_vm2, %v4598_v19 }
 0x3e4   : > { %v8018_v28 = vpop.permute.xlu1 %3043  ;;  %3217 = vrot.lane.b32.xlu0 %v2614_v13, %s5648_s25  ;;  %5451 = vmatpush3.msra.mxu1 %v4159_v50  ;;  %v4566_v50 = vld [vmem:[%s5844_s19] sm:$0xff] }
 0x3e5   : > { %5506 = vmatprep.mubr.msk.f32.mxu0 %vm360_vm0, %v4566_v50 }
 0x3e6   : > { %3417 = vrot.lane.b32.xlu1 %v7770_v6, %s5651_s27  ;;  %v8026_v33 = vpop.permute.xlu0 %3041  ;;  %v4158_v6 = vld [vmem:[%s9061_s4 + $0x8] sm:$0xff]  ;;  %5507 = vmatmul.mubr.msk.f32.vlgmr.msra.gmra.mxu0 %vm360_vm0, %v4567_v12 }
 0x3e7   : > { %5452 = vmatprep.subr.mxu1 %v4158_v6 }
 0x3e8   : > { %v8031_v48 = vpop.permute.xlu1 %3047  ;;  %3291 = vrot.lane.b32.xlu0 %v7625_v43, %s5650_s22  ;;  %5453 = vmatpush3.msra.mxu1 %v4158_v6  ;;  %v4157_v43 = vld [vmem:[%s9061_s4] sm:$0xff] }
 0x3e9   : > { %5454 = vmatprep.subr.mxu1 %v4157_v43 }
 0x3ea   : > { %3545 = vrot.lane.b32.xlu1 %v7878_v9, %s5652_s30  ;;  %v8040_v13 = vpop.permute.xlu0 %3045  ;;  %5455 = vmatpush3.msra.mxu1 %v4157_v43 }
 0x3ec   : > { %v8048_v24 = vpop.permute.xlu1 %3051  ;;  %3419 = vrot.lane.b32.xlu0 %v7766_v5, %s5651_s27 }
 0x3ed   : > { %9511 = vst [vmem:[#allocation95_spill] sm:$0xff] %v8048_v24 }
 0x3ee   : > { %3673 = vrot.lane.b32.xlu1 %v7646_v23, %s5653_s18  ;;  %v8057_v6 = vpop.permute.xlu0 %3049 }
 0x3f0   : > { %v8061_v24 = vpop.permute.xlu1 %3055  ;;  %3547 = vrot.lane.b32.xlu0 %v7872_v37, %s5652_s30 }
 0x3f2   : > { %3675 = vrot.lane.b32.xlu1 %v7639_v59, %s5653_s18  ;;  %v8068_v5 = vpop.permute.xlu0 %3053 }
 0x3f4   : > { %v8070_v43 = vpop.permute.xlu1 %3059  ;;  %3293 = vrot.lane.b32.xlu0 %v7646_v23, %s5650_s22 }
 0x3f5   : > { %9512 = vst [vmem:[#allocation134_spill] sm:$0xff] %v8070_v43 }
 0x3f6   : > { %3295 = vrot.lane.b32.xlu1 %v7639_v59, %s5650_s22  ;;  %v8076_v19 = vpop.permute.xlu0 %3057 }
 0x3f7   : > { %9513 = vst [vmem:[#allocation156_spill] sm:$0xff] %v8076_v19  ;;  %v4569_v19 = vld [vmem:[%s5844_s19 + $0x18] sm:$0xff] }
 0x3f8   : > { %v8078_v50 = vpop.permute.xlu1 %3063  ;;  %3801 = vrot.lane.b32.xlu0 %v7778_v41, %s5654_s20 }
 0x3f9   : > { %9514 = vst [vmem:[#allocation97_spill] sm:$0xff] %v8078_v50  ;;  %v4568_v50 = vld [vmem:[%s5844_s19 + $0x10] sm:$0xff] }
 0x3fa   : > { %3803 = vrot.lane.b32.xlu1 %v7774_v11, %s5654_s20  ;;  %v8084_v12 = vpop.permute.xlu0 %3061  ;;  %5509 = vmatprep.mubr.msk.f32.mxu0 %vm360_vm0, %v4568_v50 }
 0x3fb   : > { %9515 = vst [vmem:[#allocation6_spill] sm:$0xff] %v8084_v12  ;;  %5510 = vmatmul.mubr.msk.f32.gmra.mxu0 %vm360_vm0, %v4569_v19 }
 0x3fc   : > { %v8086_v43 = vpop.permute.xlu1 %3067  ;;  %3421 = vrot.lane.b32.xlu0 %v7778_v41, %s5651_s27 }
 0x3fd   : > { %9516 = vst [vmem:[#allocation158_spill] sm:$0xff] %v8086_v43 }
 0x3fe   : > { %3549 = vrot.lane.b32.xlu1 %v7888_v40, %s5652_s30  ;;  %v8092_v59 = vpop.permute.xlu0 %3065 }
 0x3ff   : > { %9517 = vst [vmem:[#allocation28_spill] sm:$0xff] %v8092_v59  ;;  %v2817_v59 = vld [vmem:[#allocation3 + $0x91] sm:$0xff] }
 0x400   : > { %v8094_v23 = vpop.permute.xlu1 %3071  ;;  %3423 = vrot.lane.b32.xlu0 %v7774_v11, %s5651_s27 }
 0x401   : > { %9518 = vst [vmem:[#allocation10_spill] sm:$0xff] %v8094_v23 }
 0x402   : > { %3677 = vrot.lane.b32.xlu1 %v7660_v56, %s5653_s18  ;;  %v8102_v12 = vpop.permute.xlu0 %3069 }
 0x403   : > { %9519 = vst [vmem:[#allocation53_spill] sm:$0xff] %v8102_v12 }
 0x404   : > { %v8106_v41 = vpop.permute.xlu1 %3075  ;;  %3551 = vrot.lane.b32.xlu0 %v7882_v52, %s5652_s30 }
 0x405   : > { %9520 = vst [vmem:[#allocation30_spill] sm:$0xff] %v8106_v41 }
 0x406   : > { %3679 = vrot.lane.b32.xlu1 %v7653_v46, %s5653_s18  ;;  %v8112_v11 = vpop.permute.xlu0 %3073 }
 0x407   : > { %9521 = vst [vmem:[#allocation74_spill] sm:$0xff] %v8112_v11 }
 0x408   : > { %v8114_v23 = vpop.permute.xlu1 %3079  ;;  %3297 = vrot.lane.b32.xlu0 %v7660_v56, %s5650_s22 }
 0x409   : > { %9522 = vst [vmem:[#allocation59_spill] sm:$0xff] %v8114_v23  ;;  %v4571_v23 = vld [vmem:[%s5844_s19 + $0x28] sm:$0xff] }
 0x40a   : > { %3299 = vrot.lane.b32.xlu1 %v7653_v46, %s5650_s22  ;;  %v8120_v19 = vpop.permute.xlu0 %3077 }
 0x40b   : > { %9523 = vst [vmem:[#allocation133_spill] sm:$0xff] %v8120_v19 }
 0x40c   : > { %v8122_v50 = vpop.permute.xlu1 %3083  ;;  %3805 = vrot.lane.b32.xlu0 %v7786_v31, %s5654_s20 }
 0x40d   : > { %9524 = vst [vmem:[#allocation77_spill] sm:$0xff] %v8122_v50  ;;  %v4570_v50 = vld [vmem:[%s5844_s19 + $0x20] sm:$0xff] }
 0x40e   : > { %3807 = vrot.lane.b32.xlu1 %v7782_v20, %s5654_s20  ;;  %v8128_v41 = vpop.permute.xlu0 %3081  ;;  %5512 = vmatprep.mubr.msk.f32.mxu0 %vm360_vm0, %v4570_v50 }
 0x40f   : > { %9525 = vst [vmem:[#allocation96_spill] sm:$0xff] %v8128_v41  ;;  %5513 = vmatmul.mubr.msk.f32.gmra.mxu0 %vm360_vm0, %v4571_v23 }
 0x410   : > { %v8130_v11 = vpop.permute.xlu1 %3087  ;;  %3425 = vrot.lane.b32.xlu0 %v7786_v31, %s5651_s27 }
 0x411   : > { %9526 = vst [vmem:[#allocation136_spill] sm:$0xff] %v8130_v11  ;;  %v4573_v11 = vld [vmem:[%s5844_s19 + $0x38] sm:$0xff] }
 0x412   : > { %3553 = vrot.lane.b32.xlu1 %v7898_v47, %s5652_s30  ;;  %v8136_v46 = vpop.permute.xlu0 %3085 }
 0x413   : > { %9527 = vst [vmem:[#allocation157_spill] sm:$0xff] %v8136_v46 }
 0x414   : > { %v8138_v56 = vpop.permute.xlu1 %3091  ;;  %3427 = vrot.lane.b32.xlu0 %v7782_v20, %s5651_s27 }
 0x415   : > { %9528 = vst [vmem:[#allocation99_spill] sm:$0xff] %v8138_v56 }
 0x416   : > { %3681 = vrot.lane.b32.xlu1 %v7674_v30, %s5653_s18  ;;  %v8146_v41 = vpop.permute.xlu0 %3089 }
 0x417   : > { %9529 = vst [vmem:[#allocation8_spill] sm:$0xff] %v8146_v41  ;;  %v4572_v41 = vld [vmem:[%s5844_s19 + $0x30] sm:$0xff] }
 0x418   : > { %v8150_v31 = vpop.permute.xlu1 %3095  ;;  %3555 = vrot.lane.b32.xlu0 %v7894_v35, %s5652_s30  ;;  %5515 = vmatprep.mubr.msk.f32.mxu0 %vm360_vm0, %v4572_v41 }
 0x419   : > { %9530 = vst [vmem:[#allocation160_spill] sm:$0xff] %v8150_v31  ;;  %5516 = vmatmul.mubr.msk.f32.gmra.mxu0 %vm360_vm0, %v4573_v11 }
 0x41a   : > { %3683 = vrot.lane.b32.xlu1 %v7667_v57, %s5653_s18  ;;  %v8156_v20 = vpop.permute.xlu0 %3093 }
 0x41b   : > { %9531 = vst [vmem:[#allocation32_spill] sm:$0xff] %v8156_v20 }
 0x41c   : > { %v8158_v56 = vpop.permute.xlu1 %3163  ;;  %3301 = vrot.lane.b32.xlu0 %v7674_v30, %s5650_s22 }
 0x41e   : > { %3303 = vrot.lane.b32.xlu1 %v7667_v57, %s5650_s22  ;;  %v8164_v23 = vpop.permute.xlu0 %3161 }
 0x420   : > { %v8166_v50 = vpop.permute.xlu1 %3167  ;;  %3809 = vrot.lane.b32.xlu0 %v7794_v55, %s5654_s20 }
 0x422   : > { %3811 = vrot.lane.b32.xlu1 %v7790_v25, %s5654_s20  ;;  %v8172_v20 = vpop.permute.xlu0 %3165 }
 0x424   : > { %v8174_v31 = vpop.permute.xlu1 %3171  ;;  %3429 = vrot.lane.b32.xlu0 %v7794_v55, %s5651_s27 }
 0x426   : > { %3557 = vrot.lane.b32.xlu1 %v7910_v3, %s5652_s30  ;;  %v8180_v57 = vpop.permute.xlu0 %3169 }
 0x428   : > { %v8182_v30 = vpop.permute.xlu1 %3175  ;;  %3431 = vrot.lane.b32.xlu0 %v7790_v25, %s5651_s27 }
 0x42a   : > { %3685 = vrot.lane.b32.xlu1 %v7688_v29, %s5653_s18  ;;  %v8190_v46 = vpop.permute.xlu0 %3173 }
 0x42c   : > { %v8194_v55 = vpop.permute.xlu1 %3179  ;;  %3559 = vrot.lane.b32.xlu0 %v7904_v32, %s5652_s30 }
 0x42e   : > { %3687 = vrot.lane.b32.xlu1 %v7681_v7, %s5653_s18  ;;  %v8200_v25 = vpop.permute.xlu0 %3177 }
 0x430   : > { %v8202_v19 = vpop.permute.xlu1 %3183  ;;  %3305 = vrot.lane.b32.xlu0 %v7688_v29, %s5650_s22 }
 0x431   : > { %9532 = vst [vmem:[#allocation16_spill] sm:$0xff] %v8202_v19  ;;  %v4575_v19 = vld [vmem:[%s5844_s19 + $0x48] sm:$0xff] }
 0x432   : > { %3307 = vrot.lane.b32.xlu1 %v7681_v7, %s5650_s22  ;;  %v8208_v41 = vpop.permute.xlu0 %3181 }
 0x434   : > { %v8210_v11 = vpop.permute.xlu1 %3187  ;;  %3813 = vrot.lane.b32.xlu0 %v7802_v22, %s5654_s20 }
 0x435   : > { %9533 = vst [vmem:[#allocation57_spill] sm:$0xff] %v8210_v11  ;;  %v4574_v11 = vld [vmem:[%s5844_s19 + $0x40] sm:$0xff] }
 0x436   : > { %3815 = vrot.lane.b32.xlu1 %v7798_v53, %s5654_s20  ;;  %v8216_v12 = vpop.permute.xlu0 %3185  ;;  %5518 = vmatprep.mubr.msk.f32.mxu0 %vm360_vm0, %v4574_v11 }
 0x437   : > { %9534 = vst [vmem:[#allocation34_spill] sm:$0xff] %v8216_v12  ;;  %5519 = vmatmul.mubr.msk.f32.gmra.mxu0 %vm360_vm0, %v4575_v19 }
 0x438   : > { %v8218_v43 = vpop.permute.xlu1 %3191  ;;  %3433 = vrot.lane.b32.xlu0 %v7802_v22, %s5651_s27 }
 0x439   : > { %9535 = vst [vmem:[#allocation76_spill] sm:$0xff] %v8218_v43  ;;  %v2821_v43 = vld [vmem:[#allocation3 + $0xc1] sm:$0xff] }
 0x43a   : > { %3561 = vrot.lane.b32.xlu1 %v7920_v18, %s5652_s30  ;;  %v8224_v7 = vpop.permute.xlu0 %3189  ;;  %v2818_v18 = vld [vmem:[#allocation3 + $0x99] sm:$0xff] }
 0x43b   : > { %9536 = vst [vmem:[#allocation63_spill] sm:$0xff] %v8224_v7  ;;  %v4579_v7 = vld [vmem:[%s5844_s19 + $0x68] sm:$0xff] }
 0x43c   : > { %v8226_v29 = vpop.permute.xlu1 %3195  ;;  %3435 = vrot.lane.b32.xlu0 %v7798_v53, %s5651_s27 }
 0x43d   : > { %9537 = vst [vmem:[#allocation135_spill] sm:$0xff] %v8226_v29 }
 0x43e   : > { %3689 = vrot.lane.b32.xlu1 %v2817_v59, %s5653_s18  ;;  %v8233_v12 = vpop.permute.xlu0 %3193 }
 0x43f   : > { %9538 = vst [vmem:[#allocation79_spill] sm:$0xff] %v8233_v12 }
 0x440   : > { %v8237_v22 = vpop.permute.xlu1 %3199  ;;  %3563 = vrot.lane.b32.xlu0 %v7914_v61, %s5652_s30 }
 0x441   : > { %9539 = vst [vmem:[#allocation98_spill] sm:$0xff] %v8237_v22 }
 0x442   : > { %3691 = vrot.lane.b32.xlu1 %v2818_v18, %s5653_s18  ;;  %v8242_v53 = vpop.permute.xlu0 %3197 }
 0x443   : > { %9540 = vst [vmem:[#allocation138_spill] sm:$0xff] %v8242_v53 }
 0x444   : > { %v8244_v29 = vpop.permute.xlu1 %3203  ;;  %3309 = vrot.lane.b32.xlu0 %v2817_v59, %s5650_s22 }
 0x445   : > { %9541 = vst [vmem:[#allocation159_spill] sm:$0xff] %v8244_v29  ;;  %v4576_v29 = vld [vmem:[%s5844_s19 + $0x50] sm:$0xff] }
 0x446   : > { %3311 = vrot.lane.b32.xlu1 %v2818_v18, %s5650_s22  ;;  %v8248_v11 = vpop.permute.xlu0 %3201  ;;  %5521 = vmatprep.mubr.msk.f32.mxu0 %vm360_vm0, %v4576_v29 }
 0x447   : > { %9542 = vst [vmem:[#allocation101_spill] sm:$0xff] %v8248_v11  ;;  %v4577_v11 = vld [vmem:[%s5844_s19 + $0x58] sm:$0xff] }
 0x448   : > { %v8250_v19 = vpop.permute.xlu1 %3207  ;;  %3817 = vrot.lane.b32.xlu0 %v7810_v16, %s5654_s20  ;;  %5522 = vmatmul.mubr.msk.f32.gmra.mxu0 %vm360_vm0, %v4577_v11  ;;  %v2585_v11 = vld [vmem:[#allocation3 + $0x8] sm:$0xff] }
 0x449   : > { %9543 = vst [vmem:[#allocation13_spill] sm:$0xff] %v8250_v19  ;;  %v2819_v19 = vld [vmem:[#allocation3 + $0xa9] sm:$0xff] }
 0x44a   : > { %3819 = vrot.lane.b32.xlu1 %v7806_v1, %s5654_s20  ;;  %v8256_v61 = vpop.permute.xlu0 %3205 }
 0x44b   : > { %9544 = vst [vmem:[#allocation162_spill] sm:$0xff] %v8256_v61 }
 0x44c   : > { %v8258_v22 = vpop.permute.xlu1 %3211  ;;  %3437 = vrot.lane.b32.xlu0 %v7810_v16, %s5651_s27 }
 0x44d   : > { %9545 = vst [vmem:[#allocation36_spill] sm:$0xff] %v8258_v22 }
 0x44e   : > { %3565 = vrot.lane.b32.xlu1 %v7930_v51, %s5652_s30  ;;  %v8264_v59 = vpop.permute.xlu0 %3209  ;;  %v2820_v51 = vld [vmem:[#allocation3 + $0xb1] sm:$0xff] }
 0x44f   : > { %9546 = vst [vmem:[#allocation21_spill] sm:$0xff] %v8264_v59 }
 0x450   : > { %v8266_v18 = vpop.permute.xlu1 %3215  ;;  %3439 = vrot.lane.b32.xlu0 %v7806_v1, %s5651_s27 }
 0x451   : > { %9547 = vst [vmem:[#allocation61_spill] sm:$0xff] %v8266_v18 }
 0x452   : > { %3693 = vrot.lane.b32.xlu1 %v2819_v19, %s5653_s18  ;;  %v8273_v61 = vpop.permute.xlu0 %3213 }
 0x453   : > { %9548 = vst [vmem:[#allocation38_spill] sm:$0xff] %v8273_v61 }
 0x454   : > { %v3290_v16 = vpop.permute.xlu1 %3289  ;;  %3567 = vrot.lane.b32.xlu0 %v7926_v15, %s5652_s30 }
 0x456   : > { %3695 = vrot.lane.b32.xlu1 %v2820_v51, %s5653_s18  ;;  %v8280_v18 = vpop.permute.xlu0 %3217 }
 0x457   : > { %9549 = vst [vmem:[#allocation78_spill] sm:$0xff] %v8280_v18  ;;  %v2584_v18 = vld [vmem:[#allocation3] sm:$0xff] }
 0x458   : > { %v3418_v1 = vpop.permute.xlu1 %3417  ;;  %3313 = vrot.lane.b32.xlu0 %v2819_v19, %s5650_s22  ;;  %v3897_v59 = vsel %vm1825_vm1, %v2584_v18, %v7825_v17 }
 0x45a   : > { %3315 = vrot.lane.b32.xlu1 %v2820_v51, %s5650_s22  ;;  %v3292_v22 = vpop.permute.xlu0 %3291  ;;  %v3898_v51 = vsel %vm1825_vm1, %v2585_v11, %v7822_v60  ;;  %v2822_v11 = vld [vmem:[#allocation3 + $0xc9] sm:$0xff] }
 0x45b   : > { %v3930_v12 = vsel %vm1891_vm4, %v3898_v51, %v7993_v14  ;;  %v2854_v51 = vld [vmem:[#allocation3 + $0xca] sm:$0xff] }
 0x45c   : > { %v3546_v61 = vpop.permute.xlu1 %3545  ;;  %3821 = vrot.lane.b32.xlu0 %v7818_v39, %s5654_s20  ;;  %v3962_v60 = vsel %vm1957_vm6, %v3930_v12, %v8158_v56 }
 0x45e   : > { %3823 = vrot.lane.b32.xlu1 %v7814_v58, %s5654_s20  ;;  %v3420_v15 = vpop.permute.xlu0 %3419 }
 0x460   : > { %v3674_v29 = vpop.permute.xlu1 %3673  ;;  %3441 = vrot.lane.b32.xlu0 %v7818_v39, %s5651_s27  ;;  %v3929_v39 = vsel %vm1891_vm4, %v3897_v59, %v8000_v4  ;;  %v3994_v4 = vsel %vm2023_vm8, %v3962_v60, %v3292_v22 }
 0x461   : > { %v3961_v17 = vsel %vm1957_vm6, %v3929_v39, %v8164_v23  ;;  %v4027_v12 = vsel %vm4025_vm10, %v3994_v4, %v3420_v15  ;;  %v3899_v39 = vsel %vm1825_vm1, %v7866_v27, %v7831_v2 }
 0x462   : > { %3569 = vrot.lane.b32.xlu1 %v7942_v26, %s5652_s30  ;;  %v3548_v19 = vpop.permute.xlu0 %3547  ;;  %v4578_v26 = vld [vmem:[%s5844_s19 + $0x60] sm:$0xff]  ;;  %v3993_v14 = vsel %vm2023_vm8, %v3961_v17, %v3290_v16  ;;  %v3931_v60 = vsel %vm1891_vm4, %v3899_v39, %v8013_v8  ;;  %v3900_v17 = vsel %vm1825_vm1, %v7862_v45, %v7828_v10  ;;  %v3902_v39 = vsel %vm1825_vm1, %v7872_v37, %v7835_v38 }
 0x463   : > { %5524 = vmatprep.mubr.msk.f32.mxu0 %vm360_vm0, %v4578_v26  ;;  %v4026_v59 = vsel %vm4025_vm10, %v3993_v14, %v3418_v1  ;;  %v4060_v18 = vsel %vm4058_vm11, %v4027_v12, %v3548_v19  ;;  %v3963_v14 = vsel %vm1957_vm6, %v3931_v60, %v8172_v20  ;;  %v3932_v2 = vsel %vm1891_vm4, %v3900_v17, %v8005_v63  ;;  %v4581_v12 = vld [vmem:[%s5844_s19 + $0x78] sm:$0xff]  ;;  %v4582_v17 = vld [vmem:[%s5844_s19 + $0x80] sm:$0xff] }
 0x464   : > { %v3676_v53 = vpop.permute.xlu1 %3675  ;;  %3443 = vrot.lane.b32.xlu0 %v7814_v58, %s5651_s27  ;;  %5525 = vmatmul.mubr.msk.f32.gmra.mxu0 %vm360_vm0, %v4579_v7  ;;  %v4059_v23 = vsel %vm4058_vm11, %v4026_v59, %v3546_v61  ;;  %v4580_v59 = vld [vmem:[%s5844_s19 + $0x70] sm:$0xff]  ;;  %v3964_v8 = vsel %vm1957_vm6, %v3932_v2, %v8166_v50 }
 0x465   : > { %v4092_v22 = vsel %vm4091_vm12, %v4059_v23, %v3674_v29  ;;  %v4093_v1 = vsel %vm4091_vm12, %v4060_v18, %v3676_v53  ;;  %v2853_v29 = vld [vmem:[#allocation3 + $0xc2] sm:$0xff]  ;;  %5527 = vmatprep.mubr.msk.f32.mxu0 %vm360_vm0, %v4580_v59 }
 0x466   : > { %3697 = vrot.lane.b32.xlu1 %v2821_v43, %s5653_s18  ;;  %v3294_v58 = vpop.permute.xlu0 %3293  ;;  %v2824_v18 = vld [vmem:[#allocation3 + $0xe1] sm:$0xff] }
 0x467   : > { %v3995_v27 = vsel %vm2023_vm8, %v3963_v14, %v3294_v58  ;;  %v4583_v14 = vld [vmem:[%s5844_s19 + $0x88] sm:$0xff] }
 0x468   : > { %v3296_v56 = vpop.permute.xlu1 %3295  ;;  %3571 = vrot.lane.b32.xlu0 %v7936_v49, %s5652_s30  ;;  %5528 = vmatmul.mubr.msk.f32.gmra.mxu0 %vm360_vm0, %v4581_v12 }
 0x469   : > { %v3996_v45 = vsel %vm2023_vm8, %v3964_v8, %v3296_v56  ;;  %5530 = vmatprep.mubr.msk.f32.mxu0 %vm360_vm0, %v4582_v17 }
 0x46a   : > { %3699 = vrot.lane.b32.xlu1 %v2822_v11, %s5653_s18  ;;  %v3802_v7 = vpop.permute.xlu0 %3801 }
 0x46b   : > { %v4125_v16 = vsel %vm4124_vm13, %v4092_v22, %v3802_v7 }
 0x46c   : > { %v3804_v15 = vpop.permute.xlu1 %3803  ;;  %3317 = vrot.lane.b32.xlu0 %v2821_v43, %s5650_s22  ;;  %5456 = vmatprep.mubr.msk.f32.mxu1 %vm4166_vm14, %v4125_v16 }
 0x46d   : > { %v4126_v49 = vsel %vm4124_vm13, %v4093_v1, %v3804_v15  ;;  %v2855_v15 = vld [vmem:[#allocation3 + $0xda] sm:$0xff]  ;;  %5531 = vmatmul.mubr.msk.f32.gmra.mxu0 %vm360_vm0, %v4583_v14 }
 0x46e   : > { %3319 = vrot.lane.b32.xlu1 %v2822_v11, %s5650_s22  ;;  %5457 = vmatmul.mubr.msk.f32.vlgmr.msra.gmra.mxu1 %vm4166_vm14, %v4126_v49  ;;  %v3422_v61 = vpop.permute.xlu0 %3421 }
 0x46f   : > { %v4028_v23 = vsel %vm4025_vm10, %v3995_v27, %v3422_v61  ;;  %v2856_v61 = vld [vmem:[#allocation3 + $0xe2] sm:$0xff]  ;;  %v2826_v27 = vld [vmem:[#allocation3 + $0xf9] sm:$0xff] }
 0x470   : > { %v3550_v19 = vpop.permute.xlu1 %3549  ;;  %3825 = vrot.lane.b32.xlu0 %v2853_v29, %s5654_s20 }
 0x471   : > { %v4061_v58 = vsel %vm4058_vm11, %v4028_v23, %v3550_v19 }
 0x472   : > { %3827 = vrot.lane.b32.xlu1 %v2854_v51, %s5654_s20  ;;  %v3424_v53 = vpop.permute.xlu0 %3423 }
 0x473   : > { %v4029_v63 = vsel %vm4025_vm10, %v3996_v45, %v3424_v53  ;;  %v2857_v45 = vld [vmem:[#allocation3 + $0xf2] sm:$0xff] }
 0x474   : > { %v3678_v43 = vpop.permute.xlu1 %3677  ;;  %3445 = vrot.lane.b32.xlu0 %v2853_v29, %s5651_s27 }
 0x475   : > { %v4094_v11 = vsel %vm4091_vm12, %v4061_v58, %v3678_v43 }
 0x476   : > { %3573 = vrot.lane.b32.xlu1 %v7954_v36, %s5652_s30  ;;  %v3552_v26 = vpop.permute.xlu0 %3551  ;;  %v2823_v36 = vld [vmem:[#allocation3 + $0xd9] sm:$0xff] }
 0x477   : > { %v4062_v50 = vsel %vm4058_vm11, %v4029_v63, %v3552_v26 }
 0x478   : > { %v3680_v4 = vpop.permute.xlu1 %3679  ;;  %3447 = vrot.lane.b32.xlu0 %v2854_v51, %s5651_s27  ;;  %v3901_v51 = vsel %vm1825_vm1, %v7878_v9, %v7838_v44  ;;  %v3934_v44 = vsel %vm1891_vm4, %v3902_v39, %v8018_v28 }
 0x479   : > { %v4095_v7 = vsel %vm4091_vm12, %v4062_v50, %v3680_v4  ;;  %v3933_v43 = vsel %vm1891_vm4, %v3901_v51, %v8026_v33  ;;  %v3966_v33 = vsel %vm1957_vm6, %v3934_v44, %v8174_v31  ;;  %v2859_v44 = vld [vmem:[#allocation3 + $0x10a] sm:$0xff] }
 0x47a   : > { %3701 = vrot.lane.b32.xlu1 %v2823_v36, %s5653_s18  ;;  %v3298_v10 = vpop.permute.xlu0 %3297  ;;  %v3965_v26 = vsel %vm1957_vm6, %v3933_v43, %v8180_v57 }
 0x47b   : > { %v3997_v9 = vsel %vm2023_vm8, %v3965_v26, %v3298_v10 }
 0x47c   : > { %v3300_v20 = vpop.permute.xlu1 %3299  ;;  %3575 = vrot.lane.b32.xlu0 %v7948_v0, %s5652_s30 }
 0x47d   : > { %v3998_v37 = vsel %vm2023_vm8, %v3966_v33, %v3300_v20  ;;  %v2858_v20 = vld [vmem:[#allocation3 + $0xfa] sm:$0xff] }
 0x47e   : > { %3703 = vrot.lane.b32.xlu1 %v2824_v18, %s5653_s18  ;;  %v3806_v22 = vpop.permute.xlu0 %3805  ;;  %v2797_v33 = vld [vmem:[#allocation3 + $0x120] sm:$0xff] }
 0x47f   : > { %v4127_v56 = vsel %vm4124_vm13, %v4094_v11, %v3806_v22 }
 0x480   : > { %v3808_v16 = vpop.permute.xlu1 %3807  ;;  %3321 = vrot.lane.b32.xlu0 %v2823_v36, %s5650_s22  ;;  %5459 = vmatprep.mubr.msk.f32.mxu1 %vm4166_vm14, %v4127_v56  ;;  %v3904_v56 = vsel %vm1825_vm1, %v7882_v52, %v7842_v62 }
 0x481   : > { %v4128_v0 = vsel %vm4124_vm13, %v4095_v7, %v3808_v16 }
 0x482   : > { %3323 = vrot.lane.b32.xlu1 %v2824_v18, %s5650_s22  ;;  %5460 = vmatmul.mubr.msk.f32.gmra.mxu1 %vm4166_vm14, %v4128_v0  ;;  %v3426_v1 = vpop.permute.xlu0 %3425  ;;  %v3903_v18 = vsel %vm1825_vm1, %v7888_v40, %v7845_v34  ;;  %v3936_v34 = vsel %vm1891_vm4, %v3904_v56, %v8031_v48  ;;  %v4584_v0 = vld [vmem:[%s5844_s19 + $0x90] sm:$0xff] }
 0x483   : > { %v4030_v4 = vsel %vm4025_vm10, %v3997_v9, %v3426_v1  ;;  %v3935_v22 = vsel %vm1891_vm4, %v3903_v18, %v8040_v13  ;;  %v4585_v1 = vld [vmem:[%s5844_s19 + $0x98] sm:$0xff]  ;;  %v3968_v13 = vsel %vm1957_vm6, %v3936_v34, %v8182_v30  ;;  %5533 = vmatprep.mubr.msk.f32.mxu0 %vm360_vm0, %v4584_v0 }
 0x484   : > { %v3554_v49 = vpop.permute.xlu1 %3553  ;;  %3829 = vrot.lane.b32.xlu0 %v2855_v15, %s5654_s20  ;;  %v3967_v7 = vsel %vm1957_vm6, %v3935_v22, %v8190_v46  ;;  %v2796_v46 = vld [vmem:[#allocation3 + $0x110] sm:$0xff]  ;;  %5534 = vmatmul.mubr.msk.f32.gmra.mxu0 %vm360_vm0, %v4585_v1  ;;  %v2861_v34 = vld [vmem:[#allocation3 + $0x122] sm:$0xff] }
 0x485   : > { %v4063_v2 = vsel %vm4058_vm11, %v4030_v4, %v3554_v49  ;;  %v9550_v4 = vld [vmem:[#allocation7_spill] sm:$0xff] }
 0x486   : > { %3831 = vrot.lane.b32.xlu1 %v2856_v61, %s5654_s20  ;;  %v3428_v29 = vpop.permute.xlu0 %3427 }
 0x487   : > { %v4031_v28 = vsel %vm4025_vm10, %v3998_v37, %v3428_v29  ;;  %v2828_v29 = vld [vmem:[#allocation3 + $0x111] sm:$0xff] }
 0x488   : > { %v3682_v19 = vpop.permute.xlu1 %3681  ;;  %3449 = vrot.lane.b32.xlu0 %v2855_v15, %s5651_s27 }
 0x489   : > { %v4096_v36 = vsel %vm4091_vm12, %v4063_v2, %v3682_v19 }
 0x48a   : > { %3577 = vrot.lane.b32.xlu1 %v7966_v42, %s5652_s30  ;;  %v3556_v53 = vpop.permute.xlu0 %3555  ;;  %v2825_v42 = vld [vmem:[#allocation3 + $0xf1] sm:$0xff] }
 0x48b   : > { %v4064_v31 = vsel %vm4058_vm11, %v4031_v28, %v3556_v53 }
 0x48c   : > { %v3684_v60 = vpop.permute.xlu1 %3683  ;;  %3451 = vrot.lane.b32.xlu0 %v2856_v61, %s5651_s27 }
 0x48d   : > { %v4097_v8 = vsel %vm4091_vm12, %v4064_v31, %v3684_v60 }
 0x48e   : > { %3705 = vrot.lane.b32.xlu1 %v2825_v42, %s5653_s18  ;;  %v3302_v38 = vpop.permute.xlu0 %3301 }
 0x48f   : > { %v3999_v40 = vsel %vm2023_vm8, %v3967_v7, %v3302_v38  ;;  %v3905_v38 = vsel %vm1825_vm1, %v7898_v47, %v9550_v4 }
 0x490   : > { %v3304_v57 = vpop.permute.xlu1 %3303  ;;  %3579 = vrot.lane.b32.xlu0 %v7960_v21, %s5652_s30  ;;  %v3937_v28 = vsel %vm1891_vm4, %v3905_v38, %v8057_v6 }
 0x491   : > { %v4000_v52 = vsel %vm2023_vm8, %v3968_v13, %v3304_v57  ;;  %v9551_v57 = vld [vmem:[#allocation5_spill] sm:$0xff]  ;;  %v3969_v31 = vsel %vm1957_vm6, %v3937_v28, %v8200_v25 }
 0x492   : > { %3707 = vrot.lane.b32.xlu1 %v2826_v27, %s5653_s18  ;;  %v3810_v59 = vpop.permute.xlu0 %3809  ;;  %v3906_v2 = vsel %vm1825_vm1, %v7894_v35, %v9551_v57  ;;  %v2799_v13 = vld [vmem:[#allocation3 + $0x138] sm:$0xff] }
 0x493   : > { %v4129_v12 = vsel %vm4124_vm13, %v4096_v36, %v3810_v59  ;;  %v9552_v36 = vld [vmem:[#allocation95_spill] sm:$0xff]  ;;  %v2863_v57 = vld [vmem:[#allocation3 + $0x13a] sm:$0xff] }
 0x494   : > { %v3812_v23 = vpop.permute.xlu1 %3811  ;;  %3325 = vrot.lane.b32.xlu0 %v2825_v42, %s5650_s22  ;;  %5462 = vmatprep.mubr.msk.f32.mxu1 %vm4166_vm14, %v4129_v12  ;;  %v2860_v42 = vld [vmem:[#allocation3 + $0x112] sm:$0xff]  ;;  %v3938_v47 = vsel %vm1891_vm4, %v3906_v2, %v9552_v36  ;;  %v2829_v12 = vld [vmem:[#allocation3 + $0x121] sm:$0xff] }
 0x495   : > { %v4130_v21 = vsel %vm4124_vm13, %v4097_v8, %v3812_v23  ;;  %v3970_v6 = vsel %vm1957_vm6, %v3938_v47, %v8194_v55  ;;  %v4586_v23 = vld [vmem:[%s5844_s19 + $0xa0] sm:$0xff] }
 0x496   : > { %3327 = vrot.lane.b32.xlu1 %v2826_v27, %s5650_s22  ;;  %5463 = vmatmul.mubr.msk.f32.gmra.mxu1 %vm4166_vm14, %v4130_v21  ;;  %v3430_v10 = vpop.permute.xlu0 %3429  ;;  %v2798_v21 = vld [vmem:[#allocation3 + $0x128] sm:$0xff]  ;;  %v2801_v47 = vld [vmem:[#allocation3 + $0x150] sm:$0xff] }
 0x497   : > { %v4032_v15 = vsel %vm4025_vm10, %v3999_v40, %v3430_v10  ;;  %5536 = vmatprep.mubr.msk.f32.mxu0 %vm360_vm0, %v4586_v23  ;;  %v4587_v10 = vld [vmem:[%s5844_s19 + $0xa8] sm:$0xff] }
 0x498   : > { %v3558_v63 = vpop.permute.xlu1 %3557  ;;  %3833 = vrot.lane.b32.xlu0 %v2857_v45, %s5654_s20  ;;  %5537 = vmatmul.mubr.msk.f32.gmra.mxu0 %vm360_vm0, %v4587_v10 }
 0x499   : > { %v4065_v61 = vsel %vm4058_vm11, %v4032_v15, %v3558_v63  ;;  %v9553_v15 = vld [vmem:[#allocation9_spill] sm:$0xff] }
 0x49a   : > { %3835 = vrot.lane.b32.xlu1 %v2858_v20, %s5654_s20  ;;  %v3432_v58 = vpop.permute.xlu0 %3431 }
 0x49b   : > { %v4033_v48 = vsel %vm4025_vm10, %v4000_v52, %v3432_v58  ;;  %v2830_v58 = vld [vmem:[#allocation3 + $0x129] sm:$0xff] }
 0x49c   : > { %v3686_v50 = vpop.permute.xlu1 %3685  ;;  %3453 = vrot.lane.b32.xlu0 %v2857_v45, %s5651_s27 }
 0x49d   : > { %v4098_v19 = vsel %vm4091_vm12, %v4065_v61, %v3686_v50 }
 0x49e   : > { %3581 = vrot.lane.b32.xlu1 %v7975_v54, %s5652_s30  ;;  %v3560_v11 = vpop.permute.xlu0 %3559  ;;  %v2827_v54 = vld [vmem:[#allocation3 + $0x109] sm:$0xff] }
 0x49f   : > { %v4066_v30 = vsel %vm4058_vm11, %v4033_v48, %v3560_v11  ;;  %v9554_v48 = vld [vmem:[#allocation62_spill] sm:$0xff] }
 0x4a0   : > { %v3688_v16 = vpop.permute.xlu1 %3687  ;;  %3455 = vrot.lane.b32.xlu0 %v2858_v20, %s5651_s27 }
 0x4a1   : > { %v4099_v43 = vsel %vm4091_vm12, %v4066_v30, %v3688_v16 }
 0x4a2   : > { %3709 = vrot.lane.b32.xlu1 %v2827_v54, %s5653_s18  ;;  %v3306_v62 = vpop.permute.xlu0 %3305 }
 0x4a3   : > { %v4001_v59 = vsel %vm2023_vm8, %v3969_v31, %v3306_v62  ;;  %v3907_v62 = vsel %vm1825_vm1, %v7910_v3, %v9553_v15  ;;  %v2864_v31 = vld [vmem:[#allocation3 + $0x142] sm:$0xff] }
 0x4a4   : > { %v3308_v49 = vpop.permute.xlu1 %3307  ;;  %3583 = vrot.lane.b32.xlu0 %v2796_v46, %s5652_s30  ;;  %v3939_v46 = vsel %vm1891_vm4, %v3907_v62, %v8068_v5  ;;  %v2834_v62 = vld [vmem:[#allocation3 + $0x159] sm:$0xff] }
 0x4a5   : > { %v4002_v25 = vsel %vm2023_vm8, %v3970_v6, %v3308_v49  ;;  %v3908_v49 = vsel %vm1825_vm1, %v7904_v32, %v9554_v48  ;;  %v3971_v61 = vsel %vm1957_vm6, %v3939_v46, %v8208_v41 }
 0x4a6   : > { %3711 = vrot.lane.b32.xlu1 %v2828_v29, %s5653_s18  ;;  %v3814_v51 = vpop.permute.xlu0 %3813  ;;  %v3940_v3 = vsel %vm1891_vm4, %v3908_v49, %v8061_v24 }
 0x4a7   : > { %v4131_v53 = vsel %vm4124_vm13, %v4098_v19, %v3814_v51  ;;  %v2831_v19 = vld [vmem:[#allocation3 + $0x139] sm:$0xff]  ;;  %v9555_v51 = vld [vmem:[#allocation16_spill] sm:$0xff] }
 0x4a8   : > { %v3816_v39 = vpop.permute.xlu1 %3815  ;;  %3329 = vrot.lane.b32.xlu0 %v2827_v54, %s5650_s22  ;;  %5465 = vmatprep.mubr.msk.f32.mxu1 %vm4166_vm14, %v4131_v53  ;;  %v2862_v54 = vld [vmem:[#allocation3 + $0x12a] sm:$0xff]  ;;  %v3972_v5 = vsel %vm1957_vm6, %v3940_v3, %v9555_v51  ;;  %v2866_v51 = vld [vmem:[#allocation3 + $0x15a] sm:$0xff] }
 0x4a9   : > { %v4132_v26 = vsel %vm4124_vm13, %v4099_v43, %v3816_v39  ;;  %v4588_v43 = vld [vmem:[%s5844_s19 + $0xb0] sm:$0xff] }
 0x4aa   : > { %3331 = vrot.lane.b32.xlu1 %v2828_v29, %s5650_s22  ;;  %5466 = vmatmul.mubr.msk.f32.gmra.mxu1 %vm4166_vm14, %v4132_v26  ;;  %v3434_v60 = vpop.permute.xlu0 %3433  ;;  %v2800_v39 = vld [vmem:[#allocation3 + $0x140] sm:$0xff]  ;;  %v4589_v26 = vld [vmem:[%s5844_s19 + $0xb8] sm:$0xff] }
 0x4ab   : > { %v4034_v8 = vsel %vm4025_vm10, %v4001_v59, %v3434_v60  ;;  %5539 = vmatprep.mubr.msk.f32.mxu0 %vm360_vm0, %v4588_v43  ;;  %v5615_v59 = vld [vmem:[#allocation3 + $0x90] sm:$0xff]  ;;  %v5617_v43 = vld [vmem:[#allocation3 + $0xa8] sm:$0xff] }
 0x4ac   : > { %v3562_v9 = vpop.permute.xlu1 %3561  ;;  %3837 = vrot.lane.b32.xlu0 %v2859_v44, %s5654_s20  ;;  %5540 = vmatmul.mubr.msk.f32.gmra.mxu0 %vm360_vm0, %v4589_v26 }
 0x4ad   : > { %v4067_v55 = vsel %vm4058_vm11, %v4034_v8, %v3562_v9 }
 0x4ae   : > { %3839 = vrot.lane.b32.xlu1 %v2860_v42, %s5654_s20  ;;  %v3436_v17 = vpop.permute.xlu0 %3435 }
 0x4af   : > { %v4035_v45 = vsel %vm4025_vm10, %v4002_v25, %v3436_v17  ;;  %v5616_v25 = vld [vmem:[#allocation3 + $0x98] sm:$0xff] }
 0x4b0   : > { %v3690_v14 = vpop.permute.xlu1 %3689  ;;  %3457 = vrot.lane.b32.xlu0 %v2859_v44, %s5651_s27 }
 0x4b1   : > { %v4100_v50 = vsel %vm4091_vm12, %v4067_v55, %v3690_v14 }
 0x4b2   : > { %3585 = vrot.lane.b32.xlu1 %v2797_v33, %s5652_s30  ;;  %v3564_v37 = vpop.permute.xlu0 %3563 }
 0x4b3   : > { %v4068_v20 = vsel %vm4058_vm11, %v4035_v45, %v3564_v37  ;;  %v9559_v45 = vld [vmem:[#allocation34_spill] sm:$0xff] }
 0x4b4   : > { %v3692_v27 = vpop.permute.xlu1 %3691  ;;  %3459 = vrot.lane.b32.xlu0 %v2860_v42, %s5651_s27  ;;  %v2832_v42 = vld [vmem:[#allocation3 + $0x141] sm:$0xff] }
 0x4b5   : > { %v4101_v22 = vsel %vm4091_vm12, %v4068_v20, %v3692_v27  ;;  %v9560_v20 = vld [vmem:[#allocation134_spill] sm:$0xff] }
 0x4b6   : > { %3713 = vrot.lane.b32.xlu1 %v2829_v12, %s5653_s18  ;;  %v3310_v35 = vpop.permute.xlu0 %3309 }
 0x4b7   : > { %v4003_v29 = vsel %vm2023_vm8, %v3971_v61, %v3310_v35  ;;  %v9557_v35 = vld [vmem:[#allocation156_spill] sm:$0xff] }
 0x4b8   : > { %v3312_v63 = vpop.permute.xlu1 %3311  ;;  %3587 = vrot.lane.b32.xlu0 %v2798_v21, %s5652_s30  ;;  %v9558_v21 = vld [vmem:[#allocation67_spill] sm:$0xff] }
 0x4b9   : > { %v4004_v41 = vsel %vm2023_vm8, %v3972_v5, %v3312_v63  ;;  %v3910_v10 = vsel %vm1825_vm1, %v5616_v25, %v9558_v21  ;;  %v4592_v21 = vld [vmem:[%s5844_s19 + $0xd0] sm:$0xff] }
 0x4ba   : > { %3715 = vrot.lane.b32.xlu1 %v2830_v58, %s5653_s18  ;;  %v3818_v18 = vpop.permute.xlu0 %3817 }
 0x4bb   : > { %v4133_v11 = vsel %vm4124_vm13, %v4100_v50, %v3818_v18  ;;  %v2833_v18 = vld [vmem:[#allocation3 + $0x151] sm:$0xff] }
 0x4bc   : > { %v3820_v56 = vpop.permute.xlu1 %3819  ;;  %3333 = vrot.lane.b32.xlu0 %v2829_v12, %s5650_s22  ;;  %5468 = vmatprep.mubr.msk.f32.mxu1 %vm4166_vm14, %v4133_v11  ;;  %v9556_v12 = vld [vmem:[#allocation11_spill] sm:$0xff]  ;;  %v9561_v11 = vld [vmem:[#allocation57_spill] sm:$0xff] }
 0x4bd   : > { %v4134_v7 = vsel %vm4124_vm13, %v4101_v22, %v3820_v56  ;;  %v3909_v6 = vsel %vm1825_vm1, %v5615_v59, %v9556_v12 }
 0x4be   : > { %3335 = vrot.lane.b32.xlu1 %v2830_v58, %s5650_s22  ;;  %5469 = vmatmul.mubr.msk.f32.gmra.mxu1 %vm4166_vm14, %v4134_v7  ;;  %v3438_v16 = vpop.permute.xlu0 %3437  ;;  %v3941_v23 = vsel %vm1891_vm4, %v3909_v6, %v9557_v35  ;;  %v3942_v58 = vsel %vm1891_vm4, %v3910_v10, %v9560_v20  ;;  %v2867_v20 = vld [vmem:[#allocation3 + $0x16a] sm:$0xff] }
 0x4bf   : > { %v4036_v53 = vsel %vm4025_vm10, %v4003_v29, %v3438_v16  ;;  %v3973_v63 = vsel %vm1957_vm6, %v3941_v23, %v9559_v45  ;;  %v3974_v22 = vsel %vm1957_vm6, %v3942_v58, %v9561_v11  ;;  %v4590_v16 = vld [vmem:[%s5844_s19 + $0xc0] sm:$0xff] }
 0x4c0   : > { %v3566_v40 = vpop.permute.xlu1 %3565  ;;  %3841 = vrot.lane.b32.xlu0 %v2861_v34, %s5654_s20  ;;  %5542 = vmatprep.mubr.msk.f32.mxu0 %vm360_vm0, %v4590_v16  ;;  %v2865_v29 = vld [vmem:[#allocation3 + $0x152] sm:$0xff]  ;;  %v9568_v16 = vld [vmem:[#allocation14_spill] sm:$0xff] }
 0x4c1   : > { %v4069_v44 = vsel %vm4058_vm11, %v4036_v53, %v3566_v40  ;;  %v2802_v40 = vld [vmem:[#allocation3 + $0x158] sm:$0xff] }
 0x4c2   : > { %3843 = vrot.lane.b32.xlu1 %v2862_v54, %s5654_s20  ;;  %v3440_v0 = vpop.permute.xlu0 %3439 }
 0x4c3   : > { %v4037_v24 = vsel %vm4025_vm10, %v4004_v41, %v3440_v0  ;;  %v9562_v41 = vld [vmem:[#allocation66_spill] sm:$0xff] }
 0x4c4   : > { %v3694_v1 = vpop.permute.xlu1 %3693  ;;  %3461 = vrot.lane.b32.xlu0 %v2861_v34, %s5651_s27 }
 0x4c5   : > { %v4102_v17 = vsel %vm4091_vm12, %v4069_v44, %v3694_v1  ;;  %v5618_v44 = vld [vmem:[#allocation3 + $0xb0] sm:$0xff] }
 0x4c6   : > { %3589 = vrot.lane.b32.xlu1 %v2799_v13, %s5652_s30  ;;  %v3568_v52 = vpop.permute.xlu0 %3567 }
 0x4c7   : > { %v4070_v9 = vsel %vm4058_vm11, %v4037_v24, %v3568_v52  ;;  %v9563_v24 = vld [vmem:[#allocation6_spill] sm:$0xff] }
 0x4c8   : > { %v3696_v30 = vpop.permute.xlu1 %3695  ;;  %3463 = vrot.lane.b32.xlu0 %v2862_v54, %s5651_s27  ;;  %v4591_v54 = vld [vmem:[%s5844_s19 + $0xc8] sm:$0xff] }
 0x4c9   : > { %v4103_v4 = vsel %vm4091_vm12, %v4070_v9, %v3696_v30  ;;  %5543 = vmatmul.mubr.msk.f32.gmra.mxu0 %vm360_vm0, %v4591_v54  ;;  %v9564_v9 = vld [vmem:[#allocation12_spill] sm:$0xff] }
 0x4ca   : > { %3717 = vrot.lane.b32.xlu1 %v2831_v19, %s5653_s18  ;;  %v3314_v32 = vpop.permute.xlu0 %3313  ;;  %5545 = vmatprep.mubr.msk.f32.mxu0 %vm360_vm0, %v4592_v21  ;;  %v9569_v54 = vld [vmem:[#allocation28_spill] sm:$0xff] }
 0x4cb   : > { %v4005_v50 = vsel %vm2023_vm8, %v3973_v63, %v3314_v32  ;;  %v2803_v32 = vld [vmem:[#allocation3 + $0x168] sm:$0xff] }
 0x4cc   : > { %v3316_v60 = vpop.permute.xlu1 %3315  ;;  %3591 = vrot.lane.b32.xlu0 %v2800_v39, %s5652_s30  ;;  %v3911_v39 = vsel %vm1825_vm1, %v5617_v43, %v9562_v41  ;;  %v4593_v63 = vld [vmem:[%s5844_s19 + $0xd8] sm:$0xff] }
 0x4cd   : > { %v4006_v34 = vsel %vm2023_vm8, %v3974_v22, %v3316_v60  ;;  %v3943_v60 = vsel %vm1891_vm4, %v3911_v39, %v9563_v24  ;;  %5546 = vmatmul.mubr.msk.f32.gmra.mxu0 %vm360_vm0, %v4593_v63  ;;  %v2837_v39 = vld [vmem:[#allocation3 + $0x181] sm:$0xff] }
 0x4ce   : > { %3719 = vrot.lane.b32.xlu1 %v2832_v42, %s5653_s18  ;;  %v3822_v14 = vpop.permute.xlu0 %3821 }
 0x4cf   : > { %v4135_v33 = vsel %vm4124_vm13, %v4102_v17, %v3822_v14  ;;  %v9565_v17 = vld [vmem:[#allocation63_spill] sm:$0xff] }
 0x4d0   : > { %v3824_v38 = vpop.permute.xlu1 %3823  ;;  %3337 = vrot.lane.b32.xlu0 %v2831_v19, %s5650_s22  ;;  %5471 = vmatprep.mubr.msk.f32.mxu1 %vm4166_vm14, %v4135_v33  ;;  %v3975_v14 = vsel %vm1957_vm6, %v3943_v60, %v9565_v17 }
 0x4d1   : > { %v4136_v37 = vsel %vm4124_vm13, %v4103_v4, %v3824_v38  ;;  %v9566_v4 = vld [vmem:[#allocation97_spill] sm:$0xff] }
 0x4d2   : > { %3339 = vrot.lane.b32.xlu1 %v2832_v42, %s5650_s22  ;;  %5472 = vmatmul.mubr.msk.f32.gmra.mxu1 %vm4166_vm14, %v4136_v37  ;;  %v3442_v28 = vpop.permute.xlu0 %3441  ;;  %v3912_v42 = vsel %vm1825_vm1, %v5618_v44, %v9564_v9  ;;  %v2806_v44 = vld [vmem:[#allocation3 + $0x188] sm:$0xff] }
 0x4d3   : > { %v4038_v56 = vsel %vm4025_vm10, %v4005_v50, %v3442_v28  ;;  %v3944_v38 = vsel %vm1891_vm4, %v3912_v42, %v9566_v4  ;;  %v2835_v28 = vld [vmem:[#allocation3 + $0x169] sm:$0xff]  ;;  %v2836_v50 = vld [vmem:[#allocation3 + $0x171] sm:$0xff] }
 0x4d4   : > { %v3570_v2 = vpop.permute.xlu1 %3569  ;;  %3845 = vrot.lane.b32.xlu0 %v2863_v57, %s5654_s20  ;;  %v4595_v4 = vld [vmem:[%s5844_s19 + $0xe8] sm:$0xff] }
 0x4d5   : > { %v4071_v13 = vsel %vm4058_vm11, %v4038_v56, %v3570_v2  ;;  %v2773_v56 = vld [vmem:[#allocation3 + $0x172] sm:$0xff] }
 0x4d6   : > { %3847 = vrot.lane.b32.xlu1 %v2864_v31, %s5654_s20  ;;  %v3444_v27 = vpop.permute.xlu0 %3443 }
 0x4d7   : > { %v4039_v0 = vsel %vm4025_vm10, %v4006_v34, %v3444_v27 }
 0x4d8   : > { %v3698_v36 = vpop.permute.xlu1 %3697  ;;  %3465 = vrot.lane.b32.xlu0 %v2863_v57, %s5651_s27  ;;  %v9567_v57 = vld [vmem:[#allocation76_spill] sm:$0xff] }
 0x4d9   : > { %v4104_v52 = vsel %vm4091_vm12, %v4071_v13, %v3698_v36  ;;  %v3976_v2 = vsel %vm1957_vm6, %v3944_v38, %v9567_v57  ;;  %v9570_v13 = vld [vmem:[#allocation70_spill] sm:$0xff]  ;;  %v2838_v57 = vld [vmem:[#allocation3 + $0x189] sm:$0xff] }
 0x4da   : > { %3593 = vrot.lane.b32.xlu1 %v2801_v47, %s5652_s30  ;;  %v3572_v8 = vpop.permute.xlu0 %3571  ;;  %v2804_v47 = vld [vmem:[#allocation3 + $0x170] sm:$0xff] }
 0x4db   : > { %v4072_v15 = vsel %vm4058_vm11, %v4039_v0, %v3572_v8 }
 0x4dc   : > { %v3700_v55 = vpop.permute.xlu1 %3699  ;;  %3467 = vrot.lane.b32.xlu0 %v2864_v31, %s5651_s27 }
 0x4dd   : > { %v4105_v49 = vsel %vm4091_vm12, %v4072_v15, %v3700_v55 }
 0x4de   : > { %3721 = vrot.lane.b32.xlu1 %v2833_v18, %s5653_s18  ;;  %v3318_v7 = vpop.permute.xlu0 %3317 }
 0x4df   : > { %v4007_v37 = vsel %vm2023_vm8, %v3975_v14, %v3318_v7  ;;  %v5619_v7 = vld [vmem:[#allocation3 + $0xc0] sm:$0xff] }
 0x4e0   : > { %v3320_v1 = vpop.permute.xlu1 %3319  ;;  %3595 = vrot.lane.b32.xlu0 %v2802_v40, %s5652_s30  ;;  %v3913_v34 = vsel %vm1825_vm1, %v5619_v7, %v9568_v16 }
 0x4e1   : > { %v4008_v36 = vsel %vm2023_vm8, %v3976_v2, %v3320_v1  ;;  %v3945_v0 = vsel %vm1891_vm4, %v3913_v34, %v9569_v54  ;;  %v5620_v1 = vld [vmem:[#allocation3 + $0xc8] sm:$0xff] }
 0x4e2   : > { %3723 = vrot.lane.b32.xlu1 %v2834_v62, %s5653_s18  ;;  %v3826_v46 = vpop.permute.xlu0 %3825  ;;  %v3914_v15 = vsel %vm1825_vm1, %v5620_v1, %v9570_v13  ;;  %v4597_v34 = vld [vmem:[%s5844_s19 + $0xf8] sm:$0xff] }
 0x4e3   : > { %v4137_v48 = vsel %vm4124_vm13, %v4104_v52, %v3826_v46 }
 0x4e4   : > { %v3828_v61 = vpop.permute.xlu1 %3827  ;;  %3341 = vrot.lane.b32.xlu0 %v2833_v18, %s5650_s22  ;;  %5474 = vmatprep.mubr.msk.f32.mxu1 %vm4166_vm14, %v4137_v48  ;;  %v9572_v48 = vld [vmem:[#allocation158_spill] sm:$0xff] }
 0x4e5   : > { %v4138_v30 = vsel %vm4124_vm13, %v4105_v49, %v3828_v61  ;;  %v3946_v49 = vsel %vm1891_vm4, %v3914_v15, %v9572_v48 }
 0x4e6   : > { %3343 = vrot.lane.b32.xlu1 %v2834_v62, %s5650_s22  ;;  %5475 = vmatmul.mubr.msk.f32.gmra.mxu1 %vm4166_vm14, %v4138_v30  ;;  %v3446_v3 = vpop.permute.xlu0 %3445  ;;  %v9571_v62 = vld [vmem:[#allocation79_spill] sm:$0xff]  ;;  %v2710_v30 = vld [vmem:[#allocation3 + $0x180] sm:$0xff] }
 0x4e7   : > { %v4040_v31 = vsel %vm4025_vm10, %v4007_v37, %v3446_v3  ;;  %v3977_v52 = vsel %vm1957_vm6, %v3945_v0, %v9571_v62  ;;  %v9573_v3 = vld [vmem:[#allocation135_spill] sm:$0xff]  ;;  %v2807_v0 = vld [vmem:[#allocation3 + $0x198] sm:$0xff] }
 0x4e8   : > { %v3574_v19 = vpop.permute.xlu1 %3573  ;;  %3849 = vrot.lane.b32.xlu0 %v2865_v29, %s5654_s20  ;;  %v2869_v37 = vld [vmem:[#allocation3 + $0x182] sm:$0xff] }
 0x4e9   : > { %v4073_v6 = vsel %vm4058_vm11, %v4040_v31, %v3574_v19  ;;  %v5621_v31 = vld [vmem:[#allocation3 + $0xd8] sm:$0xff]  ;;  %v2840_v62 = vld [vmem:[#allocation3 + $0x1a1] sm:$0xff] }
 0x4ea   : > { %3851 = vrot.lane.b32.xlu1 %v2866_v51, %s5654_s20  ;;  %v3448_v5 = vpop.permute.xlu0 %3447 }
 0x4eb   : > { %v4041_v59 = vsel %vm4025_vm10, %v4008_v36, %v3448_v5 }
 0x4ec   : > { %v3702_v53 = vpop.permute.xlu1 %3701  ;;  %3469 = vrot.lane.b32.xlu0 %v2865_v29, %s5651_s27  ;;  %v3978_v29 = vsel %vm1957_vm6, %v3946_v49, %v9573_v3  ;;  %v2839_v49 = vld [vmem:[#allocation3 + $0x199] sm:$0xff] }
 0x4ed   : > { %v4106_v35 = vsel %vm4091_vm12, %v4073_v6, %v3702_v53  ;;  %v5622_v6 = vld [vmem:[#allocation3 + $0xe0] sm:$0xff] }
 0x4ee   : > { %3597 = vrot.lane.b32.xlu1 %v2803_v32, %s5652_s30  ;;  %v3576_v26 = vpop.permute.xlu0 %3575 }
 0x4ef   : > { %v4074_v8 = vsel %vm4058_vm11, %v4041_v59, %v3576_v26  ;;  %v9575_v59 = vld [vmem:[#allocation53_spill] sm:$0xff] }
 0x4f0   : > { %v3704_v33 = vpop.permute.xlu1 %3703  ;;  %3471 = vrot.lane.b32.xlu0 %v2866_v51, %s5651_s27 }
 0x4f1   : > { %v4107_v10 = vsel %vm4091_vm12, %v4074_v8, %v3704_v33  ;;  %v4594_v33 = vld [vmem:[%s5844_s19 + $0xe0] sm:$0xff]  ;;  %v9576_v8 = vld [vmem:[#allocation15_spill] sm:$0xff] }
 0x4f2   : > { %3725 = vrot.lane.b32.xlu1 %v2835_v28, %s5653_s18  ;;  %v3322_v27 = vpop.permute.xlu0 %3321  ;;  %5548 = vmatprep.mubr.msk.f32.mxu0 %vm360_vm0, %v4594_v33 }
 0x4f3   : > { %v4009_v61 = vsel %vm2023_vm8, %v3977_v52, %v3322_v27  ;;  %5549 = vmatmul.mubr.msk.f32.gmra.mxu0 %vm360_vm0, %v4595_v4  ;;  %v9574_v27 = vld [vmem:[#allocation69_spill] sm:$0xff] }
 0x4f4   : > { %v3324_v12 = vpop.permute.xlu1 %3323  ;;  %3599 = vrot.lane.b32.xlu0 %v2804_v47, %s5652_s30  ;;  %v3915_v36 = vsel %vm1825_vm1, %v5621_v31, %v9574_v27  ;;  %v9585_v27 = vld [vmem:[#allocation159_spill] sm:$0xff] }
 0x4f5   : > { %v4010_v5 = vsel %vm2023_vm8, %v3978_v29, %v3324_v12  ;;  %v3947_v12 = vsel %vm1891_vm4, %v3915_v36, %v9575_v59  ;;  %v2871_v29 = vld [vmem:[#allocation3 + $0x19a] sm:$0xff] }
 0x4f6   : > { %3345 = vrot.lane.b32.xlu1 %v2835_v28, %s5650_s22  ;;  %v3830_v23 = vpop.permute.xlu0 %3829 }
 0x4f7   : > { %v4139_v25 = vsel %vm4124_vm13, %v4106_v35, %v3830_v23  ;;  %v3916_v35 = vsel %vm1825_vm1, %v5622_v6, %v9576_v8  ;;  %v9577_v23 = vld [vmem:[#allocation138_spill] sm:$0xff] }
 0x4f8   : > { %v3832_v45 = vpop.permute.xlu1 %3831  ;;  %3219 = vrot.lane.b32.xlu0 %v2804_v47, %s5648_s25  ;;  %5477 = vmatprep.mubr.msk.f32.mxu1 %vm4166_vm14, %v4139_v25  ;;  %v3979_v25 = vsel %vm1957_vm6, %v3947_v12, %v9577_v23  ;;  %v8722_v12 = vld [vmem:[%s9063_s6] ss:$0 sm:$0xff] }
 0x4f9   : > { %v4140_v55 = vsel %vm4124_vm13, %v4107_v10, %v3832_v45  ;;  %v9578_v10 = vld [vmem:[#allocation10_spill] sm:$0xff] }
 0x4fa   : > { %3853 = vrot.lane.b32.xlu1 %v2867_v20, %s5654_s20  ;;  %5478 = vmatmul.mubr.msk.f32.gmra.mxu1 %vm4166_vm14, %v4140_v55  ;;  %v3450_v58 = vpop.permute.xlu0 %3449  ;;  %v3948_v45 = vsel %vm1891_vm4, %v3916_v35, %v9578_v10  ;;  %v2775_v55 = vld [vmem:[#allocation3 + $0x18a] sm:$0xff] }
 0x4fb   : > { %v4042_v19 = vsel %vm4025_vm10, %v4009_v61, %v3450_v58 }
 0x4fc   : > { %v3578_v18 = vpop.permute.xlu1 %3577  ;;  %3727 = vrot.lane.b32.xlu0 %v2836_v50, %s5653_s18 }
 0x4fd   : > { %v4075_v43 = vsel %vm4058_vm11, %v4042_v19, %v3578_v18  ;;  %v5508_v19 = vpop.f32.mrf.mxu0 }
 0x4fe   : > { %3473 = vrot.lane.b32.xlu1 %v2867_v20, %s5651_s27  ;;  %v3452_v11 = vpop.permute.xlu0 %3451  ;;  %v9579_v20 = vld [vmem:[#allocation98_spill] sm:$0xff] }
 0x4ff   : > { %v4043_v53 = vsel %vm4025_vm10, %v4010_v5, %v3452_v11  ;;  %v3980_v58 = vsel %vm1957_vm6, %v3948_v45, %v9579_v20 }
 0x500   : > { %v3706_v22 = vpop.permute.xlu1 %3705  ;;  %3347 = vrot.lane.b32.xlu0 %v2836_v50, %s5650_s22 }
 0x501   : > { %v4108_v26 = vsel %vm4091_vm12, %v4075_v43, %v3706_v22  ;;  %v2808_v22 = vld [vmem:[#allocation3 + $0x1a0] sm:$0xff]  ;;  %v5623_v43 = vld [vmem:[#allocation3 + $0xf0] sm:$0xff] }
 0x502   : > { %3475 = vrot.lane.b32.xlu1 %v2773_v56, %s5651_s27  ;;  %v3580_v40 = vpop.permute.xlu0 %3579 }
 0x503   : > { %v4076_v41 = vsel %vm4058_vm11, %v4043_v53, %v3580_v40  ;;  %v8691_v53 = vld [vmem:[%s9065_s8] ss:$0 sm:$0xff] }
 0x504   : > { %v3708_v46 = vpop.permute.xlu1 %3707  ;;  %3855 = vrot.lane.b32.xlu0 %v2773_v56, %s5654_s20  ;;  %v4596_v56 = vld [vmem:[%s5844_s19 + $0xf0] sm:$0xff] }
 0x505   : > { %v4109_v9 = vsel %vm4091_vm12, %v4076_v41, %v3708_v46  ;;  %5551 = vmatprep.mubr.msk.f32.mxu0 %vm360_vm0, %v4596_v56  ;;  %v9580_v41 = vld [vmem:[#allocation17_spill] sm:$0xff] }
 0x506   : > { %3221 = vrot.lane.b32.xlu1 %v2710_v30, %s5648_s25  ;;  %v3326_v51 = vpop.permute.xlu0 %3325  ;;  %5552 = vmatmul.mubr.msk.f32.gmra.mxu0 %vm360_vm0, %v4597_v34 }
 0x507   : > { %v4011_v63 = vsel %vm2023_vm8, %v3979_v25, %v3326_v51 }
 0x508   : > { %v3328_v32 = vpop.permute.xlu1 %3327  ;;  %3601 = vrot.lane.b32.xlu0 %v2710_v30, %s5652_s30  ;;  %v2872_v30 = vld [vmem:[#allocation3 + $0x1a2] sm:$0xff] }
 0x509   : > { %v4012_v11 = vsel %vm2023_vm8, %v3980_v58, %v3328_v32  ;;  %v4764_v32 = vpop.f32.mrf.mxu0 }
 0x50a   : > { %3729 = vrot.lane.b32.xlu1 %v2837_v39, %s5653_s18  ;;  %v3834_v24 = vpop.permute.xlu0 %3833 }
 0x50b   : > { %v4141_v60 = vsel %vm4124_vm13, %v4108_v26, %v3834_v24  ;;  %v9581_v24 = vld [vmem:[#allocation74_spill] sm:$0xff] }
 0x50c   : > { %v3836_v42 = vpop.permute.xlu1 %3835  ;;  %3603 = vrot.lane.b32.xlu0 %v2806_v44, %s5652_s30  ;;  %5480 = vmatprep.mubr.msk.f32.mxu1 %vm4166_vm14, %v4141_v60 }
 0x50d   : > { %v4142_v17 = vsel %vm4124_vm13, %v4109_v9, %v3836_v42  ;;  %v5624_v9 = vld [vmem:[#allocation3 + $0xf8] sm:$0xff]  ;;  %v9582_v42 = vld [vmem:[#allocation72_spill] sm:$0xff] }
 0x50e   : > { %3349 = vrot.lane.b32.xlu1 %v2837_v39, %s5650_s22  ;;  %v3454_v14 = vpop.permute.xlu0 %3453  ;;  %5481 = vmatmul.mubr.msk.f32.gmra.mxu1 %vm4166_vm14, %v4142_v17  ;;  %v3917_v39 = vsel %vm1825_vm1, %v5623_v43, %v9580_v41  ;;  %v3918_v17 = vsel %vm1825_vm1, %v5624_v9, %v9582_v42  ;;  %v9589_v43 = vld [vmem:[#allocation162_spill] sm:$0xff]  ;;  %v9591_v9 = vld [vmem:[#allocation13_spill] sm:$0xff] }
 0x50f   : > { %v4044_v50 = vsel %vm4025_vm10, %v4011_v63, %v3454_v14  ;;  %v3949_v60 = vsel %vm1891_vm4, %v3917_v39, %v9581_v24  ;;  %v9583_v14 = vld [vmem:[#allocation101_spill] sm:$0xff]  ;;  %v9590_v24 = vld [vmem:[#allocation59_spill] sm:$0xff] }
 0x510   : > { %v3582_v38 = vpop.permute.xlu1 %3581  ;;  %3223 = vrot.lane.b32.xlu0 %v2806_v44, %s5648_s25  ;;  %v4931_v44 = vmul.f32 %v5508_v19, %v8691_v53  ;;  %v3981_v33 = vsel %vm1957_vm6, %v3949_v60, %v9583_v14 }
 0x511   : > { %v4077_v40 = vsel %vm4058_vm11, %v4044_v50, %v3582_v38  ;;  %v8705_v38 = vld [vmem:[%s9062_s5] ss:$0 sm:$0xff] }
 0x512   : > { %3857 = vrot.lane.b32.xlu1 %v2869_v37, %s5654_s20  ;;  %v3456_v28 = vpop.permute.xlu0 %3455 }
 0x513   : > { %v4045_v7 = vsel %vm4025_vm10, %v4012_v11, %v3456_v28  ;;  %v4930_v28 = vmul.f32 %v8691_v53, %v4764_v32 }
 0x514   : > { %v3710_v2 = vpop.permute.xlu1 %3709  ;;  %3731 = vrot.lane.b32.xlu0 %v2838_v57, %s5653_s18 }
 0x515   : > { %v4110_v1 = vsel %vm4091_vm12, %v4077_v40, %v3710_v2 }
 0x516   : > { %3477 = vrot.lane.b32.xlu1 %v2869_v37, %s5651_s27  ;;  %v3584_v47 = vpop.permute.xlu0 %3583  ;;  %v8710_v37 = vld [vmem:[%s9066_s9] ss:$0 sm:$0xff] }
 0x517   : > { %v4078_v54 = vsel %vm4058_vm11, %v4045_v7, %v3584_v47  ;;  %v4970_v23 = vadd.f32 %v8710_v37, %v4931_v44 }
 0x518   : > { %v3712_v21 = vpop.permute.xlu1 %3711  ;;  %3351 = vrot.lane.b32.xlu0 %v2838_v57, %s5650_s22  ;;  %v9584_v57 = vld [vmem:[#allocation30_spill] sm:$0xff] }
 0x519   : > { %v4111_v52 = vsel %vm4091_vm12, %v4078_v54, %v3712_v21  ;;  %v3950_v2 = vsel %vm1891_vm4, %v3918_v17, %v9584_v57  ;;  %v4969_v21 = vadd.f32 %v8710_v37, %v4930_v28 }
 0x51a   : > { %3479 = vrot.lane.b32.xlu1 %v2775_v55, %s5651_s27  ;;  %v3330_v18 = vpop.permute.xlu0 %3329  ;;  %v3982_v36 = vsel %vm1957_vm6, %v3950_v2, %v9585_v27 }
 0x51b   : > { %v4013_v31 = vsel %vm2023_vm8, %v3981_v33, %v3330_v18 }
 0x51c   : > { %v3332_v16 = vpop.permute.xlu1 %3331  ;;  %3859 = vrot.lane.b32.xlu0 %v2775_v55, %s5654_s20 }
 0x51d   : > { %v4014_v8 = vsel %vm2023_vm8, %v3982_v36, %v3332_v16 }
 0x51e   : > { %3607 = vrot.lane.b32.xlu1 %v2808_v22, %s5652_s30  ;;  %v3838_v13 = vpop.permute.xlu0 %3837 }
 0x51f   : > { %v4143_v15 = vsel %vm4124_vm13, %v4110_v1, %v3838_v13 }
 0x520   : > { %v3840_v46 = vpop.permute.xlu1 %3839  ;;  %3605 = vrot.lane.b32.xlu0 %v2807_v0, %s5652_s30  ;;  %5483 = vmatprep.mubr.msk.f32.mxu1 %vm4166_vm14, %v4143_v15  ;;  %s8742_s30 = scalar_lea.vmem %s9067_s10, %s5267_s16  ;;  %v5511_v15 = vpop.f32.mrf.mxu0 }
 0x521   : > { %v4144_v48 = vsel %vm4124_vm13, %v4111_v52, %v3840_v46  ;;  %v4933_v19 = vmul.f32 %v5511_v15, %v8691_v53 }
 0x522   : > { %3735 = vrot.lane.b32.xlu1 %v2840_v62, %s5653_s18  ;;  %v3458_v61 = vpop.permute.xlu0 %3457  ;;  %5484 = vmatmul.mubr.msk.f32.gmra.mxu1 %vm4166_vm14, %v4144_v48  ;;  %v4774_v46 = vpop.f32.mrf.mxu0  ;;  %v5625_v48 = vld [vmem:[#allocation3 + $0x108] sm:$0xff] }
 0x523   : > { %v4046_v47 = vsel %vm4025_vm10, %v4013_v31, %v3458_v61  ;;  %v4972_v57 = vadd.f32 %v8710_v37, %v4933_v19 }
 0x524   : > { %v3586_v3 = vpop.permute.xlu1 %3585  ;;  %3733 = vrot.lane.b32.xlu0 %v2839_v49, %s5653_s18  ;;  %v9586_v49 = vld [vmem:[#allocation71_spill] sm:$0xff] }
 0x525   : > { %v4079_v63 = vsel %vm4058_vm11, %v4046_v47, %v3586_v3  ;;  %v3919_v61 = vsel %vm1825_vm1, %v5625_v48, %v9586_v49  ;;  %v9587_v3 = vld [vmem:[#allocation133_spill] sm:$0xff] }
 0x526   : > { %3863 = vrot.lane.b32.xlu1 %v2872_v30, %s5654_s20  ;;  %v3460_v51 = vpop.permute.xlu0 %3459  ;;  %v9595_v48 = vld [vmem:[#allocation21_spill] sm:$0xff] }
 0x527   : > { %v4047_v25 = vsel %vm4025_vm10, %v4014_v8, %v3460_v51  ;;  %v5626_v51 = vld [vmem:[#allocation3 + $0x110] sm:$0xff] }
 0x528   : > { %v3714_v5 = vpop.permute.xlu1 %3713  ;;  %3861 = vrot.lane.b32.xlu0 %v2871_v29, %s5654_s20  ;;  %v3951_v29 = vsel %vm1891_vm4, %v3919_v61, %v9587_v3  ;;  %v9596_v3 = vld [vmem:[#allocation77_spill] sm:$0xff] }
 0x529   : > { %v4112_v50 = vsel %vm4091_vm12, %v4079_v63, %v3714_v5  ;;  %v9588_v5 = vld [vmem:[#allocation18_spill] sm:$0xff]  ;;  %v3983_v41 = vsel %vm1957_vm6, %v3951_v29, %v9589_v43 }
 0x52a   : > { %v3588_v26 = vpop.permute.xlu0 %3587  ;;  %v3920_v32 = vsel %vm1825_vm1, %v5626_v51, %v9588_v5  ;;  %v9597_v51 = vld [vmem:[#allocation36_spill] sm:$0xff] }
 0x52b   : > { %v4080_v55 = vsel %vm4058_vm11, %v4047_v25, %v3588_v26  ;;  %v4932_v26 = vmul.f32 %v8691_v53, %v4774_v46  ;;  %v3952_v60 = vsel %vm1891_vm4, %v3920_v32, %v9590_v24 }
 0x52c   : > { %v3716_v4 = vpop.permute.xlu1 %3715  ;;  %v3984_v42 = vsel %vm1957_vm6, %v3952_v60, %v9591_v9 }
 0x52d   : > { %v4113_v7 = vsel %vm4091_vm12, %v4080_v55, %v3716_v4  ;;  %v4971_v31 = vadd.f32 %v8710_v37, %v4932_v26 }
 0x52e   : > { %v5458_v59 = vpop.f32.mrf.mxu1  ;;  %v3334_v6 = vpop.permute.xlu0 %3333 }
 0x52f   : > { %v4496_v35 = vmul.f32 %v5458_v59, %v8705_v38  ;;  %v4015_v44 = vsel %vm2023_vm8, %v3983_v41, %v3334_v6 }
 0x530   : > { %v3336_v10 = vpop.permute.xlu1 %3335  ;;  %v4329_v45 = vpop.f32.mrf.mxu1 }
 0x531   : > { %v4535_v20 = vadd.f32 %v8722_v12, %v4496_v35  ;;  %v4495_v58 = vmul.f32 %v8705_v38, %v4329_v45  ;;  %v4016_v4 = vsel %vm2023_vm8, %v3984_v42, %v3336_v10 }
 0x532   : > { %v3842_v18 = vpop.permute.xlu0 %3841 }
 0x533   : > { %v5002_v11 = vadd.f32 %v4970_v23, %v4535_v20  ;;  %v4534_v22 = vadd.f32 %v8722_v12, %v4495_v58  ;;  %v4145_v56 = vsel %vm4124_vm13, %v4112_v50, %v3842_v18 }
 0x534   : > { %v3844_v16 = vpop.permute.xlu1 %3843  ;;  %5486 = vmatprep.mubr.msk.f32.mxu1 %vm4166_vm14, %v4145_v56 }
 0x535   : > { %v5034_v34 = vmax.f32 %v5002_v11, 0.0  ;;  %v5001_v40 = vadd.f32 %v4969_v21, %v4534_v22  ;;  %v4146_v54 = vsel %vm4124_vm13, %v4113_v7, %v3844_v16  ;;  %v5514_v22 = vpop.f32.mrf.mxu0 }
 0x536   : > { %v3462_v0 = vpop.permute.xlu0 %3461  ;;  %5487 = vmatmul.mubr.msk.f32.gmra.mxu1 %vm4166_vm14, %v4146_v54  ;;  %v4935_v15 = vmul.f32 %v5514_v22, %v8691_v53 }
 0x537   : > { %5066 = vst.msk [vmem:[%s8742_s30 + $0x8] sm:$0xff] %vm1825_vm1, %v5034_v34  ;;  %v5033_v1 = vmax.f32 %v5001_v40, 0.0  ;;  %v4048_v17 = vsel %vm4025_vm10, %v4015_v44, %v3462_v0  ;;  %v4784_v16 = vpop.f32.mrf.mxu0  ;;  %v5627_v34 = vld [vmem:[#allocation3 + $0x120] sm:$0xff] }
 0x538   : > { %v3590_v13 = vpop.permute.xlu1 %3589  ;;  %v9592_v40 = vld [vmem:[#allocation22_spill] sm:$0xff]  ;;  %v4974_v24 = vadd.f32 %v8710_v37, %v4935_v15 }
 0x539   : > { %5065 = vst.msk [vmem:[%s8742_s30] sm:$0xff] %vm1825_vm1, %v5033_v1  ;;  %v4081_v47 = vsel %vm4058_vm11, %v4048_v17, %v3590_v13  ;;  %v3921_v54 = vsel %vm1825_vm1, %v5627_v34, %v9592_v40  ;;  %v9593_v1 = vld [vmem:[#allocation96_spill] sm:$0xff] }
 0x53a   : > { %v3464_v62 = vpop.permute.xlu0 %3463  ;;  %v3953_v13 = vsel %vm1891_vm4, %v3921_v54, %v9593_v1 }
 0x53b   : > { %v4049_v2 = vsel %vm4025_vm10, %v4016_v4, %v3464_v62  ;;  %v5628_v62 = vld [vmem:[#allocation3 + $0x128] sm:$0xff]  ;;  %v3985_v49 = vsel %vm1957_vm6, %v3953_v13, %v9595_v48 }
 0x53c   : > { %v3718_v52 = vpop.permute.xlu1 %3717 }
 0x53d   : > { %v4114_v35 = vsel %vm4091_vm12, %v4081_v47, %v3718_v52  ;;  %v9594_v52 = vld [vmem:[#allocation20_spill] sm:$0xff] }
 0x53e   : > { %v3592_v30 = vpop.permute.xlu0 %3591  ;;  %v3922_v46 = vsel %vm1825_vm1, %v5628_v62, %v9594_v52 }
 0x53f   : > { %v4082_v59 = vsel %vm4058_vm11, %v4049_v2, %v3592_v30  ;;  %v4934_v30 = vmul.f32 %v8691_v53, %v4784_v16  ;;  %v3954_v29 = vsel %vm1891_vm4, %v3922_v46, %v9596_v3 }
 0x540   : > { %v3720_v39 = vpop.permute.xlu1 %3719  ;;  %v3986_v5 = vsel %vm1957_vm6, %v3954_v29, %v9597_v51 }
 0x541   : > { %v4115_v45 = vsel %vm4091_vm12, %v4082_v59, %v3720_v39  ;;  %v4973_v44 = vadd.f32 %v8710_v37, %v4934_v30 }
 0x542   : > { %v5461_v14 = vpop.f32.mrf.mxu1  ;;  %v3338_v33 = vpop.permute.xlu0 %3337 }
 0x543   : > { %v4498_v28 = vmul.f32 %v5461_v14, %v8705_v38  ;;  %v4017_v19 = vsel %vm2023_vm8, %v3985_v49, %v3338_v33 }
 0x544   : > { %v3340_v27 = vpop.permute.xlu1 %3339  ;;  %v4339_v36 = vpop.f32.mrf.mxu1 }
 0x545   : > { %v4537_v6 = vadd.f32 %v8722_v12, %v4498_v28  ;;  %v4497_v8 = vmul.f32 %v8705_v38, %v4339_v36  ;;  %v4018_v39 = vsel %vm2023_vm8, %v3986_v5, %v3340_v27  ;;  %v5630_v5 = vld [vmem:[#allocation3 + $0x140] sm:$0xff] }
 0x546   : > { %v3846_v23 = vpop.permute.xlu0 %3845 }
 0x547   : > { %v5004_v25 = vadd.f32 %v4972_v57, %v4537_v6  ;;  %v4536_v21 = vadd.f32 %v8722_v12, %v4497_v8  ;;  %v4147_v10 = vsel %vm4124_vm13, %v4114_v35, %v3846_v23 }
 0x548   : > { %v3848_v63 = vpop.permute.xlu1 %3847  ;;  %5489 = vmatprep.mubr.msk.f32.mxu1 %vm4166_vm14, %v4147_v10  ;;  %v5517_v10 = vpop.f32.mrf.mxu0 }
 0x549   : > { %v5036_v55 = vmax.f32 %v5004_v25, 0.0  ;;  %v5003_v20 = vadd.f32 %v4971_v31, %v4536_v21  ;;  %v4148_v58 = vsel %vm4124_vm13, %v4115_v45, %v3848_v63  ;;  %v5629_v45 = vld [vmem:[#allocation3 + $0x138] sm:$0xff]  ;;  %v9598_v63 = vld [vmem:[#allocation24_spill] sm:$0xff]  ;;  %v4937_v16 = vmul.f32 %v5517_v10, %v8691_v53 }
 0x54a   : > { %v3466_v50 = vpop.permute.xlu0 %3465  ;;  %5490 = vmatmul.mubr.msk.f32.gmra.mxu1 %vm4166_vm14, %v4148_v58  ;;  %v9599_v58 = vld [vmem:[#allocation157_spill] sm:$0xff] }
 0x54b   : > { %5068 = vst.msk [vmem:[%s8742_s30 + $0x18] sm:$0xff] %vm1825_vm1, %v5036_v55  ;;  %v5035_v18 = vmax.f32 %v5003_v20, 0.0  ;;  %v4050_v32 = vsel %vm4025_vm10, %v4017_v19, %v3466_v50  ;;  %v3923_v55 = vsel %vm1825_vm1, %v5629_v45, %v9598_v63  ;;  %v4976_v62 = vadd.f32 %v8710_v37, %v4937_v16  ;;  %v9606_v63 = vld [vmem:[#allocation78_spill] sm:$0xff] }
 0x54c   : > { %v3594_v11 = vpop.permute.xlu1 %3593  ;;  %v3955_v50 = vsel %vm1891_vm4, %v3923_v55, %v9599_v58 }
 0x54d   : > { %5067 = vst.msk [vmem:[%s8742_s30 + $0x10] sm:$0xff] %vm1825_vm1, %v5035_v18  ;;  %v4083_v17 = vsel %vm4058_vm11, %v4050_v32, %v3594_v11  ;;  %v9600_v18 = vld [vmem:[#allocation38_spill] sm:$0xff]  ;;  %v9601_v32 = vld [vmem:[#allocation73_spill] sm:$0xff] }
 0x54e   : > { %v3468_v56 = vpop.permute.xlu0 %3467  ;;  %v3987_v11 = vsel %vm1957_vm6, %v3955_v50, %v9600_v18 }
 0x54f   : > { %v4051_v60 = vsel %vm4025_vm10, %v4018_v39, %v3468_v56  ;;  %v4794_v56 = vpop.f32.mrf.mxu0  ;;  %v9602_v39 = vld [vmem:[#allocation136_spill] sm:$0xff] }
 0x550   : > { %v3722_v7 = vpop.permute.xlu1 %3721  ;;  %v4936_v54 = vmul.f32 %v8691_v53, %v4794_v56 }
 0x551   : > { %v4116_v28 = vsel %vm4091_vm12, %v4083_v17, %v3722_v7 }
 0x552   : > { %v3596_v0 = vpop.permute.xlu0 %3595 }
 0x553   : > { %v4084_v14 = vsel %vm4058_vm11, %v4051_v60, %v3596_v0 }
 0x554   : > { %v3724_v61 = vpop.permute.xlu1 %3723 }
 0x555   : > { %v4117_v36 = vsel %vm4091_vm12, %v4084_v14, %v3724_v61  ;;  %v4975_v61 = vadd.f32 %v8710_v37, %v4936_v54 }
 0x556   : > { %v5464_v43 = vpop.f32.mrf.mxu1  ;;  %v3342_v41 = vpop.permute.xlu0 %3341 }
 0x557   : > { %v4500_v26 = vmul.f32 %v5464_v43, %v8705_v38  ;;  %v4019_v7 = vsel %vm2023_vm8, %v3987_v11, %v3342_v41  ;;  %v3924_v43 = vsel %vm1825_vm1, %v5630_v5, %v9601_v32 }
 0x558   : > { %v3344_v9 = vpop.permute.xlu1 %3343  ;;  %v4349_v42 = vpop.f32.mrf.mxu1 }
 0x559   : > { %v4539_v33 = vadd.f32 %v8722_v12, %v4500_v26  ;;  %v4499_v4 = vmul.f32 %v8705_v38, %v4349_v42  ;;  %v3956_v26 = vsel %vm1891_vm4, %v3924_v43, %v9602_v39 }
 0x55a   : > { %v3850_v57 = vpop.permute.xlu0 %3849 }
 0x55b   : > { %v5006_v2 = vadd.f32 %v4974_v24, %v4539_v33  ;;  %v4538_v31 = vadd.f32 %v8722_v12, %v4499_v4  ;;  %v4149_v27 = vsel %vm4124_vm13, %v4116_v28, %v3850_v57 }
 0x55c   : > { %v3852_v47 = vpop.permute.xlu1 %3851  ;;  %5492 = vmatprep.mubr.msk.f32.mxu1 %vm4166_vm14, %v4149_v27  ;;  %v5520_v27 = vpop.f32.mrf.mxu0 }
 0x55d   : > { %v5038_v59 = vmax.f32 %v5006_v2, 0.0  ;;  %v5005_v6 = vadd.f32 %v4973_v44, %v4538_v31  ;;  %v4150_v8 = vsel %vm4124_vm13, %v4117_v36, %v3852_v47  ;;  %v9603_v44 = vld [vmem:[#allocation61_spill] sm:$0xff] }
 0x55e   : > { %v3470_v35 = vpop.permute.xlu0 %3469  ;;  %5493 = vmatmul.mubr.msk.f32.gmra.mxu1 %vm4166_vm14, %v4150_v8  ;;  %v3988_v42 = vsel %vm1957_vm6, %v3956_v26, %v9603_v44  ;;  %v5631_v8 = vld [vmem:[#allocation3 + $0x150] sm:$0xff] }
 0x55f   : > { %5070 = vst.msk [vmem:[%s8742_s30 + $0x28] sm:$0xff] %vm1825_vm1, %v5038_v59  ;;  %v5037_v23 = vmax.f32 %v5005_v6, 0.0  ;;  %v4052_v34 = vsel %vm4025_vm10, %v4019_v7, %v3470_v35  ;;  %v4020_v14 = vsel %vm2023_vm8, %v3988_v42, %v3344_v9  ;;  %v4804_v59 = vpop.f32.mrf.mxu0  ;;  %v4939_v6 = vmul.f32 %v5520_v27, %v8691_v53  ;;  %v9604_v35 = vld [vmem:[#allocation55_spill] sm:$0xff] }
 0x560   : > { %v3598_v25 = vpop.permute.xlu1 %3597  ;;  %v4938_v45 = vmul.f32 %v8691_v53, %v4804_v59  ;;  %v9610_v59 = vld [vmem:[#allocation75_spill] sm:$0xff] }
 0x561   : > { %5069 = vst.msk [vmem:[%s8742_s30 + $0x20] sm:$0xff] %vm1825_vm1, %v5037_v23  ;;  %v4085_v13 = vsel %vm4058_vm11, %v4052_v34, %v3598_v25  ;;  %v3925_v23 = vsel %vm1825_vm1, %v5631_v8, %v9604_v35  ;;  %v4978_v11 = vadd.f32 %v8710_v37, %v4939_v6  ;;  %v5523_v26 = vpop.f32.mrf.mxu0 }
 0x562   : > { %v3472_v21 = vpop.permute.xlu0 %3471  ;;  %v4977_v54 = vadd.f32 %v8710_v37, %v4938_v45 }
 0x563   : > { %v4053_v4 = vsel %vm4025_vm10, %v4020_v14, %v3472_v21  ;;  %v9605_v21 = vld [vmem:[#allocation8_spill] sm:$0xff] }
 0x564   : > { %v3726_v20 = vpop.permute.xlu1 %3725  ;;  %v3957_v10 = vsel %vm1891_vm4, %v3925_v23, %v9605_v21  ;;  %v9611_v23 = vld [vmem:[#allocation160_spill] sm:$0xff] }
 0x565   : > { %v4118_v52 = vsel %vm4091_vm12, %v4085_v13, %v3726_v20  ;;  %v3989_v55 = vsel %vm1957_vm6, %v3957_v10, %v9606_v63  ;;  %v9612_v21 = vld [vmem:[#allocation32_spill] sm:$0xff] }
 0x566   : > { %v3600_v22 = vpop.permute.xlu0 %3599 }
 0x567   : > { %v4086_v57 = vsel %vm4058_vm11, %v4053_v4, %v3600_v22 }
 0x568   : > { %v3346_v40 = vpop.permute.xlu1 %3345 }
 0x569   : > { %v4021_v50 = vsel %vm2023_vm8, %v3989_v55, %v3346_v40 }
 0x56a   : > { %v5467_v0 = vpop.f32.mrf.mxu1  ;;  %v8833_v1 = vpop.permute.xlu0 %3219 }
 0x56b   : > { %v4502_v15 = vmul.f32 %v5467_v0, %v8705_v38 }
 0x56c   : > { %v3854_v46 = vpop.permute.xlu1 %3853  ;;  %v4359_v48 = vpop.f32.mrf.mxu1 }
 0x56d   : > { %v4541_v49 = vadd.f32 %v8722_v12, %v4502_v15  ;;  %v4151_v30 = vsel %vm4124_vm13, %v4118_v52, %v3854_v46  ;;  %v4501_v3 = vmul.f32 %v8705_v38, %v4359_v48 }
 0x56e   : > { %v3728_v29 = vpop.permute.xlu0 %3727  ;;  %5495 = vmatprep.mubr.msk.f32.mxu1 %vm4166_vm14, %v4151_v30  ;;  %v9607_v30 = vld [vmem:[#allocation26_spill] sm:$0xff] }
 0x56f   : > { %v5008_v19 = vadd.f32 %v4976_v62, %v4541_v49  ;;  %v4540_v51 = vadd.f32 %v8722_v12, %v4501_v3  ;;  %v4119_v2 = vsel %vm4091_vm12, %v4086_v57, %v3728_v29 }
 0x570   : > { %v3474_v41 = vpop.permute.xlu1 %3473 }
 0x571   : > { %v5040_v24 = vmax.f32 %v5008_v19, 0.0  ;;  %v5007_v60 = vadd.f32 %v4975_v61, %v4540_v51  ;;  %v4054_v22 = vsel %vm4025_vm10, %v4021_v50, %v3474_v41  ;;  %v5632_v61 = vld [vmem:[#allocation3 + $0x158] sm:$0xff]  ;;  %v9608_v19 = vld [vmem:[#allocation99_spill] sm:$0xff] }
 0x572   : > { %v3348_v17 = vpop.permute.xlu0 %3347  ;;  %v3926_v3 = vsel %vm1825_vm1, %v5632_v61, %v9607_v30 }
 0x573   : > { %5072 = vst.msk [vmem:[%s8742_s30 + $0x38] sm:$0xff] %vm1825_vm1, %v5040_v24  ;;  %v5039_v33 = vmax.f32 %v5007_v60, 0.0  ;;  %v3958_v51 = vsel %vm1891_vm4, %v3926_v3, %v9608_v19 }
 0x574   : > { %v3476_v28 = vpop.permute.xlu1 %3475  ;;  %v3990_v32 = vsel %vm1957_vm6, %v3958_v51, %v8833_v1  ;;  %v4941_v1 = vmul.f32 %v5523_v26, %v8691_v53 }
 0x575   : > { %5071 = vst.msk [vmem:[%s8742_s30 + $0x30] sm:$0xff] %vm1825_vm1, %v5039_v33  ;;  %v4022_v41 = vsel %vm2023_vm8, %v3990_v32, %v3348_v17  ;;  %v4814_v33 = vpop.f32.mrf.mxu0 }
 0x576   : > { %v3856_v31 = vpop.permute.xlu0 %3855  ;;  %v4055_v24 = vsel %vm4025_vm10, %v4022_v41, %v3476_v28  ;;  %v4940_v17 = vmul.f32 %v8691_v53, %v4814_v33  ;;  %v9609_v28 = vld [vmem:[#allocation132_spill] sm:$0xff]  ;;  %v4980_v35 = vadd.f32 %v8710_v37, %v4941_v1 }
 0x577   : > { %v4152_v36 = vsel %vm4124_vm13, %v4119_v2, %v3856_v31  ;;  %v2615_v2 = vld [vmem:[#allocation3 + $0x170] sm:$0xff]  ;;  %v5526_v30 = vpop.f32.mrf.mxu0 }
 0x578   : > { %v8860_v47 = vpop.permute.xlu1 %3221  ;;  %5496 = vmatmul.mubr.msk.f32.gmra.mxu1 %vm4166_vm14, %v4152_v36  ;;  %v3928_v36 = vsel %vm1825_vm1, %v2615_v2, %v9609_v28 }
 0x579   : > { %v4824_v3 = vpop.f32.mrf.mxu0 }
 0x57a   : > { %v3602_v9 = vpop.permute.xlu0 %3601  ;;  %v4942_v19 = vmul.f32 %v8691_v53, %v4824_v3 }
 0x57b   : > { %v4087_v16 = vsel %vm4058_vm11, %v4054_v22, %v3602_v9  ;;  %v5633_v9 = vld [vmem:[#allocation3 + $0x168] sm:$0xff]  ;;  %v5529_v33 = vpop.f32.mrf.mxu0 }
 0x57c   : > { %v3730_v25 = vpop.permute.xlu1 %3729  ;;  %v3927_v6 = vsel %vm1825_vm1, %v5633_v9, %v9610_v59  ;;  %v4981_v26 = vadd.f32 %v8710_v37, %v4942_v19  ;;  %v4945_v1 = vmul.f32 %v5529_v33, %v8691_v53 }
 0x57d   : > { %v4120_v62 = vsel %vm4091_vm12, %v4087_v16, %v3730_v25  ;;  %v3960_v25 = vsel %vm1891_vm4, %v3928_v36, %v9611_v23  ;;  %v3959_v10 = vsel %vm1891_vm4, %v3927_v6, %v9612_v21 }
 0x57e   : > { %v5470_v20 = vpop.f32.mrf.mxu1  ;;  %v3604_v58 = vpop.permute.xlu0 %3603 }
 0x57f   : > { %v4504_v18 = vmul.f32 %v5470_v20, %v8705_v38  ;;  %v4088_v44 = vsel %vm4058_vm11, %v4055_v24, %v3604_v58  ;;  %v4979_v58 = vadd.f32 %v8710_v37, %v4940_v17 }
 0x580   : > { %v3350_v56 = vpop.permute.xlu1 %3349  ;;  %v4369_v7 = vpop.f32.mrf.mxu1 }
 0x581   : > { %v4543_v34 = vadd.f32 %v8722_v12, %v4504_v18  ;;  %v4503_v0 = vmul.f32 %v8705_v38, %v4369_v7  ;;  %v3991_v18 = vsel %vm1957_vm6, %v3959_v10, %v8860_v47 }
 0x582   : > { %v3224_v13 = vpop.permute.xlu0 %3223  ;;  %v4023_v7 = vsel %vm2023_vm8, %v3991_v18, %v3350_v56 }
 0x583   : > { %v5010_v15 = vadd.f32 %v4978_v11, %v4543_v34  ;;  %v4542_v40 = vadd.f32 %v8722_v12, %v4503_v0  ;;  %v3992_v55 = vsel %vm1957_vm6, %v3960_v25, %v3224_v13 }
 0x584   : > { %v3858_v52 = vpop.permute.xlu1 %3857 }
 0x585   : > { %v5042_v46 = vmax.f32 %v5010_v15, 0.0  ;;  %v5009_v48 = vadd.f32 %v4977_v54, %v4542_v40  ;;  %v4153_v49 = vsel %vm4124_vm13, %v4120_v62, %v3858_v52 }
 0x586   : > { %v3732_v29 = vpop.permute.xlu0 %3731  ;;  %5498 = vmatprep.mubr.msk.f32.mxu1 %vm4166_vm14, %v4153_v49 }
 0x587   : > { %5074 = vst.msk [vmem:[%s8742_s30 + $0x48] sm:$0xff] %vm1825_vm1, %v5042_v46  ;;  %v5041_v5 = vmax.f32 %v5009_v48, 0.0  ;;  %v4121_v42 = vsel %vm4091_vm12, %v4088_v44, %v3732_v29  ;;  %v4943_v29 = vmul.f32 %v5526_v30, %v8691_v53 }
 0x588   : > { %v3478_v43 = vpop.permute.xlu1 %3477 }
 0x589   : > { %5073 = vst.msk [vmem:[%s8742_s30 + $0x40] sm:$0xff] %vm1825_vm1, %v5041_v5  ;;  %v4056_v54 = vsel %vm4025_vm10, %v4023_v7, %v3478_v43  ;;  %v4982_v32 = vadd.f32 %v8710_v37, %v4943_v29 }
 0x58a   : > { %v3352_v39 = vpop.permute.xlu0 %3351 }
 0x58b   : > { %v4024_v11 = vsel %vm2023_vm8, %v3992_v55, %v3352_v39 }
 0x58c   : > { %v3480_v60 = vpop.permute.xlu1 %3479 }
 0x58d   : > { %v4057_v0 = vsel %vm4025_vm10, %v4024_v11, %v3480_v60 }
 0x58e   : > { %v3860_v14 = vpop.permute.xlu0 %3859 }
 0x58f   : > { %v4154_v4 = vsel %vm4124_vm13, %v4121_v42, %v3860_v14 }
 0x590   : > { %v3608_v57 = vpop.permute.xlu1 %3607  ;;  %5499 = vmatmul.mubr.msk.f32.gmra.mxu1 %vm4166_vm14, %v4154_v4  ;;  %v4834_v4 = vpop.f32.mrf.mxu0 }
 0x591   : > { %v4090_v47 = vsel %vm4058_vm11, %v4057_v0, %v3608_v57  ;;  %v4944_v57 = vmul.f32 %v8691_v53, %v4834_v4 }
 0x592   : > { %v5473_v31 = vpop.f32.mrf.mxu1  ;;  %v3606_v27 = vpop.permute.xlu0 %3605 }
 0x593   : > { %v4506_v8 = vmul.f32 %v5473_v31, %v8705_v38  ;;  %v4089_v15 = vsel %vm4058_vm11, %v4056_v54, %v3606_v27  ;;  %v4984_v31 = vadd.f32 %v8710_v37, %v4945_v1  ;;  %v4983_v9 = vadd.f32 %v8710_v37, %v4944_v57  ;;  %v5532_v25 = vpop.f32.mrf.mxu0 }
 0x594   : > { %v3736_v45 = vpop.permute.xlu1 %3735  ;;  %v4379_v63 = vpop.f32.mrf.mxu1  ;;  %v4947_v10 = vmul.f32 %v5532_v25, %v8691_v53 }
 0x595   : > { %v4545_v20 = vadd.f32 %v8722_v12, %v4506_v8  ;;  %v4505_v50 = vmul.f32 %v8705_v38, %v4379_v63  ;;  %v4123_v56 = vsel %vm4091_vm12, %v4090_v47, %v3736_v45  ;;  %v4844_v21 = vpop.f32.mrf.mxu0 }
 0x596   : > { %v3734_v22 = vpop.permute.xlu0 %3733  ;;  %v4946_v45 = vmul.f32 %v8691_v53, %v4844_v21 }
 0x597   : > { %v5012_v16 = vadd.f32 %v4980_v35, %v4545_v20  ;;  %v4544_v34 = vadd.f32 %v8722_v12, %v4505_v50  ;;  %v4122_v52 = vsel %vm4091_vm12, %v4089_v15, %v3734_v22  ;;  %v4986_v20 = vadd.f32 %v8710_v37, %v4947_v10  ;;  %v5535_v0 = vpop.f32.mrf.mxu0 }
 0x598   : > { %v3864_v62 = vpop.permute.xlu1 %3863  ;;  %v4985_v11 = vadd.f32 %v8710_v37, %v4946_v45  ;;  %v4949_v15 = vmul.f32 %v5535_v0, %v8691_v53 }
 0x599   : > { %v5044_v13 = vmax.f32 %v5012_v16, 0.0  ;;  %v5011_v40 = vadd.f32 %v4979_v58, %v4544_v34  ;;  %v4156_v61 = vsel %vm4124_vm13, %v4123_v56, %v3864_v62 }
 0x59a   : > { %v3862_v46 = vpop.permute.xlu0 %3861 }
 0x59b   : > { %5076 = vst.msk [vmem:[%s8742_s30 + $0x58] sm:$0xff] %vm1825_vm1, %v5044_v13  ;;  %v5043_v48 = vmax.f32 %v5011_v40, 0.0  ;;  %v4155_v49 = vsel %vm4124_vm13, %v4122_v52, %v3862_v46  ;;  %v4854_v13 = vpop.f32.mrf.mxu0  ;;  %v4988_v52 = vadd.f32 %v8710_v37, %v4949_v15 }
 0x59c   : > { %5501 = vmatprep.mubr.msk.f32.mxu1 %vm4166_vm14, %v4155_v49  ;;  %v4948_v40 = vmul.f32 %v8691_v53, %v4854_v13 }
 0x59d   : > { %5075 = vst.msk [vmem:[%s8742_s30 + $0x50] sm:$0xff] %vm1825_vm1, %v5043_v48  ;;  %5502 = vmatmul.mubr.msk.f32.gmra.mxu1 %vm4166_vm14, %v4156_v61 }
 0x59e   : > { %v4987_v49 = vadd.f32 %v8710_v37, %v4948_v40 }
 0x5a6   : > { %v5476_v51 = vpop.f32.mrf.mxu1 }
 0x5a7   : > { %v4508_v5 = vmul.f32 %v5476_v51, %v8705_v38  ;;  %v5538_v51 = vpop.f32.mrf.mxu0 }
 0x5a8   : > { %v4389_v43 = vpop.f32.mrf.mxu1 }
 0x5a9   : > { %v4547_v41 = vadd.f32 %v8722_v12, %v4508_v5  ;;  %v4507_v39 = vmul.f32 %v8705_v38, %v4389_v43  ;;  %v4864_v5 = vpop.f32.mrf.mxu0 }
 0x5aa   : > { %v4950_v43 = vmul.f32 %v8691_v53, %v4864_v5 }
 0x5ab   : > { %v5014_v24 = vadd.f32 %v4982_v32, %v4547_v41  ;;  %v4546_v60 = vadd.f32 %v8722_v12, %v4507_v39  ;;  %v4951_v32 = vmul.f32 %v5538_v51, %v8691_v53 }
 0x5ad   : > { %v5046_v44 = vmax.f32 %v5014_v24, 0.0  ;;  %v5013_v42 = vadd.f32 %v4981_v26, %v4546_v60  ;;  %v4990_v26 = vadd.f32 %v8710_v37, %v4951_v32 }
 0x5af   : > { %5078 = vst.msk [vmem:[%s8742_s30 + $0x68] sm:$0xff] %vm1825_vm1, %v5046_v44  ;;  %v5045_v14 = vmax.f32 %v5013_v42, 0.0  ;;  %v4989_v42 = vadd.f32 %v8710_v37, %v4950_v43 }
 0x5b1   : > { %5077 = vst.msk [vmem:[%s8742_s30 + $0x60] sm:$0xff] %vm1825_vm1, %v5045_v14 }
 0x5ba   : > { %v5479_v17 = vpop.f32.mrf.mxu1 }
 0x5bb   : > { %v4510_v2 = vmul.f32 %v5479_v17, %v8705_v38  ;;  %v5541_v17 = vpop.f32.mrf.mxu0 }
 0x5bc   : > { %v4399_v27 = vpop.f32.mrf.mxu1 }
 0x5bd   : > { %v4549_v28 = vadd.f32 %v8722_v12, %v4510_v2  ;;  %v4509_v36 = vmul.f32 %v8705_v38, %v4399_v27  ;;  %v4874_v2 = vpop.f32.mrf.mxu0 }
 0x5be   : > { %v4952_v27 = vmul.f32 %v8691_v53, %v4874_v2 }
 0x5bf   : > { %v5016_v59 = vadd.f32 %v4984_v31, %v4549_v28  ;;  %v4548_v6 = vadd.f32 %v8722_v12, %v4509_v36  ;;  %v4953_v31 = vmul.f32 %v5541_v17, %v8691_v53 }
 0x5c1   : > { %v5048_v8 = vmax.f32 %v5016_v59, 0.0  ;;  %v5015_v35 = vadd.f32 %v4983_v9, %v4548_v6  ;;  %v4992_v9 = vadd.f32 %v8710_v37, %v4953_v31 }
 0x5c3   : > { %5080 = vst.msk [vmem:[%s8742_s30 + $0x78] sm:$0xff] %vm1825_vm1, %v5048_v8  ;;  %v5047_v23 = vmax.f32 %v5015_v35, 0.0  ;;  %v4991_v35 = vadd.f32 %v8710_v37, %v4952_v27 }
 0x5c5   : > { %5079 = vst.msk [vmem:[%s8742_s30 + $0x70] sm:$0xff] %vm1825_vm1, %v5047_v23 }
 0x5ce   : > { %v5482_v63 = vpop.f32.mrf.mxu1 }
 0x5cf   : > { %v4512_v55 = vmul.f32 %v5482_v63, %v8705_v38  ;;  %v5544_v63 = vpop.f32.mrf.mxu0 }
 0x5d0   : > { %v4409_v58 = vpop.f32.mrf.mxu1 }
 0x5d1   : > { %v4551_v50 = vadd.f32 %v8722_v12, %v4512_v55  ;;  %v4511_v18 = vmul.f32 %v8705_v38, %v4409_v58  ;;  %v4884_v55 = vpop.f32.mrf.mxu0 }
 0x5d2   : > { %v4954_v58 = vmul.f32 %v8691_v53, %v4884_v55 }
 0x5d3   : > { %v5018_v22 = vadd.f32 %v4986_v20, %v4551_v50  ;;  %v4550_v7 = vadd.f32 %v8722_v12, %v4511_v18  ;;  %v4955_v20 = vmul.f32 %v5544_v63, %v8691_v53 }
 0x5d5   : > { %v5050_v16 = vmax.f32 %v5018_v22, 0.0  ;;  %v5017_v34 = vadd.f32 %v4985_v11, %v4550_v7  ;;  %v4994_v11 = vadd.f32 %v8710_v37, %v4955_v20 }
 0x5d7   : > { %5082 = vst.msk [vmem:[%s8742_s30 + $0x88] sm:$0xff] %vm1825_vm1, %v5050_v16  ;;  %v5049_v54 = vmax.f32 %v5017_v34, 0.0  ;;  %v4993_v34 = vadd.f32 %v8710_v37, %v4954_v58 }
 0x5d9   : > { %5081 = vst.msk [vmem:[%s8742_s30 + $0x80] sm:$0xff] %vm1825_vm1, %v5049_v54 }
 0x5e2   : > { %v5485_v62 = vpop.f32.mrf.mxu1 }
 0x5e3   : > { %v4514_v47 = vmul.f32 %v5485_v62, %v8705_v38  ;;  %v5547_v62 = vpop.f32.mrf.mxu0 }
 0x5e4   : > { %v4419_v46 = vpop.f32.mrf.mxu1 }
 0x5e5   : > { %v4553_v56 = vadd.f32 %v8722_v12, %v4514_v47  ;;  %v4513_v48 = vmul.f32 %v8705_v38, %v4419_v46  ;;  %v4894_v47 = vpop.f32.mrf.mxu0 }
 0x5e6   : > { %v4956_v46 = vmul.f32 %v8691_v53, %v4894_v47 }
 0x5e7   : > { %v5020_v61 = vadd.f32 %v4988_v52, %v4553_v56  ;;  %v4552_v30 = vadd.f32 %v8722_v12, %v4513_v48  ;;  %v4957_v52 = vmul.f32 %v5547_v62, %v8691_v53 }
 0x5e9   : > { %v5052_v3 = vmax.f32 %v5020_v61, 0.0  ;;  %v5019_v29 = vadd.f32 %v4987_v49, %v4552_v30  ;;  %v4996_v49 = vadd.f32 %v8710_v37, %v4957_v52 }
 0x5eb   : > { %5084 = vst.msk [vmem:[%s8742_s30 + $0x98] sm:$0xff] %vm1825_vm1, %v5052_v3  ;;  %v5051_v19 = vmax.f32 %v5019_v29, 0.0  ;;  %v4995_v29 = vadd.f32 %v8710_v37, %v4956_v46 }
 0x5ed   : > { %5083 = vst.msk [vmem:[%s8742_s30 + $0x90] sm:$0xff] %vm1825_vm1, %v5051_v19 }
 0x5f6   : > { %v5488_v41 = vpop.f32.mrf.mxu1 }
 0x5f7   : > { %v4516_v39 = vmul.f32 %v5488_v41, %v8705_v38  ;;  %v5550_v41 = vpop.f32.mrf.mxu0 }
 0x5f8   : > { %v4429_v24 = vpop.f32.mrf.mxu1 }
 0x5f9   : > { %v4555_v60 = vadd.f32 %v8722_v12, %v4516_v39  ;;  %v4515_v44 = vmul.f32 %v8705_v38, %v4429_v24  ;;  %v4904_v39 = vpop.f32.mrf.mxu0 }
 0x5fa   : > { %v4958_v24 = vmul.f32 %v8691_v53, %v4904_v39 }
 0x5fb   : > { %v5022_v14 = vadd.f32 %v4990_v26, %v4555_v60  ;;  %v4554_v33 = vadd.f32 %v8722_v12, %v4515_v44  ;;  %v4959_v26 = vmul.f32 %v5550_v41, %v8691_v53  ;;  %v5553_v27 = vpop.f32.mrf.mxu0 }
 0x5fd   : > { %v5054_v4 = vmax.f32 %v5022_v14, 0.0  ;;  %v5021_v1 = vadd.f32 %v4989_v42, %v4554_v33  ;;  %v4998_v42 = vadd.f32 %v8710_v37, %v4959_v26 }
 0x5ff   : > { %5086 = vst.msk [vmem:[%s8742_s30 + $0xa8] sm:$0xff] %vm1825_vm1, %v5054_v4  ;;  %v5053_v57 = vmax.f32 %v5021_v1, 0.0  ;;  %v4997_v1 = vadd.f32 %v8710_v37, %v4958_v24 }
 0x601   : > { %5085 = vst.msk [vmem:[%s8742_s30 + $0xa0] sm:$0xff] %vm1825_vm1, %v5053_v57 }
 0x60a   : > { %v5491_v28 = vpop.f32.mrf.mxu1 }
 0x60b   : > { %v4518_v36 = vmul.f32 %v5491_v28, %v8705_v38 }
 0x60c   : > { %v4439_v59 = vpop.f32.mrf.mxu1 }
 0x60d   : > { %v4557_v6 = vadd.f32 %v8722_v12, %v4518_v36  ;;  %v4517_v8 = vmul.f32 %v8705_v38, %v4439_v59  ;;  %v4961_v36 = vmul.f32 %v5553_v27, %v8691_v53 }
 0x60f   : > { %v5024_v23 = vadd.f32 %v4992_v9, %v4557_v6  ;;  %v4556_v25 = vadd.f32 %v8722_v12, %v4517_v8  ;;  %v4914_v9 = vpop.f32.mrf.mxu0  ;;  %v5000_v6 = vadd.f32 %v8710_v37, %v4961_v36 }
 0x611   : > { %v5056_v21 = vmax.f32 %v5024_v23, 0.0  ;;  %v5023_v10 = vadd.f32 %v4991_v35, %v4556_v25  ;;  %v4960_v35 = vmul.f32 %v8691_v53, %v4914_v9 }
 0x613   : > { %5088 = vst.msk [vmem:[%s8742_s30 + $0xb8] sm:$0xff] %vm1825_vm1, %v5056_v21  ;;  %v5055_v45 = vmax.f32 %v5023_v10, 0.0 }
 0x615   : > { %5087 = vst.msk [vmem:[%s8742_s30 + $0xb0] sm:$0xff] %vm1825_vm1, %v5055_v45  ;;  %v4999_v45 = vadd.f32 %v8710_v37, %v4960_v35 }
 0x61e   : > { %v5494_v50 = vpop.f32.mrf.mxu1 }
 0x61f   : > { %v4520_v18 = vmul.f32 %v5494_v50, %v8705_v38 }
 0x620   : > { %v4449_v22 = vpop.f32.mrf.mxu1 }
 0x621   : > { %v4559_v7 = vadd.f32 %v8722_v12, %v4520_v18  ;;  %v4519_v16 = vmul.f32 %v8705_v38, %v4449_v22 }
 0x623   : > { %v5026_v54 = vadd.f32 %v4994_v11, %v4559_v7  ;;  %v4558_v0 = vadd.f32 %v8722_v12, %v4519_v16 }
 0x625   : > { %v5058_v13 = vmax.f32 %v5026_v54, 0.0  ;;  %v5025_v15 = vadd.f32 %v4993_v34, %v4558_v0 }
 0x627   : > { %5090 = vst.msk [vmem:[%s8742_s30 + $0xc8] sm:$0xff] %vm1825_vm1, %v5058_v13  ;;  %v5057_v40 = vmax.f32 %v5025_v15, 0.0 }
 0x629   : > { %5089 = vst.msk [vmem:[%s8742_s30 + $0xc0] sm:$0xff] %vm1825_vm1, %v5057_v40 }
 0x638   : > { %v5497_v56 = vpop.f32.mrf.mxu1 }
 0x639   : > { %v4522_v48 = vmul.f32 %v5497_v56, %v8705_v38 }
 0x63a   : > { %v4459_v61 = vpop.f32.mrf.mxu1 }
 0x63b   : > { %v4561_v30 = vadd.f32 %v8722_v12, %v4522_v48  ;;  %v4521_v3 = vmul.f32 %v8705_v38, %v4459_v61 }
 0x63d   : > { %v5028_v19 = vadd.f32 %v4996_v49, %v4561_v30  ;;  %v4560_v51 = vadd.f32 %v8722_v12, %v4521_v3 }
 0x63f   : > { %v5060_v5 = vmax.f32 %v5028_v19, 0.0  ;;  %v5027_v32 = vadd.f32 %v4995_v29, %v4560_v51 }
 0x641   : > { %5092 = vst.msk [vmem:[%s8742_s30 + $0xd8] sm:$0xff] %vm1825_vm1, %v5060_v5  ;;  %v5059_v43 = vmax.f32 %v5027_v32, 0.0 }
 0x643   : > { %5091 = vst.msk [vmem:[%s8742_s30 + $0xd0] sm:$0xff] %vm1825_vm1, %v5059_v43 }
 0x650   : > { %v5500_v60 = vpop.f32.mrf.mxu1 }
 0x651   : > { %v4524_v44 = vmul.f32 %v5500_v60, %v8705_v38 }
 0x652   : > { %v4469_v14 = vpop.f32.mrf.mxu1 }
 0x653   : > { %v4563_v33 = vadd.f32 %v8722_v12, %v4524_v44  ;;  %v4523_v4 = vmul.f32 %v8705_v38, %v4469_v14 }
 0x655   : > { %v5030_v57 = vadd.f32 %v4998_v42, %v4563_v33  ;;  %v4562_v17 = vadd.f32 %v8722_v12, %v4523_v4 }
 0x657   : > { %v5062_v2 = vmax.f32 %v5030_v57, 0.0  ;;  %v5029_v31 = vadd.f32 %v4997_v1, %v4562_v17 }
 0x659   : > { %5094 = vst.msk [vmem:[%s8742_s30 + $0xe8] sm:$0xff] %vm1825_vm1, %v5062_v2  ;;  %v5061_v28 = vmax.f32 %v5029_v31, 0.0 }
 0x65b   : > { %5093 = vst.msk [vmem:[%s8742_s30 + $0xe0] sm:$0xff] %vm1825_vm1, %v5061_v28 }
 0x65d   : > { %v5503_v59 = vpop.f32.mrf.mxu1 }
 0x65e   : > { %v4526_v8 = vmul.f32 %v5503_v59, %v8705_v38 }
 0x65f   : > { %v4479_v23 = vpop.f32.mrf.mxu1 }
 0x660   : > { %v4565_v25 = vadd.f32 %v8722_v12, %v4526_v8  ;;  %v4525_v21 = vmul.f32 %v8705_v38, %v4479_v23 }
 0x662   : > { %v5032_v10 = vadd.f32 %v5000_v6, %v4565_v25  ;;  %v4564_v63 = vadd.f32 %v8722_v12, %v4525_v21 }
 0x664   : > { %v5064_v55 = vmax.f32 %v5032_v10, 0.0  ;;  %v5031_v20 = vadd.f32 %v4999_v45, %v4564_v63 }
 0x666   : > { %5096 = vst.msk [vmem:[%s8742_s30 + $0xf8] sm:$0xff] %vm1825_vm1, %v5064_v55  ;;  %v5063_v58 = vmax.f32 %v5031_v20, 0.0 }
 0x668   : > { %5095 = vst.msk [vmem:[%s8742_s30 + $0xf0] sm:$0xff] %vm1825_vm1, %v5063_v58 }
 0x669 PF: > { %s20_s13 = sadd.s32 1, %s5640_s13  }
 0x66a   : > { %p17_p4 = scmp.ge.s32.totalorder %s20_s13, 4  }
 0x66c   :  { %19 = sbr.rel (!%p17_p4) target bundleno = 1 (0x1), region = 94 }

</bundles_post_ra>
